<compile_context>
chip_gen: v7x
topology: tpu7x:2x2x1
jax: 0.10.0
libtpu: 0.0.40
codegen_flags: <defaults>
</compile_context>

<pallas_src>
import jax
import jax.numpy as jnp
import numpy as np
from jax import lax
from jax.experimental import pallas as pl
from jax.experimental.pallas import tpu as pltpu

KS = 3          # 3x3 conv on the x branch
PAD = 1
LN_EPS = 1e-5
BN_EPS = 1e-5


# ---------------------------------------------------------------------------
# Fused kernel: one batch element per grid step, blocks are (1, C, H, W)
# ---------------------------------------------------------------------------
def posatt7b_kernel(x_ref, y_ref, wy_ref, wx_ref, scale_ref, shift_ref,
                    o_ref, xp_ref):
    _, C, H, W = x_ref.shape

    x = x_ref[0]                                  # (C, H, W)
    y = y_ref[0]                                  # (C, H, W)

    # ---- y branch: 1x1 conv (C -> 1) as C scalar-plane FMAs (VPU) ----------
    y1 = jnp.zeros((H, W), jnp.float32)
    for c in range(C):
        y1 = y1 + wy_ref[c] * y[c]

    # LayerNorm over (1, H, W); fresh module in forward() => weight=1, bias=0
    mu = jnp.mean(y1, keepdims=True)              # (1, 1)
    d = y1 - mu
    var = jnp.mean(d * d, keepdims=True)          # biased variance (LayerNorm)
    y1n = d * lax.rsqrt(var + LN_EPS)
    gate = 1.0 / (1.0 + jnp.exp(-y1n))            # sigmoid, (H, W)

    # ---- x branch: 3x3 conv (C->C, pad 1, no bias) + folded BatchNorm ------
    # Zero-padded copy of x lives only in VMEM scratch (no HBM pad round trip).
    xp_ref[...] = jnp.zeros_like(xp_ref)
    xp_ref[:, PAD:PAD + H, PAD:PAD + W] = x

    accs = [jnp.zeros((H, W), jnp.float32) for _ in range(C)]
    for ci in range(C):
        xpi = xp_ref[ci]                          # (H + 2, W + 2)
        for kh in range(KS):
            for kw in range(KS):
                plane = xpi[kh:kh + H, kw:kw + W]     # shifted (H, W) window
                for co in range(C):
                    w = wx_ref[((co * C + ci) * KS + kh) * KS + kw]
                    accs[co] = accs[co] + w * plane

    # ---- BN affine + gated combine:  out = x1 * gate + y -------------------
    for co in range(C):
        x1 = accs[co] * scale_ref[co] + shift_ref[co]
        o_ref[0, co] = x1 * gate + y[co]


# ---------------------------------------------------------------------------
# Wrapper
# ---------------------------------------------------------------------------
def pos_att7b(x, y, wy, wx, gamma, beta, running_mean, running_var):
    B, C, H, W = x.shape
    # Fold BatchNorm (inference, no conv bias) into per-channel scale / shift.
    scale = gamma * lax.rsqrt(running_var + BN_EPS)     # (C,)
    shift = beta - running_mean * scale                 # (C,)
    wx_flat = wx.reshape(-1).astype(jnp.float32)        # (C*C*3*3,), OIHW order
    wy_flat = wy.reshape(-1).astype(jnp.float32)        # (C,)

    return pl.pallas_call(
        posatt7b_kernel,
        out_shape=jax.ShapeDtypeStruct((B, C, H, W), jnp.float32),
        grid=(B,),
        in_specs=[
            pl.BlockSpec((1, C, H, W), lambda b: (b, 0, 0, 0)),        # x
            pl.BlockSpec((1, C, H, W), lambda b: (b, 0, 0, 0)),        # y
            pl.BlockSpec(memory_space=pltpu.MemorySpace.SMEM),         # wy
            pl.BlockSpec(memory_space=pltpu.MemorySpace.SMEM),         # wx flat
            pl.BlockSpec(memory_space=pltpu.MemorySpace.SMEM),         # BN scale
            pl.BlockSpec(memory_space=pltpu.MemorySpace.SMEM),         # BN shift
        ],
        out_specs=pl.BlockSpec((1, C, H, W), lambda b: (b, 0, 0, 0)),
        scratch_shapes=[
            pltpu.VMEM((C, H + 2 * PAD, W + 2 * PAD), jnp.float32),    # padded x
        ],
        compiler_params=pltpu.CompilerParams(
            dimension_semantics=("parallel",)),
    )(x, y, wy_flat, wx_flat, scale, shift)


# ---------------------------------------------------------------------------
# Pure-JAX reference (for correctness check)
# ---------------------------------------------------------------------------
def pos_att7b_ref(x, y, wy, wx, gamma, beta, running_mean, running_var):
    y1 = jnp.einsum('bchw,c->bhw', y, wy)[:, None, :, :]          # (B,1,H,W)
    mu = jnp.mean(y1, axis=(1, 2, 3), keepdims=True)
    var = jnp.mean((y1 - mu) ** 2, axis=(1, 2, 3), keepdims=True)
    gate = jax.nn.sigmoid((y1 - mu) / jnp.sqrt(var + LN_EPS))
    x1 = lax.conv_general_dilated(
        x, wx, window_strides=(1, 1), padding='SAME',
        dimension_numbers=('NCHW', 'OIHW', 'NCHW'))
    x1 = ((x1 - running_mean[None, :, None, None])
          / jnp.sqrt(running_var[None, :, None, None] + BN_EPS)
          * gamma[None, :, None, None] + beta[None, :, None, None])
    return x1 * gate + y


# ---------------------------------------------------------------------------
if __name__ == "__main__":
    B, C, H, W = 2, 4, 16, 16
    key = jax.random.PRNGKey(0)
    ks = jax.random.split(key, 8)
    x = jax.random.normal(ks[0], (B, C, H, W), jnp.float32)
    y = jax.random.normal(ks[1], (B, C, H, W), jnp.float32)
    wy = jax.random.normal(ks[2], (C,), jnp.float32) * 0.3            # Conv2d(C,1,1) weight
    wx = jax.random.normal(ks[3], (C, C, KS, KS), jnp.float32) * 0.2  # Conv2d(C,C,3) weight, OIHW
    gamma = 1.0 + 0.1 * jax.random.normal(ks[4], (C,), jnp.float32)
    beta = 0.1 * jax.random.normal(ks[5], (C,), jnp.float32)
    running_mean = 0.1 * jax.random.normal(ks[6], (C,), jnp.float32)
    running_var = 1.0 + 0.1 * jnp.abs(jax.random.normal(ks[7], (C,), jnp.float32))

    out = pos_att7b(x, y, wy, wx, gamma, beta, running_mean, running_var)
    out = jax.block_until_ready(out)

    ref = pos_att7b_ref(x, y, wy, wx, gamma, beta, running_mean, running_var)
    np.testing.assert_allclose(np.asarray(out), np.asarray(ref),
                               rtol=1e-4, atol=1e-4)
    print("KERNEL_OK")
</pallas_src>

<mosaic_0001>
module attributes {stable_mosaic.version = 11 : i64} {
  func.func @posatt7b_kernel(%arg0: i32, %arg1: memref<1x4x16x16xf32, #tpu.memory_space<vmem>>, %arg2: memref<1x4x16x16xf32, #tpu.memory_space<vmem>>, %arg3: memref<4xf32, #tpu.memory_space<smem>>, %arg4: memref<144xf32, #tpu.memory_space<smem>>, %arg5: memref<4xf32, #tpu.memory_space<smem>>, %arg6: memref<4xf32, #tpu.memory_space<smem>>, %arg7: memref<1x4x16x16xf32, #tpu.memory_space<vmem>>, %arg8: memref<4x18x18xf32, #tpu.memory_space<vmem>>) attributes {dimension_semantics = [#tpu.dimension_semantics<parallel>], iteration_bounds = array<i64: 2>, scalar_prefetch = 0 : i64, scratch_operands = 1 : i64, tpu.core_type = #tpu.core_type<tc>, window_params = [{transform_indices = @transform_0, window_bounds = array<i64: 1, 4, 16, 16>}, {transform_indices = @transform_1, window_bounds = array<i64: 1, 4, 16, 16>}, {transform_indices = @transform_2, window_bounds = array<i64: 4>}, {transform_indices = @transform_3, window_bounds = array<i64: 144>}, {transform_indices = @transform_4, window_bounds = array<i64: 4>}, {transform_indices = @transform_5, window_bounds = array<i64: 4>}, {transform_indices = @transform_6, window_bounds = array<i64: 1, 4, 16, 16>}]} {
    %c0 = arith.constant 0 : index
    %c0_0 = arith.constant 0 : index
    %c0_1 = arith.constant 0 : index
    %c0_2 = arith.constant 0 : index
    %0 = vector.load %arg1[%c0, %c0_0, %c0_1, %c0_2] : memref<1x4x16x16xf32, #tpu.memory_space<vmem>>, vector<1x4x16x16xf32>
    %1 = vector.shape_cast %0 : vector<1x4x16x16xf32> to vector<4x16x16xf32>
    %c0_3 = arith.constant 0 : index
    %c0_4 = arith.constant 0 : index
    %c0_5 = arith.constant 0 : index
    %c0_6 = arith.constant 0 : index
    %2 = vector.load %arg2[%c0_3, %c0_4, %c0_5, %c0_6] : memref<1x4x16x16xf32, #tpu.memory_space<vmem>>, vector<1x4x16x16xf32>
    %3 = vector.shape_cast %2 : vector<1x4x16x16xf32> to vector<4x16x16xf32>
    %cst = arith.constant 0.000000e+00 : f32
    %4 = vector.broadcast %cst : f32 to vector<16x16xf32>
    %c0_7 = arith.constant 0 : index
    %5 = memref.load %arg3[%c0_7] : memref<4xf32, #tpu.memory_space<smem>>
    %6 = vector.extract_strided_slice %3 {offsets = [0, 0, 0], sizes = [1, 16, 16], strides = [1, 1, 1]} : vector<4x16x16xf32> to vector<1x16x16xf32>
    %7 = vector.shape_cast %6 : vector<1x16x16xf32> to vector<16x16xf32>
    %8 = vector.broadcast %5 : f32 to vector<16x16xf32>
    %9 = arith.mulf %8, %7 : vector<16x16xf32>
    %10 = arith.addf %4, %9 : vector<16x16xf32>
    %c1 = arith.constant 1 : index
    %11 = memref.load %arg3[%c1] : memref<4xf32, #tpu.memory_space<smem>>
    %12 = vector.extract_strided_slice %3 {offsets = [1, 0, 0], sizes = [1, 16, 16], strides = [1, 1, 1]} : vector<4x16x16xf32> to vector<1x16x16xf32>
    %13 = vector.shape_cast %12 : vector<1x16x16xf32> to vector<16x16xf32>
    %14 = vector.broadcast %11 : f32 to vector<16x16xf32>
    %15 = arith.mulf %14, %13 : vector<16x16xf32>
    %16 = arith.addf %10, %15 : vector<16x16xf32>
    %c2 = arith.constant 2 : index
    %17 = memref.load %arg3[%c2] : memref<4xf32, #tpu.memory_space<smem>>
    %18 = vector.extract_strided_slice %3 {offsets = [2, 0, 0], sizes = [1, 16, 16], strides = [1, 1, 1]} : vector<4x16x16xf32> to vector<1x16x16xf32>
    %19 = vector.shape_cast %18 : vector<1x16x16xf32> to vector<16x16xf32>
    %20 = vector.broadcast %17 : f32 to vector<16x16xf32>
    %21 = arith.mulf %20, %19 : vector<16x16xf32>
    %22 = arith.addf %16, %21 : vector<16x16xf32>
    %c3 = arith.constant 3 : index
    %23 = memref.load %arg3[%c3] : memref<4xf32, #tpu.memory_space<smem>>
    %24 = vector.extract_strided_slice %3 {offsets = [3, 0, 0], sizes = [1, 16, 16], strides = [1, 1, 1]} : vector<4x16x16xf32> to vector<1x16x16xf32>
    %25 = vector.shape_cast %24 : vector<1x16x16xf32> to vector<16x16xf32>
    %26 = vector.broadcast %23 : f32 to vector<16x16xf32>
    %27 = arith.mulf %26, %25 : vector<16x16xf32>
    %28 = arith.addf %22, %27 : vector<16x16xf32>
    %29 = vector.shape_cast %28 : vector<16x16xf32> to vector<1x16x16xf32>
    %cst_8 = arith.constant dense<0.000000e+00> : vector<1xf32>
    %30 = vector.multi_reduction <add>, %29, %cst_8 [1, 2] : vector<1x16x16xf32> to vector<1xf32>
    %31 = vector.shape_cast %30 : vector<1xf32> to vector<1x1x1xf32>
    %32 = vector.extract %31[0, 0, 0] : f32 from vector<1x1x1xf32>
    %33 = vector.broadcast %32 : f32 to vector<1x1xf32>
    %cst_9 = arith.constant 2.560000e+02 : f32
    %34 = vector.broadcast %cst_9 : f32 to vector<1x1xf32>
    %35 = arith.divf %33, %34 : vector<1x1xf32>
    %36 = vector.broadcast %35 : vector<1x1xf32> to vector<16x16xf32>
    %37 = arith.subf %28, %36 : vector<16x16xf32>
    %38 = arith.mulf %37, %37 : vector<16x16xf32>
    %39 = vector.shape_cast %38 : vector<16x16xf32> to vector<1x16x16xf32>
    %cst_10 = arith.constant dense<0.000000e+00> : vector<1xf32>
    %40 = vector.multi_reduction <add>, %39, %cst_10 [1, 2] : vector<1x16x16xf32> to vector<1xf32>
    %41 = vector.shape_cast %40 : vector<1xf32> to vector<1x1x1xf32>
    %42 = vector.extract %41[0, 0, 0] : f32 from vector<1x1x1xf32>
    %43 = vector.broadcast %42 : f32 to vector<1x1xf32>
    %cst_11 = arith.constant 2.560000e+02 : f32
    %44 = vector.broadcast %cst_11 : f32 to vector<1x1xf32>
    %45 = arith.divf %43, %44 : vector<1x1xf32>
    %cst_12 = arith.constant 9.99999974E-6 : f32
    %46 = vector.broadcast %cst_12 : f32 to vector<1x1xf32>
    %47 = arith.addf %45, %46 : vector<1x1xf32>
    %48 = math.rsqrt %47 : vector<1x1xf32>
    %49 = vector.broadcast %48 : vector<1x1xf32> to vector<16x16xf32>
    %50 = arith.mulf %37, %49 : vector<16x16xf32>
    %cst_13 = arith.constant 0.000000e+00 : f32
    %51 = vector.broadcast %cst_13 : f32 to vector<16x16xf32>
    %52 = arith.subf %51, %50 : vector<16x16xf32>
    %53 = math.exp %52 : vector<16x16xf32>
    %cst_14 = arith.constant 1.000000e+00 : f32
    %54 = vector.broadcast %cst_14 : f32 to vector<16x16xf32>
    %55 = arith.addf %54, %53 : vector<16x16xf32>
    %cst_15 = arith.constant 1.000000e+00 : f32
    %56 = vector.broadcast %cst_15 : f32 to vector<16x16xf32>
    %57 = arith.divf %56, %55 : vector<16x16xf32>
    %cst_16 = arith.constant 0.000000e+00 : f32
    %58 = vector.broadcast %cst_16 : f32 to vector<4x18x18xf32>
    %c0_17 = arith.constant 0 : index
    %c0_18 = arith.constant 0 : index
    %c0_19 = arith.constant 0 : index
    %59 = vector.load %arg8[%c0_17, %c0_18, %c0_19] : memref<4x18x18xf32, #tpu.memory_space<vmem>>, vector<4x18x18xf32>
    tpu.vector_store %arg8[%c0_17, %c0_18, %c0_19], %58 {strides = array<i32>} : memref<4x18x18xf32, #tpu.memory_space<vmem>>, vector<4x18x18xf32>,
    %c0_20 = arith.constant 0 : index
    %c1_21 = arith.constant 1 : index
    %c1_22 = arith.constant 1 : index
    %60 = vector.load %arg8[%c0_20, %c1_21, %c1_22] : memref<4x18x18xf32, #tpu.memory_space<vmem>>, vector<4x16x16xf32>
    tpu.vector_store %arg8[%c0_20, %c1_21, %c1_22], %1 {strides = array<i32>} : memref<4x18x18xf32, #tpu.memory_space<vmem>>, vector<4x16x16xf32>,
    %cst_23 = arith.constant 0.000000e+00 : f32
    %61 = vector.broadcast %cst_23 : f32 to vector<16x16xf32>
    %cst_24 = arith.constant 0.000000e+00 : f32
    %62 = vector.broadcast %cst_24 : f32 to vector<16x16xf32>
    %cst_25 = arith.constant 0.000000e+00 : f32
    %63 = vector.broadcast %cst_25 : f32 to vector<16x16xf32>
    %cst_26 = arith.constant 0.000000e+00 : f32
    %64 = vector.broadcast %cst_26 : f32 to vector<16x16xf32>
    %c0_27 = arith.constant 0 : index
    %c0_28 = arith.constant 0 : index
    %c0_29 = arith.constant 0 : index
    %65 = vector.load %arg8[%c0_27, %c0_28, %c0_29] : memref<4x18x18xf32, #tpu.memory_space<vmem>>, vector<1x18x18xf32>
    %66 = vector.shape_cast %65 : vector<1x18x18xf32> to vector<18x18xf32>
    %67 = vector.extract_strided_slice %66 {offsets = [0, 0], sizes = [16, 16], strides = [1, 1]} : vector<18x18xf32> to vector<16x16xf32>
    %c0_30 = arith.constant 0 : index
    %68 = memref.load %arg4[%c0_30] : memref<144xf32, #tpu.memory_space<smem>>
    %69 = vector.broadcast %68 : f32 to vector<16x16xf32>
    %70 = arith.mulf %69, %67 : vector<16x16xf32>
    %71 = arith.addf %61, %70 : vector<16x16xf32>
    %c36 = arith.constant 36 : index
    %72 = memref.load %arg4[%c36] : memref<144xf32, #tpu.memory_space<smem>>
    %73 = vector.broadcast %72 : f32 to vector<16x16xf32>
    %74 = arith.mulf %73, %67 : vector<16x16xf32>
    %75 = arith.addf %62, %74 : vector<16x16xf32>
    %c72 = arith.constant 72 : index
    %76 = memref.load %arg4[%c72] : memref<144xf32, #tpu.memory_space<smem>>
    %77 = vector.broadcast %76 : f32 to vector<16x16xf32>
    %78 = arith.mulf %77, %67 : vector<16x16xf32>
    %79 = arith.addf %63, %78 : vector<16x16xf32>
    %c108 = arith.constant 108 : index
    %80 = memref.load %arg4[%c108] : memref<144xf32, #tpu.memory_space<smem>>
    %81 = vector.broadcast %80 : f32 to vector<16x16xf32>
    %82 = arith.mulf %81, %67 : vector<16x16xf32>
    %83 = arith.addf %64, %82 : vector<16x16xf32>
    %84 = vector.extract_strided_slice %66 {offsets = [0, 1], sizes = [16, 16], strides = [1, 1]} : vector<18x18xf32> to vector<16x16xf32>
    %c1_31 = arith.constant 1 : index
    %85 = memref.load %arg4[%c1_31] : memref<144xf32, #tpu.memory_space<smem>>
    %86 = vector.broadcast %85 : f32 to vector<16x16xf32>
    %87 = arith.mulf %86, %84 : vector<16x16xf32>
    %88 = arith.addf %71, %87 : vector<16x16xf32>
    %c37 = arith.constant 37 : index
    %89 = memref.load %arg4[%c37] : memref<144xf32, #tpu.memory_space<smem>>
    %90 = vector.broadcast %89 : f32 to vector<16x16xf32>
    %91 = arith.mulf %90, %84 : vector<16x16xf32>
    %92 = arith.addf %75, %91 : vector<16x16xf32>
    %c73 = arith.constant 73 : index
    %93 = memref.load %arg4[%c73] : memref<144xf32, #tpu.memory_space<smem>>
    %94 = vector.broadcast %93 : f32 to vector<16x16xf32>
    %95 = arith.mulf %94, %84 : vector<16x16xf32>
    %96 = arith.addf %79, %95 : vector<16x16xf32>
    %c109 = arith.constant 109 : index
    %97 = memref.load %arg4[%c109] : memref<144xf32, #tpu.memory_space<smem>>
    %98 = vector.broadcast %97 : f32 to vector<16x16xf32>
    %99 = arith.mulf %98, %84 : vector<16x16xf32>
    %100 = arith.addf %83, %99 : vector<16x16xf32>
    %101 = vector.extract_strided_slice %66 {offsets = [0, 2], sizes = [16, 16], strides = [1, 1]} : vector<18x18xf32> to vector<16x16xf32>
    %c2_32 = arith.constant 2 : index
    %102 = memref.load %arg4[%c2_32] : memref<144xf32, #tpu.memory_space<smem>>
    %103 = vector.broadcast %102 : f32 to vector<16x16xf32>
    %104 = arith.mulf %103, %101 : vector<16x16xf32>
    %105 = arith.addf %88, %104 : vector<16x16xf32>
    %c38 = arith.constant 38 : index
    %106 = memref.load %arg4[%c38] : memref<144xf32, #tpu.memory_space<smem>>
    %107 = vector.broadcast %106 : f32 to vector<16x16xf32>
    %108 = arith.mulf %107, %101 : vector<16x16xf32>
    %109 = arith.addf %92, %108 : vector<16x16xf32>
    %c74 = arith.constant 74 : index
    %110 = memref.load %arg4[%c74] : memref<144xf32, #tpu.memory_space<smem>>
    %111 = vector.broadcast %110 : f32 to vector<16x16xf32>
    %112 = arith.mulf %111, %101 : vector<16x16xf32>
    %113 = arith.addf %96, %112 : vector<16x16xf32>
    %c110 = arith.constant 110 : index
    %114 = memref.load %arg4[%c110] : memref<144xf32, #tpu.memory_space<smem>>
    %115 = vector.broadcast %114 : f32 to vector<16x16xf32>
    %116 = arith.mulf %115, %101 : vector<16x16xf32>
    %117 = arith.addf %100, %116 : vector<16x16xf32>
    %118 = vector.extract_strided_slice %66 {offsets = [1, 0], sizes = [16, 16], strides = [1, 1]} : vector<18x18xf32> to vector<16x16xf32>
    %c3_33 = arith.constant 3 : index
    %119 = memref.load %arg4[%c3_33] : memref<144xf32, #tpu.memory_space<smem>>
    %120 = vector.broadcast %119 : f32 to vector<16x16xf32>
    %121 = arith.mulf %120, %118 : vector<16x16xf32>
    %122 = arith.addf %105, %121 : vector<16x16xf32>
    %c39 = arith.constant 39 : index
    %123 = memref.load %arg4[%c39] : memref<144xf32, #tpu.memory_space<smem>>
    %124 = vector.broadcast %123 : f32 to vector<16x16xf32>
    %125 = arith.mulf %124, %118 : vector<16x16xf32>
    %126 = arith.addf %109, %125 : vector<16x16xf32>
    %c75 = arith.constant 75 : index
    %127 = memref.load %arg4[%c75] : memref<144xf32, #tpu.memory_space<smem>>
    %128 = vector.broadcast %127 : f32 to vector<16x16xf32>
    %129 = arith.mulf %128, %118 : vector<16x16xf32>
    %130 = arith.addf %113, %129 : vector<16x16xf32>
    %c111 = arith.constant 111 : index
    %131 = memref.load %arg4[%c111] : memref<144xf32, #tpu.memory_space<smem>>
    %132 = vector.broadcast %131 : f32 to vector<16x16xf32>
    %133 = arith.mulf %132, %118 : vector<16x16xf32>
    %134 = arith.addf %117, %133 : vector<16x16xf32>
    %135 = vector.extract_strided_slice %66 {offsets = [1, 1], sizes = [16, 16], strides = [1, 1]} : vector<18x18xf32> to vector<16x16xf32>
    %c4 = arith.constant 4 : index
    %136 = memref.load %arg4[%c4] : memref<144xf32, #tpu.memory_space<smem>>
    %137 = vector.broadcast %136 : f32 to vector<16x16xf32>
    %138 = arith.mulf %137, %135 : vector<16x16xf32>
    %139 = arith.addf %122, %138 : vector<16x16xf32>
    %c40 = arith.constant 40 : index
    %140 = memref.load %arg4[%c40] : memref<144xf32, #tpu.memory_space<smem>>
    %141 = vector.broadcast %140 : f32 to vector<16x16xf32>
    %142 = arith.mulf %141, %135 : vector<16x16xf32>
    %143 = arith.addf %126, %142 : vector<16x16xf32>
    %c76 = arith.constant 76 : index
    %144 = memref.load %arg4[%c76] : memref<144xf32, #tpu.memory_space<smem>>
    %145 = vector.broadcast %144 : f32 to vector<16x16xf32>
    %146 = arith.mulf %145, %135 : vector<16x16xf32>
    %147 = arith.addf %130, %146 : vector<16x16xf32>
    %c112 = arith.constant 112 : index
    %148 = memref.load %arg4[%c112] : memref<144xf32, #tpu.memory_space<smem>>
    %149 = vector.broadcast %148 : f32 to vector<16x16xf32>
    %150 = arith.mulf %149, %135 : vector<16x16xf32>
    %151 = arith.addf %134, %150 : vector<16x16xf32>
    %152 = vector.extract_strided_slice %66 {offsets = [1, 2], sizes = [16, 16], strides = [1, 1]} : vector<18x18xf32> to vector<16x16xf32>
    %c5 = arith.constant 5 : index
    %153 = memref.load %arg4[%c5] : memref<144xf32, #tpu.memory_space<smem>>
    %154 = vector.broadcast %153 : f32 to vector<16x16xf32>
    %155 = arith.mulf %154, %152 : vector<16x16xf32>
    %156 = arith.addf %139, %155 : vector<16x16xf32>
    %c41 = arith.constant 41 : index
    %157 = memref.load %arg4[%c41] : memref<144xf32, #tpu.memory_space<smem>>
    %158 = vector.broadcast %157 : f32 to vector<16x16xf32>
    %159 = arith.mulf %158, %152 : vector<16x16xf32>
    %160 = arith.addf %143, %159 : vector<16x16xf32>
    %c77 = arith.constant 77 : index
    %161 = memref.load %arg4[%c77] : memref<144xf32, #tpu.memory_space<smem>>
    %162 = vector.broadcast %161 : f32 to vector<16x16xf32>
    %163 = arith.mulf %162, %152 : vector<16x16xf32>
    %164 = arith.addf %147, %163 : vector<16x16xf32>
    %c113 = arith.constant 113 : index
    %165 = memref.load %arg4[%c113] : memref<144xf32, #tpu.memory_space<smem>>
    %166 = vector.broadcast %165 : f32 to vector<16x16xf32>
    %167 = arith.mulf %166, %152 : vector<16x16xf32>
    %168 = arith.addf %151, %167 : vector<16x16xf32>
    %169 = vector.extract_strided_slice %66 {offsets = [2, 0], sizes = [16, 16], strides = [1, 1]} : vector<18x18xf32> to vector<16x16xf32>
    %c6 = arith.constant 6 : index
    %170 = memref.load %arg4[%c6] : memref<144xf32, #tpu.memory_space<smem>>
    %171 = vector.broadcast %170 : f32 to vector<16x16xf32>
    %172 = arith.mulf %171, %169 : vector<16x16xf32>
    %173 = arith.addf %156, %172 : vector<16x16xf32>
    %c42 = arith.constant 42 : index
    %174 = memref.load %arg4[%c42] : memref<144xf32, #tpu.memory_space<smem>>
    %175 = vector.broadcast %174 : f32 to vector<16x16xf32>
    %176 = arith.mulf %175, %169 : vector<16x16xf32>
    %177 = arith.addf %160, %176 : vector<16x16xf32>
    %c78 = arith.constant 78 : index
    %178 = memref.load %arg4[%c78] : memref<144xf32, #tpu.memory_space<smem>>
    %179 = vector.broadcast %178 : f32 to vector<16x16xf32>
    %180 = arith.mulf %179, %169 : vector<16x16xf32>
    %181 = arith.addf %164, %180 : vector<16x16xf32>
    %c114 = arith.constant 114 : index
    %182 = memref.load %arg4[%c114] : memref<144xf32, #tpu.memory_space<smem>>
    %183 = vector.broadcast %182 : f32 to vector<16x16xf32>
    %184 = arith.mulf %183, %169 : vector<16x16xf32>
    %185 = arith.addf %168, %184 : vector<16x16xf32>
    %186 = vector.extract_strided_slice %66 {offsets = [2, 1], sizes = [16, 16], strides = [1, 1]} : vector<18x18xf32> to vector<16x16xf32>
    %c7 = arith.constant 7 : index
    %187 = memref.load %arg4[%c7] : memref<144xf32, #tpu.memory_space<smem>>
    %188 = vector.broadcast %187 : f32 to vector<16x16xf32>
    %189 = arith.mulf %188, %186 : vector<16x16xf32>
    %190 = arith.addf %173, %189 : vector<16x16xf32>
    %c43 = arith.constant 43 : index
    %191 = memref.load %arg4[%c43] : memref<144xf32, #tpu.memory_space<smem>>
    %192 = vector.broadcast %191 : f32 to vector<16x16xf32>
    %193 = arith.mulf %192, %186 : vector<16x16xf32>
    %194 = arith.addf %177, %193 : vector<16x16xf32>
    %c79 = arith.constant 79 : index
    %195 = memref.load %arg4[%c79] : memref<144xf32, #tpu.memory_space<smem>>
    %196 = vector.broadcast %195 : f32 to vector<16x16xf32>
    %197 = arith.mulf %196, %186 : vector<16x16xf32>
    %198 = arith.addf %181, %197 : vector<16x16xf32>
    %c115 = arith.constant 115 : index
    %199 = memref.load %arg4[%c115] : memref<144xf32, #tpu.memory_space<smem>>
    %200 = vector.broadcast %199 : f32 to vector<16x16xf32>
    %201 = arith.mulf %200, %186 : vector<16x16xf32>
    %202 = arith.addf %185, %201 : vector<16x16xf32>
    %203 = vector.extract_strided_slice %66 {offsets = [2, 2], sizes = [16, 16], strides = [1, 1]} : vector<18x18xf32> to vector<16x16xf32>
    %c8 = arith.constant 8 : index
    %204 = memref.load %arg4[%c8] : memref<144xf32, #tpu.memory_space<smem>>
    %205 = vector.broadcast %204 : f32 to vector<16x16xf32>
    %206 = arith.mulf %205, %203 : vector<16x16xf32>
    %207 = arith.addf %190, %206 : vector<16x16xf32>
    %c44 = arith.constant 44 : index
    %208 = memref.load %arg4[%c44] : memref<144xf32, #tpu.memory_space<smem>>
    %209 = vector.broadcast %208 : f32 to vector<16x16xf32>
    %210 = arith.mulf %209, %203 : vector<16x16xf32>
    %211 = arith.addf %194, %210 : vector<16x16xf32>
    %c80 = arith.constant 80 : index
    %212 = memref.load %arg4[%c80] : memref<144xf32, #tpu.memory_space<smem>>
    %213 = vector.broadcast %212 : f32 to vector<16x16xf32>
    %214 = arith.mulf %213, %203 : vector<16x16xf32>
    %215 = arith.addf %198, %214 : vector<16x16xf32>
    %c116 = arith.constant 116 : index
    %216 = memref.load %arg4[%c116] : memref<144xf32, #tpu.memory_space<smem>>
    %217 = vector.broadcast %216 : f32 to vector<16x16xf32>
    %218 = arith.mulf %217, %203 : vector<16x16xf32>
    %219 = arith.addf %202, %218 : vector<16x16xf32>
    %c1_34 = arith.constant 1 : index
    %c0_35 = arith.constant 0 : index
    %c0_36 = arith.constant 0 : index
    %220 = vector.load %arg8[%c1_34, %c0_35, %c0_36] : memref<4x18x18xf32, #tpu.memory_space<vmem>>, vector<1x18x18xf32>
    %221 = vector.shape_cast %220 : vector<1x18x18xf32> to vector<18x18xf32>
    %222 = vector.extract_strided_slice %221 {offsets = [0, 0], sizes = [16, 16], strides = [1, 1]} : vector<18x18xf32> to vector<16x16xf32>
    %c9 = arith.constant 9 : index
    %223 = memref.load %arg4[%c9] : memref<144xf32, #tpu.memory_space<smem>>
    %224 = vector.broadcast %223 : f32 to vector<16x16xf32>
    %225 = arith.mulf %224, %222 : vector<16x16xf32>
    %226 = arith.addf %207, %225 : vector<16x16xf32>
    %c45 = arith.constant 45 : index
    %227 = memref.load %arg4[%c45] : memref<144xf32, #tpu.memory_space<smem>>
    %228 = vector.broadcast %227 : f32 to vector<16x16xf32>
    %229 = arith.mulf %228, %222 : vector<16x16xf32>
    %230 = arith.addf %211, %229 : vector<16x16xf32>
    %c81 = arith.constant 81 : index
    %231 = memref.load %arg4[%c81] : memref<144xf32, #tpu.memory_space<smem>>
    %232 = vector.broadcast %231 : f32 to vector<16x16xf32>
    %233 = arith.mulf %232, %222 : vector<16x16xf32>
    %234 = arith.addf %215, %233 : vector<16x16xf32>
    %c117 = arith.constant 117 : index
    %235 = memref.load %arg4[%c117] : memref<144xf32, #tpu.memory_space<smem>>
    %236 = vector.broadcast %235 : f32 to vector<16x16xf32>
    %237 = arith.mulf %236, %222 : vector<16x16xf32>
    %238 = arith.addf %219, %237 : vector<16x16xf32>
    %239 = vector.extract_strided_slice %221 {offsets = [0, 1], sizes = [16, 16], strides = [1, 1]} : vector<18x18xf32> to vector<16x16xf32>
    %c10 = arith.constant 10 : index
    %240 = memref.load %arg4[%c10] : memref<144xf32, #tpu.memory_space<smem>>
    %241 = vector.broadcast %240 : f32 to vector<16x16xf32>
    %242 = arith.mulf %241, %239 : vector<16x16xf32>
    %243 = arith.addf %226, %242 : vector<16x16xf32>
    %c46 = arith.constant 46 : index
    %244 = memref.load %arg4[%c46] : memref<144xf32, #tpu.memory_space<smem>>
    %245 = vector.broadcast %244 : f32 to vector<16x16xf32>
    %246 = arith.mulf %245, %239 : vector<16x16xf32>
    %247 = arith.addf %230, %246 : vector<16x16xf32>
    %c82 = arith.constant 82 : index
    %248 = memref.load %arg4[%c82] : memref<144xf32, #tpu.memory_space<smem>>
    %249 = vector.broadcast %248 : f32 to vector<16x16xf32>
    %250 = arith.mulf %249, %239 : vector<16x16xf32>
    %251 = arith.addf %234, %250 : vector<16x16xf32>
    %c118 = arith.constant 118 : index
    %252 = memref.load %arg4[%c118] : memref<144xf32, #tpu.memory_space<smem>>
    %253 = vector.broadcast %252 : f32 to vector<16x16xf32>
    %254 = arith.mulf %253, %239 : vector<16x16xf32>
    %255 = arith.addf %238, %254 : vector<16x16xf32>
    %256 = vector.extract_strided_slice %221 {offsets = [0, 2], sizes = [16, 16], strides = [1, 1]} : vector<18x18xf32> to vector<16x16xf32>
    %c11 = arith.constant 11 : index
    %257 = memref.load %arg4[%c11] : memref<144xf32, #tpu.memory_space<smem>>
    %258 = vector.broadcast %257 : f32 to vector<16x16xf32>
    %259 = arith.mulf %258, %256 : vector<16x16xf32>
    %260 = arith.addf %243, %259 : vector<16x16xf32>
    %c47 = arith.constant 47 : index
    %261 = memref.load %arg4[%c47] : memref<144xf32, #tpu.memory_space<smem>>
    %262 = vector.broadcast %261 : f32 to vector<16x16xf32>
    %263 = arith.mulf %262, %256 : vector<16x16xf32>
    %264 = arith.addf %247, %263 : vector<16x16xf32>
    %c83 = arith.constant 83 : index
    %265 = memref.load %arg4[%c83] : memref<144xf32, #tpu.memory_space<smem>>
    %266 = vector.broadcast %265 : f32 to vector<16x16xf32>
    %267 = arith.mulf %266, %256 : vector<16x16xf32>
    %268 = arith.addf %251, %267 : vector<16x16xf32>
    %c119 = arith.constant 119 : index
    %269 = memref.load %arg4[%c119] : memref<144xf32, #tpu.memory_space<smem>>
    %270 = vector.broadcast %269 : f32 to vector<16x16xf32>
    %271 = arith.mulf %270, %256 : vector<16x16xf32>
    %272 = arith.addf %255, %271 : vector<16x16xf32>
    %273 = vector.extract_strided_slice %221 {offsets = [1, 0], sizes = [16, 16], strides = [1, 1]} : vector<18x18xf32> to vector<16x16xf32>
    %c12 = arith.constant 12 : index
    %274 = memref.load %arg4[%c12] : memref<144xf32, #tpu.memory_space<smem>>
    %275 = vector.broadcast %274 : f32 to vector<16x16xf32>
    %276 = arith.mulf %275, %273 : vector<16x16xf32>
    %277 = arith.addf %260, %276 : vector<16x16xf32>
    %c48 = arith.constant 48 : index
    %278 = memref.load %arg4[%c48] : memref<144xf32, #tpu.memory_space<smem>>
    %279 = vector.broadcast %278 : f32 to vector<16x16xf32>
    %280 = arith.mulf %279, %273 : vector<16x16xf32>
    %281 = arith.addf %264, %280 : vector<16x16xf32>
    %c84 = arith.constant 84 : index
    %282 = memref.load %arg4[%c84] : memref<144xf32, #tpu.memory_space<smem>>
    %283 = vector.broadcast %282 : f32 to vector<16x16xf32>
    %284 = arith.mulf %283, %273 : vector<16x16xf32>
    %285 = arith.addf %268, %284 : vector<16x16xf32>
    %c120 = arith.constant 120 : index
    %286 = memref.load %arg4[%c120] : memref<144xf32, #tpu.memory_space<smem>>
    %287 = vector.broadcast %286 : f32 to vector<16x16xf32>
    %288 = arith.mulf %287, %273 : vector<16x16xf32>
    %289 = arith.addf %272, %288 : vector<16x16xf32>
    %290 = vector.extract_strided_slice %221 {offsets = [1, 1], sizes = [16, 16], strides = [1, 1]} : vector<18x18xf32> to vector<16x16xf32>
    %c13 = arith.constant 13 : index
    %291 = memref.load %arg4[%c13] : memref<144xf32, #tpu.memory_space<smem>>
    %292 = vector.broadcast %291 : f32 to vector<16x16xf32>
    %293 = arith.mulf %292, %290 : vector<16x16xf32>
    %294 = arith.addf %277, %293 : vector<16x16xf32>
    %c49 = arith.constant 49 : index
    %295 = memref.load %arg4[%c49] : memref<144xf32, #tpu.memory_space<smem>>
    %296 = vector.broadcast %295 : f32 to vector<16x16xf32>
    %297 = arith.mulf %296, %290 : vector<16x16xf32>
    %298 = arith.addf %281, %297 : vector<16x16xf32>
    %c85 = arith.constant 85 : index
    %299 = memref.load %arg4[%c85] : memref<144xf32, #tpu.memory_space<smem>>
    %300 = vector.broadcast %299 : f32 to vector<16x16xf32>
    %301 = arith.mulf %300, %290 : vector<16x16xf32>
    %302 = arith.addf %285, %301 : vector<16x16xf32>
    %c121 = arith.constant 121 : index
    %303 = memref.load %arg4[%c121] : memref<144xf32, #tpu.memory_space<smem>>
    %304 = vector.broadcast %303 : f32 to vector<16x16xf32>
    %305 = arith.mulf %304, %290 : vector<16x16xf32>
    %306 = arith.addf %289, %305 : vector<16x16xf32>
    %307 = vector.extract_strided_slice %221 {offsets = [1, 2], sizes = [16, 16], strides = [1, 1]} : vector<18x18xf32> to vector<16x16xf32>
    %c14 = arith.constant 14 : index
    %308 = memref.load %arg4[%c14] : memref<144xf32, #tpu.memory_space<smem>>
    %309 = vector.broadcast %308 : f32 to vector<16x16xf32>
    %310 = arith.mulf %309, %307 : vector<16x16xf32>
    %311 = arith.addf %294, %310 : vector<16x16xf32>
    %c50 = arith.constant 50 : index
    %312 = memref.load %arg4[%c50] : memref<144xf32, #tpu.memory_space<smem>>
    %313 = vector.broadcast %312 : f32 to vector<16x16xf32>
    %314 = arith.mulf %313, %307 : vector<16x16xf32>
    %315 = arith.addf %298, %314 : vector<16x16xf32>
    %c86 = arith.constant 86 : index
    %316 = memref.load %arg4[%c86] : memref<144xf32, #tpu.memory_space<smem>>
    %317 = vector.broadcast %316 : f32 to vector<16x16xf32>
    %318 = arith.mulf %317, %307 : vector<16x16xf32>
    %319 = arith.addf %302, %318 : vector<16x16xf32>
    %c122 = arith.constant 122 : index
    %320 = memref.load %arg4[%c122] : memref<144xf32, #tpu.memory_space<smem>>
    %321 = vector.broadcast %320 : f32 to vector<16x16xf32>
    %322 = arith.mulf %321, %307 : vector<16x16xf32>
    %323 = arith.addf %306, %322 : vector<16x16xf32>
    %324 = vector.extract_strided_slice %221 {offsets = [2, 0], sizes = [16, 16], strides = [1, 1]} : vector<18x18xf32> to vector<16x16xf32>
    %c15 = arith.constant 15 : index
    %325 = memref.load %arg4[%c15] : memref<144xf32, #tpu.memory_space<smem>>
    %326 = vector.broadcast %325 : f32 to vector<16x16xf32>
    %327 = arith.mulf %326, %324 : vector<16x16xf32>
    %328 = arith.addf %311, %327 : vector<16x16xf32>
    %c51 = arith.constant 51 : index
    %329 = memref.load %arg4[%c51] : memref<144xf32, #tpu.memory_space<smem>>
    %330 = vector.broadcast %329 : f32 to vector<16x16xf32>
    %331 = arith.mulf %330, %324 : vector<16x16xf32>
    %332 = arith.addf %315, %331 : vector<16x16xf32>
    %c87 = arith.constant 87 : index
    %333 = memref.load %arg4[%c87] : memref<144xf32, #tpu.memory_space<smem>>
    %334 = vector.broadcast %333 : f32 to vector<16x16xf32>
    %335 = arith.mulf %334, %324 : vector<16x16xf32>
    %336 = arith.addf %319, %335 : vector<16x16xf32>
    %c123 = arith.constant 123 : index
    %337 = memref.load %arg4[%c123] : memref<144xf32, #tpu.memory_space<smem>>
    %338 = vector.broadcast %337 : f32 to vector<16x16xf32>
    %339 = arith.mulf %338, %324 : vector<16x16xf32>
    %340 = arith.addf %323, %339 : vector<16x16xf32>
    %341 = vector.extract_strided_slice %221 {offsets = [2, 1], sizes = [16, 16], strides = [1, 1]} : vector<18x18xf32> to vector<16x16xf32>
    %c16 = arith.constant 16 : index
    %342 = memref.load %arg4[%c16] : memref<144xf32, #tpu.memory_space<smem>>
    %343 = vector.broadcast %342 : f32 to vector<16x16xf32>
    %344 = arith.mulf %343, %341 : vector<16x16xf32>
    %345 = arith.addf %328, %344 : vector<16x16xf32>
    %c52 = arith.constant 52 : index
    %346 = memref.load %arg4[%c52] : memref<144xf32, #tpu.memory_space<smem>>
    %347 = vector.broadcast %346 : f32 to vector<16x16xf32>
    %348 = arith.mulf %347, %341 : vector<16x16xf32>
    %349 = arith.addf %332, %348 : vector<16x16xf32>
    %c88 = arith.constant 88 : index
    %350 = memref.load %arg4[%c88] : memref<144xf32, #tpu.memory_space<smem>>
    %351 = vector.broadcast %350 : f32 to vector<16x16xf32>
    %352 = arith.mulf %351, %341 : vector<16x16xf32>
    %353 = arith.addf %336, %352 : vector<16x16xf32>
    %c124 = arith.constant 124 : index
    %354 = memref.load %arg4[%c124] : memref<144xf32, #tpu.memory_space<smem>>
    %355 = vector.broadcast %354 : f32 to vector<16x16xf32>
    %356 = arith.mulf %355, %341 : vector<16x16xf32>
    %357 = arith.addf %340, %356 : vector<16x16xf32>
    %358 = vector.extract_strided_slice %221 {offsets = [2, 2], sizes = [16, 16], strides = [1, 1]} : vector<18x18xf32> to vector<16x16xf32>
    %c17 = arith.constant 17 : index
    %359 = memref.load %arg4[%c17] : memref<144xf32, #tpu.memory_space<smem>>
    %360 = vector.broadcast %359 : f32 to vector<16x16xf32>
    %361 = arith.mulf %360, %358 : vector<16x16xf32>
    %362 = arith.addf %345, %361 : vector<16x16xf32>
    %c53 = arith.constant 53 : index
    %363 = memref.load %arg4[%c53] : memref<144xf32, #tpu.memory_space<smem>>
    %364 = vector.broadcast %363 : f32 to vector<16x16xf32>
    %365 = arith.mulf %364, %358 : vector<16x16xf32>
    %366 = arith.addf %349, %365 : vector<16x16xf32>
    %c89 = arith.constant 89 : index
    %367 = memref.load %arg4[%c89] : memref<144xf32, #tpu.memory_space<smem>>
    %368 = vector.broadcast %367 : f32 to vector<16x16xf32>
    %369 = arith.mulf %368, %358 : vector<16x16xf32>
    %370 = arith.addf %353, %369 : vector<16x16xf32>
    %c125 = arith.constant 125 : index
    %371 = memref.load %arg4[%c125] : memref<144xf32, #tpu.memory_space<smem>>
    %372 = vector.broadcast %371 : f32 to vector<16x16xf32>
    %373 = arith.mulf %372, %358 : vector<16x16xf32>
    %374 = arith.addf %357, %373 : vector<16x16xf32>
    %c2_37 = arith.constant 2 : index
    %c0_38 = arith.constant 0 : index
    %c0_39 = arith.constant 0 : index
    %375 = vector.load %arg8[%c2_37, %c0_38, %c0_39] : memref<4x18x18xf32, #tpu.memory_space<vmem>>, vector<1x18x18xf32>
    %376 = vector.shape_cast %375 : vector<1x18x18xf32> to vector<18x18xf32>
    %377 = vector.extract_strided_slice %376 {offsets = [0, 0], sizes = [16, 16], strides = [1, 1]} : vector<18x18xf32> to vector<16x16xf32>
    %c18 = arith.constant 18 : index
    %378 = memref.load %arg4[%c18] : memref<144xf32, #tpu.memory_space<smem>>
    %379 = vector.broadcast %378 : f32 to vector<16x16xf32>
    %380 = arith.mulf %379, %377 : vector<16x16xf32>
    %381 = arith.addf %362, %380 : vector<16x16xf32>
    %c54 = arith.constant 54 : index
    %382 = memref.load %arg4[%c54] : memref<144xf32, #tpu.memory_space<smem>>
    %383 = vector.broadcast %382 : f32 to vector<16x16xf32>
    %384 = arith.mulf %383, %377 : vector<16x16xf32>
    %385 = arith.addf %366, %384 : vector<16x16xf32>
    %c90 = arith.constant 90 : index
    %386 = memref.load %arg4[%c90] : memref<144xf32, #tpu.memory_space<smem>>
    %387 = vector.broadcast %386 : f32 to vector<16x16xf32>
    %388 = arith.mulf %387, %377 : vector<16x16xf32>
    %389 = arith.addf %370, %388 : vector<16x16xf32>
    %c126 = arith.constant 126 : index
    %390 = memref.load %arg4[%c126] : memref<144xf32, #tpu.memory_space<smem>>
    %391 = vector.broadcast %390 : f32 to vector<16x16xf32>
    %392 = arith.mulf %391, %377 : vector<16x16xf32>
    %393 = arith.addf %374, %392 : vector<16x16xf32>
    %394 = vector.extract_strided_slice %376 {offsets = [0, 1], sizes = [16, 16], strides = [1, 1]} : vector<18x18xf32> to vector<16x16xf32>
    %c19 = arith.constant 19 : index
    %395 = memref.load %arg4[%c19] : memref<144xf32, #tpu.memory_space<smem>>
    %396 = vector.broadcast %395 : f32 to vector<16x16xf32>
    %397 = arith.mulf %396, %394 : vector<16x16xf32>
    %398 = arith.addf %381, %397 : vector<16x16xf32>
    %c55 = arith.constant 55 : index
    %399 = memref.load %arg4[%c55] : memref<144xf32, #tpu.memory_space<smem>>
    %400 = vector.broadcast %399 : f32 to vector<16x16xf32>
    %401 = arith.mulf %400, %394 : vector<16x16xf32>
    %402 = arith.addf %385, %401 : vector<16x16xf32>
    %c91 = arith.constant 91 : index
    %403 = memref.load %arg4[%c91] : memref<144xf32, #tpu.memory_space<smem>>
    %404 = vector.broadcast %403 : f32 to vector<16x16xf32>
    %405 = arith.mulf %404, %394 : vector<16x16xf32>
    %406 = arith.addf %389, %405 : vector<16x16xf32>
    %c127 = arith.constant 127 : index
    %407 = memref.load %arg4[%c127] : memref<144xf32, #tpu.memory_space<smem>>
    %408 = vector.broadcast %407 : f32 to vector<16x16xf32>
    %409 = arith.mulf %408, %394 : vector<16x16xf32>
    %410 = arith.addf %393, %409 : vector<16x16xf32>
    %411 = vector.extract_strided_slice %376 {offsets = [0, 2], sizes = [16, 16], strides = [1, 1]} : vector<18x18xf32> to vector<16x16xf32>
    %c20 = arith.constant 20 : index
    %412 = memref.load %arg4[%c20] : memref<144xf32, #tpu.memory_space<smem>>
    %413 = vector.broadcast %412 : f32 to vector<16x16xf32>
    %414 = arith.mulf %413, %411 : vector<16x16xf32>
    %415 = arith.addf %398, %414 : vector<16x16xf32>
    %c56 = arith.constant 56 : index
    %416 = memref.load %arg4[%c56] : memref<144xf32, #tpu.memory_space<smem>>
    %417 = vector.broadcast %416 : f32 to vector<16x16xf32>
    %418 = arith.mulf %417, %411 : vector<16x16xf32>
    %419 = arith.addf %402, %418 : vector<16x16xf32>
    %c92 = arith.constant 92 : index
    %420 = memref.load %arg4[%c92] : memref<144xf32, #tpu.memory_space<smem>>
    %421 = vector.broadcast %420 : f32 to vector<16x16xf32>
    %422 = arith.mulf %421, %411 : vector<16x16xf32>
    %423 = arith.addf %406, %422 : vector<16x16xf32>
    %c128 = arith.constant 128 : index
    %424 = memref.load %arg4[%c128] : memref<144xf32, #tpu.memory_space<smem>>
    %425 = vector.broadcast %424 : f32 to vector<16x16xf32>
    %426 = arith.mulf %425, %411 : vector<16x16xf32>
    %427 = arith.addf %410, %426 : vector<16x16xf32>
    %428 = vector.extract_strided_slice %376 {offsets = [1, 0], sizes = [16, 16], strides = [1, 1]} : vector<18x18xf32> to vector<16x16xf32>
    %c21 = arith.constant 21 : index
    %429 = memref.load %arg4[%c21] : memref<144xf32, #tpu.memory_space<smem>>
    %430 = vector.broadcast %429 : f32 to vector<16x16xf32>
    %431 = arith.mulf %430, %428 : vector<16x16xf32>
    %432 = arith.addf %415, %431 : vector<16x16xf32>
    %c57 = arith.constant 57 : index
    %433 = memref.load %arg4[%c57] : memref<144xf32, #tpu.memory_space<smem>>
    %434 = vector.broadcast %433 : f32 to vector<16x16xf32>
    %435 = arith.mulf %434, %428 : vector<16x16xf32>
    %436 = arith.addf %419, %435 : vector<16x16xf32>
    %c93 = arith.constant 93 : index
    %437 = memref.load %arg4[%c93] : memref<144xf32, #tpu.memory_space<smem>>
    %438 = vector.broadcast %437 : f32 to vector<16x16xf32>
    %439 = arith.mulf %438, %428 : vector<16x16xf32>
    %440 = arith.addf %423, %439 : vector<16x16xf32>
    %c129 = arith.constant 129 : index
    %441 = memref.load %arg4[%c129] : memref<144xf32, #tpu.memory_space<smem>>
    %442 = vector.broadcast %441 : f32 to vector<16x16xf32>
    %443 = arith.mulf %442, %428 : vector<16x16xf32>
    %444 = arith.addf %427, %443 : vector<16x16xf32>
    %445 = vector.extract_strided_slice %376 {offsets = [1, 1], sizes = [16, 16], strides = [1, 1]} : vector<18x18xf32> to vector<16x16xf32>
    %c22 = arith.constant 22 : index
    %446 = memref.load %arg4[%c22] : memref<144xf32, #tpu.memory_space<smem>>
    %447 = vector.broadcast %446 : f32 to vector<16x16xf32>
    %448 = arith.mulf %447, %445 : vector<16x16xf32>
    %449 = arith.addf %432, %448 : vector<16x16xf32>
    %c58 = arith.constant 58 : index
    %450 = memref.load %arg4[%c58] : memref<144xf32, #tpu.memory_space<smem>>
    %451 = vector.broadcast %450 : f32 to vector<16x16xf32>
    %452 = arith.mulf %451, %445 : vector<16x16xf32>
    %453 = arith.addf %436, %452 : vector<16x16xf32>
    %c94 = arith.constant 94 : index
    %454 = memref.load %arg4[%c94] : memref<144xf32, #tpu.memory_space<smem>>
    %455 = vector.broadcast %454 : f32 to vector<16x16xf32>
    %456 = arith.mulf %455, %445 : vector<16x16xf32>
    %457 = arith.addf %440, %456 : vector<16x16xf32>
    %c130 = arith.constant 130 : index
    %458 = memref.load %arg4[%c130] : memref<144xf32, #tpu.memory_space<smem>>
    %459 = vector.broadcast %458 : f32 to vector<16x16xf32>
    %460 = arith.mulf %459, %445 : vector<16x16xf32>
    %461 = arith.addf %444, %460 : vector<16x16xf32>
    %462 = vector.extract_strided_slice %376 {offsets = [1, 2], sizes = [16, 16], strides = [1, 1]} : vector<18x18xf32> to vector<16x16xf32>
    %c23 = arith.constant 23 : index
    %463 = memref.load %arg4[%c23] : memref<144xf32, #tpu.memory_space<smem>>
    %464 = vector.broadcast %463 : f32 to vector<16x16xf32>
    %465 = arith.mulf %464, %462 : vector<16x16xf32>
    %466 = arith.addf %449, %465 : vector<16x16xf32>
    %c59 = arith.constant 59 : index
    %467 = memref.load %arg4[%c59] : memref<144xf32, #tpu.memory_space<smem>>
    %468 = vector.broadcast %467 : f32 to vector<16x16xf32>
    %469 = arith.mulf %468, %462 : vector<16x16xf32>
    %470 = arith.addf %453, %469 : vector<16x16xf32>
    %c95 = arith.constant 95 : index
    %471 = memref.load %arg4[%c95] : memref<144xf32, #tpu.memory_space<smem>>
    %472 = vector.broadcast %471 : f32 to vector<16x16xf32>
    %473 = arith.mulf %472, %462 : vector<16x16xf32>
    %474 = arith.addf %457, %473 : vector<16x16xf32>
    %c131 = arith.constant 131 : index
    %475 = memref.load %arg4[%c131] : memref<144xf32, #tpu.memory_space<smem>>
    %476 = vector.broadcast %475 : f32 to vector<16x16xf32>
    %477 = arith.mulf %476, %462 : vector<16x16xf32>
    %478 = arith.addf %461, %477 : vector<16x16xf32>
    %479 = vector.extract_strided_slice %376 {offsets = [2, 0], sizes = [16, 16], strides = [1, 1]} : vector<18x18xf32> to vector<16x16xf32>
    %c24 = arith.constant 24 : index
    %480 = memref.load %arg4[%c24] : memref<144xf32, #tpu.memory_space<smem>>
    %481 = vector.broadcast %480 : f32 to vector<16x16xf32>
    %482 = arith.mulf %481, %479 : vector<16x16xf32>
    %483 = arith.addf %466, %482 : vector<16x16xf32>
    %c60 = arith.constant 60 : index
    %484 = memref.load %arg4[%c60] : memref<144xf32, #tpu.memory_space<smem>>
    %485 = vector.broadcast %484 : f32 to vector<16x16xf32>
    %486 = arith.mulf %485, %479 : vector<16x16xf32>
    %487 = arith.addf %470, %486 : vector<16x16xf32>
    %c96 = arith.constant 96 : index
    %488 = memref.load %arg4[%c96] : memref<144xf32, #tpu.memory_space<smem>>
    %489 = vector.broadcast %488 : f32 to vector<16x16xf32>
    %490 = arith.mulf %489, %479 : vector<16x16xf32>
    %491 = arith.addf %474, %490 : vector<16x16xf32>
    %c132 = arith.constant 132 : index
    %492 = memref.load %arg4[%c132] : memref<144xf32, #tpu.memory_space<smem>>
    %493 = vector.broadcast %492 : f32 to vector<16x16xf32>
    %494 = arith.mulf %493, %479 : vector<16x16xf32>
    %495 = arith.addf %478, %494 : vector<16x16xf32>
    %496 = vector.extract_strided_slice %376 {offsets = [2, 1], sizes = [16, 16], strides = [1, 1]} : vector<18x18xf32> to vector<16x16xf32>
    %c25 = arith.constant 25 : index
    %497 = memref.load %arg4[%c25] : memref<144xf32, #tpu.memory_space<smem>>
    %498 = vector.broadcast %497 : f32 to vector<16x16xf32>
    %499 = arith.mulf %498, %496 : vector<16x16xf32>
    %500 = arith.addf %483, %499 : vector<16x16xf32>
    %c61 = arith.constant 61 : index
    %501 = memref.load %arg4[%c61] : memref<144xf32, #tpu.memory_space<smem>>
    %502 = vector.broadcast %501 : f32 to vector<16x16xf32>
    %503 = arith.mulf %502, %496 : vector<16x16xf32>
    %504 = arith.addf %487, %503 : vector<16x16xf32>
    %c97 = arith.constant 97 : index
    %505 = memref.load %arg4[%c97] : memref<144xf32, #tpu.memory_space<smem>>
    %506 = vector.broadcast %505 : f32 to vector<16x16xf32>
    %507 = arith.mulf %506, %496 : vector<16x16xf32>
    %508 = arith.addf %491, %507 : vector<16x16xf32>
    %c133 = arith.constant 133 : index
    %509 = memref.load %arg4[%c133] : memref<144xf32, #tpu.memory_space<smem>>
    %510 = vector.broadcast %509 : f32 to vector<16x16xf32>
    %511 = arith.mulf %510, %496 : vector<16x16xf32>
    %512 = arith.addf %495, %511 : vector<16x16xf32>
    %513 = vector.extract_strided_slice %376 {offsets = [2, 2], sizes = [16, 16], strides = [1, 1]} : vector<18x18xf32> to vector<16x16xf32>
    %c26 = arith.constant 26 : index
    %514 = memref.load %arg4[%c26] : memref<144xf32, #tpu.memory_space<smem>>
    %515 = vector.broadcast %514 : f32 to vector<16x16xf32>
    %516 = arith.mulf %515, %513 : vector<16x16xf32>
    %517 = arith.addf %500, %516 : vector<16x16xf32>
    %c62 = arith.constant 62 : index
    %518 = memref.load %arg4[%c62] : memref<144xf32, #tpu.memory_space<smem>>
    %519 = vector.broadcast %518 : f32 to vector<16x16xf32>
    %520 = arith.mulf %519, %513 : vector<16x16xf32>
    %521 = arith.addf %504, %520 : vector<16x16xf32>
    %c98 = arith.constant 98 : index
    %522 = memref.load %arg4[%c98] : memref<144xf32, #tpu.memory_space<smem>>
    %523 = vector.broadcast %522 : f32 to vector<16x16xf32>
    %524 = arith.mulf %523, %513 : vector<16x16xf32>
    %525 = arith.addf %508, %524 : vector<16x16xf32>
    %c134 = arith.constant 134 : index
    %526 = memref.load %arg4[%c134] : memref<144xf32, #tpu.memory_space<smem>>
    %527 = vector.broadcast %526 : f32 to vector<16x16xf32>
    %528 = arith.mulf %527, %513 : vector<16x16xf32>
    %529 = arith.addf %512, %528 : vector<16x16xf32>
    %c3_40 = arith.constant 3 : index
    %c0_41 = arith.constant 0 : index
    %c0_42 = arith.constant 0 : index
    %530 = vector.load %arg8[%c3_40, %c0_41, %c0_42] : memref<4x18x18xf32, #tpu.memory_space<vmem>>, vector<1x18x18xf32>
    %531 = vector.shape_cast %530 : vector<1x18x18xf32> to vector<18x18xf32>
    %532 = vector.extract_strided_slice %531 {offsets = [0, 0], sizes = [16, 16], strides = [1, 1]} : vector<18x18xf32> to vector<16x16xf32>
    %c27 = arith.constant 27 : index
    %533 = memref.load %arg4[%c27] : memref<144xf32, #tpu.memory_space<smem>>
    %534 = vector.broadcast %533 : f32 to vector<16x16xf32>
    %535 = arith.mulf %534, %532 : vector<16x16xf32>
    %536 = arith.addf %517, %535 : vector<16x16xf32>
    %c63 = arith.constant 63 : index
    %537 = memref.load %arg4[%c63] : memref<144xf32, #tpu.memory_space<smem>>
    %538 = vector.broadcast %537 : f32 to vector<16x16xf32>
    %539 = arith.mulf %538, %532 : vector<16x16xf32>
    %540 = arith.addf %521, %539 : vector<16x16xf32>
    %c99 = arith.constant 99 : index
    %541 = memref.load %arg4[%c99] : memref<144xf32, #tpu.memory_space<smem>>
    %542 = vector.broadcast %541 : f32 to vector<16x16xf32>
    %543 = arith.mulf %542, %532 : vector<16x16xf32>
    %544 = arith.addf %525, %543 : vector<16x16xf32>
    %c135 = arith.constant 135 : index
    %545 = memref.load %arg4[%c135] : memref<144xf32, #tpu.memory_space<smem>>
    %546 = vector.broadcast %545 : f32 to vector<16x16xf32>
    %547 = arith.mulf %546, %532 : vector<16x16xf32>
    %548 = arith.addf %529, %547 : vector<16x16xf32>
    %549 = vector.extract_strided_slice %531 {offsets = [0, 1], sizes = [16, 16], strides = [1, 1]} : vector<18x18xf32> to vector<16x16xf32>
    %c28 = arith.constant 28 : index
    %550 = memref.load %arg4[%c28] : memref<144xf32, #tpu.memory_space<smem>>
    %551 = vector.broadcast %550 : f32 to vector<16x16xf32>
    %552 = arith.mulf %551, %549 : vector<16x16xf32>
    %553 = arith.addf %536, %552 : vector<16x16xf32>
    %c64 = arith.constant 64 : index
    %554 = memref.load %arg4[%c64] : memref<144xf32, #tpu.memory_space<smem>>
    %555 = vector.broadcast %554 : f32 to vector<16x16xf32>
    %556 = arith.mulf %555, %549 : vector<16x16xf32>
    %557 = arith.addf %540, %556 : vector<16x16xf32>
    %c100 = arith.constant 100 : index
    %558 = memref.load %arg4[%c100] : memref<144xf32, #tpu.memory_space<smem>>
    %559 = vector.broadcast %558 : f32 to vector<16x16xf32>
    %560 = arith.mulf %559, %549 : vector<16x16xf32>
    %561 = arith.addf %544, %560 : vector<16x16xf32>
    %c136 = arith.constant 136 : index
    %562 = memref.load %arg4[%c136] : memref<144xf32, #tpu.memory_space<smem>>
    %563 = vector.broadcast %562 : f32 to vector<16x16xf32>
    %564 = arith.mulf %563, %549 : vector<16x16xf32>
    %565 = arith.addf %548, %564 : vector<16x16xf32>
    %566 = vector.extract_strided_slice %531 {offsets = [0, 2], sizes = [16, 16], strides = [1, 1]} : vector<18x18xf32> to vector<16x16xf32>
    %c29 = arith.constant 29 : index
    %567 = memref.load %arg4[%c29] : memref<144xf32, #tpu.memory_space<smem>>
    %568 = vector.broadcast %567 : f32 to vector<16x16xf32>
    %569 = arith.mulf %568, %566 : vector<16x16xf32>
    %570 = arith.addf %553, %569 : vector<16x16xf32>
    %c65 = arith.constant 65 : index
    %571 = memref.load %arg4[%c65] : memref<144xf32, #tpu.memory_space<smem>>
    %572 = vector.broadcast %571 : f32 to vector<16x16xf32>
    %573 = arith.mulf %572, %566 : vector<16x16xf32>
    %574 = arith.addf %557, %573 : vector<16x16xf32>
    %c101 = arith.constant 101 : index
    %575 = memref.load %arg4[%c101] : memref<144xf32, #tpu.memory_space<smem>>
    %576 = vector.broadcast %575 : f32 to vector<16x16xf32>
    %577 = arith.mulf %576, %566 : vector<16x16xf32>
    %578 = arith.addf %561, %577 : vector<16x16xf32>
    %c137 = arith.constant 137 : index
    %579 = memref.load %arg4[%c137] : memref<144xf32, #tpu.memory_space<smem>>
    %580 = vector.broadcast %579 : f32 to vector<16x16xf32>
    %581 = arith.mulf %580, %566 : vector<16x16xf32>
    %582 = arith.addf %565, %581 : vector<16x16xf32>
    %583 = vector.extract_strided_slice %531 {offsets = [1, 0], sizes = [16, 16], strides = [1, 1]} : vector<18x18xf32> to vector<16x16xf32>
    %c30 = arith.constant 30 : index
    %584 = memref.load %arg4[%c30] : memref<144xf32, #tpu.memory_space<smem>>
    %585 = vector.broadcast %584 : f32 to vector<16x16xf32>
    %586 = arith.mulf %585, %583 : vector<16x16xf32>
    %587 = arith.addf %570, %586 : vector<16x16xf32>
    %c66 = arith.constant 66 : index
    %588 = memref.load %arg4[%c66] : memref<144xf32, #tpu.memory_space<smem>>
    %589 = vector.broadcast %588 : f32 to vector<16x16xf32>
    %590 = arith.mulf %589, %583 : vector<16x16xf32>
    %591 = arith.addf %574, %590 : vector<16x16xf32>
    %c102 = arith.constant 102 : index
    %592 = memref.load %arg4[%c102] : memref<144xf32, #tpu.memory_space<smem>>
    %593 = vector.broadcast %592 : f32 to vector<16x16xf32>
    %594 = arith.mulf %593, %583 : vector<16x16xf32>
    %595 = arith.addf %578, %594 : vector<16x16xf32>
    %c138 = arith.constant 138 : index
    %596 = memref.load %arg4[%c138] : memref<144xf32, #tpu.memory_space<smem>>
    %597 = vector.broadcast %596 : f32 to vector<16x16xf32>
    %598 = arith.mulf %597, %583 : vector<16x16xf32>
    %599 = arith.addf %582, %598 : vector<16x16xf32>
    %600 = vector.extract_strided_slice %531 {offsets = [1, 1], sizes = [16, 16], strides = [1, 1]} : vector<18x18xf32> to vector<16x16xf32>
    %c31 = arith.constant 31 : index
    %601 = memref.load %arg4[%c31] : memref<144xf32, #tpu.memory_space<smem>>
    %602 = vector.broadcast %601 : f32 to vector<16x16xf32>
    %603 = arith.mulf %602, %600 : vector<16x16xf32>
    %604 = arith.addf %587, %603 : vector<16x16xf32>
    %c67 = arith.constant 67 : index
    %605 = memref.load %arg4[%c67] : memref<144xf32, #tpu.memory_space<smem>>
    %606 = vector.broadcast %605 : f32 to vector<16x16xf32>
    %607 = arith.mulf %606, %600 : vector<16x16xf32>
    %608 = arith.addf %591, %607 : vector<16x16xf32>
    %c103 = arith.constant 103 : index
    %609 = memref.load %arg4[%c103] : memref<144xf32, #tpu.memory_space<smem>>
    %610 = vector.broadcast %609 : f32 to vector<16x16xf32>
    %611 = arith.mulf %610, %600 : vector<16x16xf32>
    %612 = arith.addf %595, %611 : vector<16x16xf32>
    %c139 = arith.constant 139 : index
    %613 = memref.load %arg4[%c139] : memref<144xf32, #tpu.memory_space<smem>>
    %614 = vector.broadcast %613 : f32 to vector<16x16xf32>
    %615 = arith.mulf %614, %600 : vector<16x16xf32>
    %616 = arith.addf %599, %615 : vector<16x16xf32>
    %617 = vector.extract_strided_slice %531 {offsets = [1, 2], sizes = [16, 16], strides = [1, 1]} : vector<18x18xf32> to vector<16x16xf32>
    %c32 = arith.constant 32 : index
    %618 = memref.load %arg4[%c32] : memref<144xf32, #tpu.memory_space<smem>>
    %619 = vector.broadcast %618 : f32 to vector<16x16xf32>
    %620 = arith.mulf %619, %617 : vector<16x16xf32>
    %621 = arith.addf %604, %620 : vector<16x16xf32>
    %c68 = arith.constant 68 : index
    %622 = memref.load %arg4[%c68] : memref<144xf32, #tpu.memory_space<smem>>
    %623 = vector.broadcast %622 : f32 to vector<16x16xf32>
    %624 = arith.mulf %623, %617 : vector<16x16xf32>
    %625 = arith.addf %608, %624 : vector<16x16xf32>
    %c104 = arith.constant 104 : index
    %626 = memref.load %arg4[%c104] : memref<144xf32, #tpu.memory_space<smem>>
    %627 = vector.broadcast %626 : f32 to vector<16x16xf32>
    %628 = arith.mulf %627, %617 : vector<16x16xf32>
    %629 = arith.addf %612, %628 : vector<16x16xf32>
    %c140 = arith.constant 140 : index
    %630 = memref.load %arg4[%c140] : memref<144xf32, #tpu.memory_space<smem>>
    %631 = vector.broadcast %630 : f32 to vector<16x16xf32>
    %632 = arith.mulf %631, %617 : vector<16x16xf32>
    %633 = arith.addf %616, %632 : vector<16x16xf32>
    %634 = vector.extract_strided_slice %531 {offsets = [2, 0], sizes = [16, 16], strides = [1, 1]} : vector<18x18xf32> to vector<16x16xf32>
    %c33 = arith.constant 33 : index
    %635 = memref.load %arg4[%c33] : memref<144xf32, #tpu.memory_space<smem>>
    %636 = vector.broadcast %635 : f32 to vector<16x16xf32>
    %637 = arith.mulf %636, %634 : vector<16x16xf32>
    %638 = arith.addf %621, %637 : vector<16x16xf32>
    %c69 = arith.constant 69 : index
    %639 = memref.load %arg4[%c69] : memref<144xf32, #tpu.memory_space<smem>>
    %640 = vector.broadcast %639 : f32 to vector<16x16xf32>
    %641 = arith.mulf %640, %634 : vector<16x16xf32>
    %642 = arith.addf %625, %641 : vector<16x16xf32>
    %c105 = arith.constant 105 : index
    %643 = memref.load %arg4[%c105] : memref<144xf32, #tpu.memory_space<smem>>
    %644 = vector.broadcast %643 : f32 to vector<16x16xf32>
    %645 = arith.mulf %644, %634 : vector<16x16xf32>
    %646 = arith.addf %629, %645 : vector<16x16xf32>
    %c141 = arith.constant 141 : index
    %647 = memref.load %arg4[%c141] : memref<144xf32, #tpu.memory_space<smem>>
    %648 = vector.broadcast %647 : f32 to vector<16x16xf32>
    %649 = arith.mulf %648, %634 : vector<16x16xf32>
    %650 = arith.addf %633, %649 : vector<16x16xf32>
    %651 = vector.extract_strided_slice %531 {offsets = [2, 1], sizes = [16, 16], strides = [1, 1]} : vector<18x18xf32> to vector<16x16xf32>
    %c34 = arith.constant 34 : index
    %652 = memref.load %arg4[%c34] : memref<144xf32, #tpu.memory_space<smem>>
    %653 = vector.broadcast %652 : f32 to vector<16x16xf32>
    %654 = arith.mulf %653, %651 : vector<16x16xf32>
    %655 = arith.addf %638, %654 : vector<16x16xf32>
    %c70 = arith.constant 70 : index
    %656 = memref.load %arg4[%c70] : memref<144xf32, #tpu.memory_space<smem>>
    %657 = vector.broadcast %656 : f32 to vector<16x16xf32>
    %658 = arith.mulf %657, %651 : vector<16x16xf32>
    %659 = arith.addf %642, %658 : vector<16x16xf32>
    %c106 = arith.constant 106 : index
    %660 = memref.load %arg4[%c106] : memref<144xf32, #tpu.memory_space<smem>>
    %661 = vector.broadcast %660 : f32 to vector<16x16xf32>
    %662 = arith.mulf %661, %651 : vector<16x16xf32>
    %663 = arith.addf %646, %662 : vector<16x16xf32>
    %c142 = arith.constant 142 : index
    %664 = memref.load %arg4[%c142] : memref<144xf32, #tpu.memory_space<smem>>
    %665 = vector.broadcast %664 : f32 to vector<16x16xf32>
    %666 = arith.mulf %665, %651 : vector<16x16xf32>
    %667 = arith.addf %650, %666 : vector<16x16xf32>
    %668 = vector.extract_strided_slice %531 {offsets = [2, 2], sizes = [16, 16], strides = [1, 1]} : vector<18x18xf32> to vector<16x16xf32>
    %c35 = arith.constant 35 : index
    %669 = memref.load %arg4[%c35] : memref<144xf32, #tpu.memory_space<smem>>
    %670 = vector.broadcast %669 : f32 to vector<16x16xf32>
    %671 = arith.mulf %670, %668 : vector<16x16xf32>
    %672 = arith.addf %655, %671 : vector<16x16xf32>
    %c71 = arith.constant 71 : index
    %673 = memref.load %arg4[%c71] : memref<144xf32, #tpu.memory_space<smem>>
    %674 = vector.broadcast %673 : f32 to vector<16x16xf32>
    %675 = arith.mulf %674, %668 : vector<16x16xf32>
    %676 = arith.addf %659, %675 : vector<16x16xf32>
    %c107 = arith.constant 107 : index
    %677 = memref.load %arg4[%c107] : memref<144xf32, #tpu.memory_space<smem>>
    %678 = vector.broadcast %677 : f32 to vector<16x16xf32>
    %679 = arith.mulf %678, %668 : vector<16x16xf32>
    %680 = arith.addf %663, %679 : vector<16x16xf32>
    %c143 = arith.constant 143 : index
    %681 = memref.load %arg4[%c143] : memref<144xf32, #tpu.memory_space<smem>>
    %682 = vector.broadcast %681 : f32 to vector<16x16xf32>
    %683 = arith.mulf %682, %668 : vector<16x16xf32>
    %684 = arith.addf %667, %683 : vector<16x16xf32>
    %c0_43 = arith.constant 0 : index
    %685 = memref.load %arg5[%c0_43] : memref<4xf32, #tpu.memory_space<smem>>
    %686 = vector.broadcast %685 : f32 to vector<16x16xf32>
    %687 = arith.mulf %672, %686 : vector<16x16xf32>
    %c0_44 = arith.constant 0 : index
    %688 = memref.load %arg6[%c0_44] : memref<4xf32, #tpu.memory_space<smem>>
    %689 = vector.broadcast %688 : f32 to vector<16x16xf32>
    %690 = arith.addf %687, %689 : vector<16x16xf32>
    %691 = arith.mulf %690, %57 : vector<16x16xf32>
    %692 = vector.extract_strided_slice %3 {offsets = [0, 0, 0], sizes = [1, 16, 16], strides = [1, 1, 1]} : vector<4x16x16xf32> to vector<1x16x16xf32>
    %693 = vector.shape_cast %692 : vector<1x16x16xf32> to vector<16x16xf32>
    %694 = arith.addf %691, %693 : vector<16x16xf32>
    %c0_45 = arith.constant 0 : index
    %c0_46 = arith.constant 0 : index
    %c0_47 = arith.constant 0 : index
    %c0_48 = arith.constant 0 : index
    %695 = vector.load %arg7[%c0_45, %c0_46, %c0_47, %c0_48] : memref<1x4x16x16xf32, #tpu.memory_space<vmem>>, vector<1x1x16x16xf32>
    %696 = vector.shape_cast %695 : vector<1x1x16x16xf32> to vector<16x16xf32>
    %697 = vector.shape_cast %694 : vector<16x16xf32> to vector<1x1x16x16xf32>
    tpu.vector_store %arg7[%c0_45, %c0_46, %c0_47, %c0_48], %697 {strides = array<i32>} : memref<1x4x16x16xf32, #tpu.memory_space<vmem>>, vector<1x1x16x16xf32>,
    %c1_49 = arith.constant 1 : index
    %698 = memref.load %arg5[%c1_49] : memref<4xf32, #tpu.memory_space<smem>>
    %699 = vector.broadcast %698 : f32 to vector<16x16xf32>
    %700 = arith.mulf %676, %699 : vector<16x16xf32>
    %c1_50 = arith.constant 1 : index
    %701 = memref.load %arg6[%c1_50] : memref<4xf32, #tpu.memory_space<smem>>
    %702 = vector.broadcast %701 : f32 to vector<16x16xf32>
    %703 = arith.addf %700, %702 : vector<16x16xf32>
    %704 = arith.mulf %703, %57 : vector<16x16xf32>
    %705 = vector.extract_strided_slice %3 {offsets = [1, 0, 0], sizes = [1, 16, 16], strides = [1, 1, 1]} : vector<4x16x16xf32> to vector<1x16x16xf32>
    %706 = vector.shape_cast %705 : vector<1x16x16xf32> to vector<16x16xf32>
    %707 = arith.addf %704, %706 : vector<16x16xf32>
    %c0_51 = arith.constant 0 : index
    %c1_52 = arith.constant 1 : index
    %c0_53 = arith.constant 0 : index
    %c0_54 = arith.constant 0 : index
    %708 = vector.load %arg7[%c0_51, %c1_52, %c0_53, %c0_54] : memref<1x4x16x16xf32, #tpu.memory_space<vmem>>, vector<1x1x16x16xf32>
    %709 = vector.shape_cast %708 : vector<1x1x16x16xf32> to vector<16x16xf32>
    %710 = vector.shape_cast %707 : vector<16x16xf32> to vector<1x1x16x16xf32>
    tpu.vector_store %arg7[%c0_51, %c1_52, %c0_53, %c0_54], %710 {strides = array<i32>} : memref<1x4x16x16xf32, #tpu.memory_space<vmem>>, vector<1x1x16x16xf32>,
    %c2_55 = arith.constant 2 : index
    %711 = memref.load %arg5[%c2_55] : memref<4xf32, #tpu.memory_space<smem>>
    %712 = vector.broadcast %711 : f32 to vector<16x16xf32>
    %713 = arith.mulf %680, %712 : vector<16x16xf32>
    %c2_56 = arith.constant 2 : index
    %714 = memref.load %arg6[%c2_56] : memref<4xf32, #tpu.memory_space<smem>>
    %715 = vector.broadcast %714 : f32 to vector<16x16xf32>
    %716 = arith.addf %713, %715 : vector<16x16xf32>
    %717 = arith.mulf %716, %57 : vector<16x16xf32>
    %718 = vector.extract_strided_slice %3 {offsets = [2, 0, 0], sizes = [1, 16, 16], strides = [1, 1, 1]} : vector<4x16x16xf32> to vector<1x16x16xf32>
    %719 = vector.shape_cast %718 : vector<1x16x16xf32> to vector<16x16xf32>
    %720 = arith.addf %717, %719 : vector<16x16xf32>
    %c0_57 = arith.constant 0 : index
    %c2_58 = arith.constant 2 : index
    %c0_59 = arith.constant 0 : index
    %c0_60 = arith.constant 0 : index
    %721 = vector.load %arg7[%c0_57, %c2_58, %c0_59, %c0_60] : memref<1x4x16x16xf32, #tpu.memory_space<vmem>>, vector<1x1x16x16xf32>
    %722 = vector.shape_cast %721 : vector<1x1x16x16xf32> to vector<16x16xf32>
    %723 = vector.shape_cast %720 : vector<16x16xf32> to vector<1x1x16x16xf32>
    tpu.vector_store %arg7[%c0_57, %c2_58, %c0_59, %c0_60], %723 {strides = array<i32>} : memref<1x4x16x16xf32, #tpu.memory_space<vmem>>, vector<1x1x16x16xf32>,
    %c3_61 = arith.constant 3 : index
    %724 = memref.load %arg5[%c3_61] : memref<4xf32, #tpu.memory_space<smem>>
    %725 = vector.broadcast %724 : f32 to vector<16x16xf32>
    %726 = arith.mulf %684, %725 : vector<16x16xf32>
    %c3_62 = arith.constant 3 : index
    %727 = memref.load %arg6[%c3_62] : memref<4xf32, #tpu.memory_space<smem>>
    %728 = vector.broadcast %727 : f32 to vector<16x16xf32>
    %729 = arith.addf %726, %728 : vector<16x16xf32>
    %730 = arith.mulf %729, %57 : vector<16x16xf32>
    %731 = vector.extract_strided_slice %3 {offsets = [3, 0, 0], sizes = [1, 16, 16], strides = [1, 1, 1]} : vector<4x16x16xf32> to vector<1x16x16xf32>
    %732 = vector.shape_cast %731 : vector<1x16x16xf32> to vector<16x16xf32>
    %733 = arith.addf %730, %732 : vector<16x16xf32>
    %c0_63 = arith.constant 0 : index
    %c3_64 = arith.constant 3 : index
    %c0_65 = arith.constant 0 : index
    %c0_66 = arith.constant 0 : index
    %734 = vector.load %arg7[%c0_63, %c3_64, %c0_65, %c0_66] : memref<1x4x16x16xf32, #tpu.memory_space<vmem>>, vector<1x1x16x16xf32>
    %735 = vector.shape_cast %734 : vector<1x1x16x16xf32> to vector<16x16xf32>
    %736 = vector.shape_cast %733 : vector<16x16xf32> to vector<1x1x16x16xf32>
    tpu.vector_store %arg7[%c0_63, %c3_64, %c0_65, %c0_66], %736 {strides = array<i32>} : memref<1x4x16x16xf32, #tpu.memory_space<vmem>>, vector<1x1x16x16xf32>,
    return
  }
  func.func @transform_0(%arg0: i32) -> (i32, i32, i32, i32) {
    %c0_i32 = arith.constant 0 : i32
    %c0_i32_0 = arith.constant 0 : i32
    %c0_i32_1 = arith.constant 0 : i32
    %c0_i32_2 = arith.constant 0 : i32
    return %arg0, %c0_i32, %c0_i32_0, %c0_i32_1 : i32, i32, i32, i32
  }
  func.func @transform_1(%arg0: i32) -> (i32, i32, i32, i32) {
    %c0_i32 = arith.constant 0 : i32
    %c0_i32_0 = arith.constant 0 : i32
    %c0_i32_1 = arith.constant 0 : i32
    %c0_i32_2 = arith.constant 0 : i32
    return %arg0, %c0_i32, %c0_i32_0, %c0_i32_1 : i32, i32, i32, i32
  }
  func.func @transform_2(%arg0: i32) -> i32 {
    %c0_i32 = arith.constant 0 : i32
    %c0_i32_0 = arith.constant 0 : i32
    return %c0_i32 : i32
  }
  func.func @transform_3(%arg0: i32) -> i32 {
    %c0_i32 = arith.constant 0 : i32
    %c0_i32_0 = arith.constant 0 : i32
    return %c0_i32 : i32
  }
  func.func @transform_4(%arg0: i32) -> i32 {
    %c0_i32 = arith.constant 0 : i32
    %c0_i32_0 = arith.constant 0 : i32
    return %c0_i32 : i32
  }
  func.func @transform_5(%arg0: i32) -> i32 {
    %c0_i32 = arith.constant 0 : i32
    %c0_i32_0 = arith.constant 0 : i32
    return %c0_i32 : i32
  }
  func.func @transform_6(%arg0: i32) -> (i32, i32, i32, i32) {
    %c0_i32 = arith.constant 0 : i32
    %c0_i32_0 = arith.constant 0 : i32
    %c0_i32_1 = arith.constant 0 : i32
    %c0_i32_2 = arith.constant 0 : i32
    return %arg0, %c0_i32, %c0_i32_0, %c0_i32_1 : i32, i32, i32, i32
  }
}

</mosaic_0001>

<bundles_post_ra>
// kernel: tpu_custom_call.1
= control target key start
LH: loop header
LB: loop body
LE: loop exit
PB: predicated region body
PF: predicated region fallthrough
CT: control target
= control target key end

     0   :  { %s6600_s0 = inlined_call_operand.hbm [shape: f32[2,4,16,16], index: 0, kind: input, shape index: {}]   ;;  %s6601_s1 = inlined_call_operand.hbm [shape: f32[2,4,16,16], index: 1, kind: input, shape index: {}]   ;;  %s6602_s2 = inlined_call_operand.vmem [shape: f32[4], index: 2, kind: input, shape index: {}]   ;;  %s6603_s3 = inlined_call_operand.vmem [shape: f32[144], index: 3, kind: input, shape index: {}]   ;;  %s6604_s4 = inlined_call_operand.vmem [shape: f32[4], index: 4, kind: input, shape index: {}]   ;;  %s6605_s5 = inlined_call_operand.vmem [shape: f32[4], index: 5, kind: input, shape index: {}]   ;;  %s6606_s6 = inlined_call_operand.hbm [shape: f32[2,4,16,16], index: 6, kind: output, shape index: {}]  }
   0x1   :  { %6692 = sst [smem:[#allocation136_spill]] %s6600_s0 }
   0x2   :  { %6693 = sst [smem:[#allocation137_spill]] %s6601_s1 }
   0x3   :  { %6694 = sst [smem:[#allocation138_spill]] %s6602_s2 }
   0x4   :  { %6695 = sst [smem:[#allocation139_spill]] %s6603_s3 }
   0x5   :  { %6696 = sst [smem:[#allocation140_spill]] %s6604_s4 }
   0x6   :  { %6697 = sst [smem:[#allocation141_spill]] %s6605_s5 }
   0x7   :  { %6698 = sst [smem:[#allocation142_spill]] %s6606_s6 }
   0x8   :  { %11 = vsyncpa [#allocation4], 0 }
   0x9   :  { %13 = vsyncpa [#allocation4 + $0x1], 0 }
   0xa   :  { %14 = vsyncpa [#allocation8], 0 }
   0xb   :  { %16 = vsyncpa [#allocation8 + $0x1], 0 }
   0xc   :  { %17 = vsyncpa [#allocation6], 0 }
   0xd   :  { %18 = vsyncpa [#allocation11], 0 }
   0xe   :  { %19 = vsyncpa [#allocation14], 0 }
   0xf   :  { %20 = vsyncpa [#allocation5], 0 }
  0x10   :  { %22 = vsyncpa [#allocation5 + $0x1], 0  ;;  %s3741_s21 = smov 0   ;;  %s3743_s22 = smov 0  }
  0x11   :  { %s3745_s23 = smov 0   ;;  %s3747_s24 = smov 0  }
  0x12 LB: > { %6699 = sst [smem:[#allocation22_spill]] %s3677_s21  ;;  %s3762_s25 = sadd.s32 4294967295, %s3689_s24   ;;  %s3689_s24 = sphi %s3747_s24, %s7097_s24   ;;  %s3685_s23 = sphi %s3745_s23, %s7100_s23   ;;  %s3681_s22 = sphi %s3743_s22, %s7099_s22   ;;  %s3677_s21 = sphi %s3741_s21, %s7098_s21  }
  0x13   : > { %6700 = sst [smem:[#allocation23_spill]] %s3681_s22  ;;  %s3166_s26 = sadd.s32 4294967294, %s3689_s24  }
  0x14   : > { %6701 = sst [smem:[#allocation24_spill]] %s3685_s23  ;;  %p48_p0 = scmp.ne.s32.totalorder %s3681_s22, %s3677_s21 }
  0x15   : > { %6702 = sst [smem:[#allocation25_spill]] %s3689_s24  ;;  %p6607_p1 = scmp.eq.s32.totalorder %s3762_s25, 0 }
  0x16   : > { %p188_p3 = scmp.eq.s32.totalorder %s3166_s26, 1  ;;  %p3167_p5 = scmp.ge.s32.totalorder %s3689_s24, 1 }
  0x17   : > { %p3771_p4 = por %p6607_p1, %p48_p0  ;;  %p195_p7 = scmp.lt.s32.totalorder %s3689_s24, 3 }
  0x18   : > { %p3776_p6 = por %p188_p3, %p48_p0  ;;  %s6706_s3 = sld [smem:[#allocation139_spill]] }
  0x19   : > { %s6703_s27 = scalar_select %p3771_p4, 1, 0 }
  0x1a   : > { %s6704_s28 = scalar_select %p3776_p6, 1, 0 }
  0x1b   : > { %p3784_p8 = pnand %p3167_p5, %p195_p7  ;;  %s6708_s2 = sld [smem:[#allocation138_spill]] }
  0x1c   : > { %6705 = sst [smem:[#allocation26_spill]] %s6704_s28  ;;  %s6710_s4 = sld [smem:[#allocation140_spill]] }
  0x1d   : > { %s6707_s8 = scalar_select %p3784_p8, 1, 0 }
  0x1e   : > { %s219_s7 = sshll.u32 %s6706_s3, 4  ;;  %p3379_p10 = pneg %p3784_p8  ;;  %s220_s7 = int_to_ptr.vmem [resolvable:$true] %s219_s7 }
  0x1f   : > { %s6711_s5 = sld [smem:[#allocation141_spill]]  ;;  %s3487_s19 = scalar_lea.vmem %s220_s7, 32 }
  0x20   : > { %p3796_p11 = pnand %p3379_p10, %p6607_p1  ;;  %p3488_p12 = scmp.ne.s32.totalorder %s220_s7, %s3487_s19 }
  0x21   : > { %s208_s11 = sshll.u32 %s6708_s2, 4  ;;  %p3495_p5 = scmp.lt.s32.totalorder %s220_s7, %s220_s7  ;;  %s209_s11 = int_to_ptr.vmem [resolvable:$true] %s208_s11 }
  0x22   : > { %s230_s15 = sshll.u32 %s6710_s4, 4  ;;  %p3489_p13 = pneg %p3796_p11  ;;  %s3803_s15 = int_to_ptr.vmem [resolvable:$true] %s230_s15 }
  0x23   : > { %p3496_p7 = scmp.lt.s32.totalorder %s3487_s19, %s3487_s19 }
  0x24   : > { %p3490_p0 = pnand %p3489_p13, %p3488_p12 }
  0x25   : > { %s241_s18 = sshll.u32 %s6711_s5, 4  ;;  %p3497_p10 = por %p3496_p7, %p3495_p5  ;;  %s242_s18 = int_to_ptr.vmem [resolvable:$true] %s241_s18 }
  0x26   : > { %p3491_p3 = pneg %p3490_p0 }
  0x28   : > { %p3498_p9 = pnand %p3497_p10, %p3491_p3 }
  0x2a   : > { %3501 = shalt.err (!%p3498_p9)
}
  0x2b   : > { %s3691_s20 = smov [#allocation10]   ;;  %s3502_s26 = scalar_lea.vmem %s209_s11, 16 }
  0x2c   : > { %3385 = dma.vmem_to_smem (!%p3796_p11), %s220_s7, 32, %s3691_s20, [#allocation11]  }
  0x2d   : > { %p3503_p1 = scmp.ne.s32.totalorder %s209_s11, %s3502_s26  ;;  %p3510_p4 = scmp.lt.s32.totalorder %s209_s11, %s209_s11 }
  0x2e   : > { %p3511_p8 = scmp.lt.s32.totalorder %s3502_s26, %s3502_s26 }
  0x2f   : > { %p3505_p2 = pnand %p3503_p1, %p3489_p13 }
  0x30   : > { %p3512_p12 = por %p3511_p8, %p3510_p4 }
  0x31   : > { %p3506_p6 = pneg %p3505_p2 }
  0x33   : > { %p3513_p0 = pnand %p3512_p12, %p3506_p6 }
  0x35   : > { %3516 = shalt.err (!%p3513_p0)
}
  0x36   : > { %s3692_s29 = smov [#allocation9]   ;;  %s3517_s30 = scalar_lea.vmem %s3803_s15, 16 }
  0x37   : > { %3382 = dma.vmem_to_smem (!%p3796_p11), %s209_s11, 16, %s3692_s29, [#allocation6]  }
  0x38   : > { %p3518_p9 = scmp.ne.s32.totalorder %s3803_s15, %s3517_s30  ;;  %p3525_p2 = scmp.lt.s32.totalorder %s3803_s15, %s3803_s15 }
  0x39   : > { %p3526_p5 = scmp.lt.s32.totalorder %s3517_s30, %s3517_s30 }
  0x3a   : > { %p3520_p3 = pnand %p3518_p9, %p3489_p13 }
  0x3b   : > { %p3527_p4 = por %p3526_p5, %p3525_p2 }
  0x3c   : > { %p3521_p1 = pneg %p3520_p3 }
  0x3e   : > { %p3528_p6 = pnand %p3527_p4, %p3521_p1 }
  0x40   : > { %3531 = shalt.err (!%p3528_p6)
}
  0x41   : > { %s3693_s7 = smov [#allocation12]   ;;  %s3532_s11 = scalar_lea.vmem %s242_s18, 16 }
  0x42   : > { %3388 = dma.vmem_to_smem (!%p3796_p11), %s3803_s15, 16, %s3693_s7, [#allocation11]  }
  0x43   : > { %p3533_p8 = scmp.ne.s32.totalorder %s242_s18, %s3532_s11  ;;  %p3540_p12 = scmp.lt.s32.totalorder %s242_s18, %s242_s18 }
  0x44   : > { %p3541_p0 = scmp.lt.s32.totalorder %s3532_s11, %s3532_s11 }
  0x45   : > { %p3535_p7 = pnand %p3533_p8, %p3489_p13 }
  0x46   : > { %p3542_p9 = por %p3541_p0, %p3540_p12 }
  0x47   : > { %p3536_p10 = pneg %p3535_p7 }
  0x49   : > { %p3543_p3 = pnand %p3542_p9, %p3536_p10 }
  0x4b   : > { %3546 = shalt.err (!%p3543_p3)
}
  0x4c   : > { %s3694_s13 = smov [#allocation13]   ;;  %s3840_s14 = sadd.s32 1, %s3689_s24  }
  0x4d   : > { %3391 = dma.vmem_to_smem (!%p3796_p11), %s242_s18, 16, %s3694_s13, [#allocation14]  }
  0x4e   : > { %6712 = sst [smem:[#allocation27_spill]] %s3840_s14  ;;  %s32_s15 = ssub.s32 %s3689_s24, %s3840_s14 }
  0x4f   : > { %p33_p13 = scmp.eq.s32.totalorder %s32_s15, 0  ;;  %s35_s16 = sadd.s32 1, %s3685_s23 }
  0x50   : > { %p42_p1 = scmp.ne.s32.totalorder %s3685_s23, %s3681_s22  ;;  %p43_p2 = scmp.eq.s32.totalorder %s3689_s24, 0 }
  0x51   : > { %s3849_s12 = scalar_select %p33_p13, %s3685_s23, %s35_s16  }
  0x52   : > { %p44_p5 = por %p43_p2, %p42_p1  ;;  %p6714_p4 = scmp.eq.s32.totalorder %s3762_s25, 1 }
  0x53   : > { %6713 = sst [smem:[#allocation28_spill]] %s3849_s12  ;;  %p3407_p8 = scmp.lt.s32.totalorder %s3689_s24, 2 }
  0x54   : > { %p3853_p6 = por %p6714_p4, %p42_p1  ;;  %s3859_s19 = sand.u32 1, %s3685_s23  }
  0x55   : > { %s6610_s18 = sshll.u32 %s3859_s19, 6  ;;  %s3350_s20 = sshll.u32 %s3689_s24, 10 }
  0x56   : > { %s6716_s0 = sld [smem:[#allocation136_spill]]  ;;  %s256_s7 = scalar_lea.vmem [#allocation3], %s6610_s18 }
  0x57   : > { %s263_s9 = sshll.u32 %s256_s7, 4  ;;  %p3874_p11 = pnand %p3407_p8, %p44_p5  ;;  %s3872_s9 = int_to_ptr.vmem [resolvable:$true] %s263_s9 }
  0x58   : > { %s253_s11 = scalar_lea.sflag [#allocation4], %s3859_s19 }
  0x59   : > { %p3549_p10 = pneg %p3874_p11 }
  0x5c   : > { %s3868_s30 = scalar_lea.hbm %s6716_s0, %s3350_s20  ;;  %s3552_s26 = scalar_lea.hbm %s6716_s0, 2048 }
  0x5d   : > { %s3547_s13 = scalar_lea.hbm %s3868_s30, 1024  ;;  %p3553_p9 = scmp.lt.u32.totalorder %s3868_s30, %s6716_s0 }
  0x5e   : > { %p3548_p7 = scmp.ne.s32.totalorder %s3868_s30, %s3547_s13  ;;  %p3554_p3 = scmp.lt.u32.totalorder %s3552_s26, %s3547_s13 }
  0x5f   : > { %p3556_p1 = scmp.lt.u32.totalorder %s3547_s13, %s3868_s30 }
  0x60   : > { %p3550_p12 = pnand %p3549_p10, %p3548_p7  ;;  %p3555_p13 = por %p3554_p3, %p3553_p9 }
  0x62   : > { %p3551_p0 = pneg %p3550_p12  ;;  %p3557_p2 = por %p3556_p1, %p3555_p13 }
  0x64   : > { %p3558_p5 = pnand %p3557_p2, %p3551_p0 }
  0x66   : > { %3561 = shalt.err (!%p3558_p5)
}
  0x67   : > { %s3562_s18 = scalar_lea.vmem %s3872_s9, 1024  ;;  %s3695_s15 = smov [#allocation3]  }
  0x68   : > { %p3563_p4 = scmp.ne.s32.totalorder %s3872_s9, %s3562_s18  ;;  %s3567_s16 = sshll.u32 %s3695_s15, 4  ;;  %s3568_s16 = int_to_ptr.vmem [resolvable:$false] %s3567_s16 }
  0x69   : > { %s3569_s29 = scalar_lea.vmem %s3568_s16, 2048  ;;  %p3570_p12 = scmp.lt.s32.totalorder %s3872_s9, %s3568_s16 }
  0x6a   : > { %p3565_p8 = pnand %p3563_p4, %p3549_p10  ;;  %p3571_p9 = scmp.lt.s32.totalorder %s3569_s29, %s3562_s18 }
  0x6c   : > { %p3566_p7 = pneg %p3565_p8  ;;  %p3572_p3 = por %p3571_p9, %p3570_p12 }
  0x6e   : > { %p3573_p13 = pnand %p3572_p3, %p3566_p7 }
  0x70   : > { %3576 = shalt.err (!%p3573_p13)
}
  0x71   : > { %s3696_s13 = smov 128   ;;  %s3697_s26 = smov 8  }
  0x72   : > { %3395 = dma.hbm_to_vmem [thread:$0]  (!%p3874_p11), %s3868_s30, 1024, %s3872_s9, %s253_s11, %s3696_s13, %s3696_s13, %s3697_s26  }
  0x73   : > { %s6718_s1 = sld [smem:[#allocation137_spill]]  ;;  %s6719_s16 = sshll.u32 %s3859_s19, 6 }
  0x74   : > { %s277_s29 = scalar_lea.vmem [#allocation7], %s6719_s16  ;;  %s274_s2 = scalar_lea.sflag [#allocation8], %s3859_s19 }
  0x75   : > { %s284_s0 = sshll.u32 %s277_s29, 4  ;;  %s3918_s0 = int_to_ptr.vmem [resolvable:$true] %s284_s0 }
  0x79   : > { %s3914_s15 = scalar_lea.hbm %s6718_s1, %s3350_s20  ;;  %s3582_s20 = scalar_lea.hbm %s6718_s1, 2048 }
  0x7a   : > { %s3577_s3 = scalar_lea.hbm %s3914_s15, 1024  ;;  %p3583_p5 = scmp.lt.u32.totalorder %s3914_s15, %s6718_s1 }
  0x7b   : > { %p3578_p0 = scmp.ne.s32.totalorder %s3914_s15, %s3577_s3  ;;  %p3584_p4 = scmp.lt.u32.totalorder %s3582_s20, %s3577_s3 }
  0x7c   : > { %p3586_p7 = scmp.lt.u32.totalorder %s3577_s3, %s3914_s15 }
  0x7d   : > { %p3580_p1 = pnand %p3578_p0, %p3549_p10  ;;  %p3585_p8 = por %p3584_p4, %p3583_p5 }
  0x7f   : > { %p3581_p2 = pneg %p3580_p1  ;;  %p3587_p12 = por %p3586_p7, %p3585_p8 }
  0x81   : > { %p3588_p9 = pnand %p3587_p12, %p3581_p2 }
  0x83   : > { %3591 = shalt.err (!%p3588_p9)
}
  0x84   : > { %s3592_s7 = scalar_lea.vmem %s3918_s0, 1024  ;;  %s3698_s16 = smov [#allocation7]  }
  0x85   : > { %p3593_p3 = scmp.ne.s32.totalorder %s3918_s0, %s3592_s7  ;;  %s3597_s29 = sshll.u32 %s3698_s16, 4  ;;  %s3598_s29 = int_to_ptr.vmem [resolvable:$false] %s3597_s29 }
  0x86   : > { %s3599_s30 = scalar_lea.vmem %s3598_s29, 2048  ;;  %p3600_p1 = scmp.lt.s32.totalorder %s3918_s0, %s3598_s29 }
  0x87   : > { %p3595_p13 = pnand %p3593_p3, %p3549_p10  ;;  %p3601_p5 = scmp.lt.s32.totalorder %s3599_s30, %s3592_s7 }
  0x89   : > { %p3596_p0 = pneg %p3595_p13  ;;  %p3602_p4 = por %p3601_p5, %p3600_p1 }
  0x8b   : > { %p3603_p8 = pnand %p3602_p4, %p3596_p0 }
  0x8d   : > { %3606 = shalt.err (!%p3603_p8)
}
  0x8e   : > { %3398 = dma.hbm_to_vmem [thread:$0]  (!%p3874_p11), %s3914_s15, 1024, %s3918_s0, %s274_s2, %s3696_s13, %s3696_s13, %s3697_s26  }
  0x8f   : > { %p6720_p10 = scmp.ne.s32.totalorder %s6707_s8, 0 }
  0x91   : > { %296 = sbr.rel (%p6720_p10) target bundleno = 896 (0x380), region = 44 }
  0x98   : > { %s3952_s3 = sand.u32 1, %s3681_s22   ;;  %p6721_p2 = scmp.ne.s32.totalorder %s6703_s27, 0 }
  0x99   : > { %s3955_s9 = sshll.u32 %s3952_s3, 6  ;;  %s299_s10 = scalar_lea.sflag [#allocation4], %s3952_s3 }
  0x9a   : > { %s3959_s20 = scalar_lea.vmem [#allocation3], %s3955_s9 }
  0x9b   : > { %3652 = dma.done.wait (%p6721_p2), %s299_s10, 1024  }
  0x9c   : > { %3654 = vsyncadd (%p6721_p2), %s299_s10, 4294966272  ;;  %s308_s0 = scalar_lea.sflag [#allocation8], %s3952_s3  ;;  %s3967_s2 = scalar_lea.vmem [#allocation7], %s3955_s9 }
  0x9d   : > { %3656 = dma.done.wait (%p6721_p2), %s308_s0, 1024  }
  0x9e   : > { %3658 = vsyncadd (%p6721_p2), %s308_s0, 4294966272  ;;  %p6722_p11 = scmp.eq.s32.totalorder %s3762_s25, 0 }
  0xa0   : > { %3660 = dma.done.wait (%p6722_p11), [#allocation6], 16   ;;  %p6723_p7 = pmov %p6722_p11 }
  0xa2   : > { %3662 = vsyncadd (%p6723_p7), [#allocation6], 4294967280  ;;  %p6724_p12 = pmov %p6723_p7 }
  0xa3   : > { %p6725_p9 = pmov %p6723_p7 }
  0xa4   : > { %3664 = dma.done.wait (%p6724_p12), [#allocation11], 48  }
  0xa5   : > { %3666 = vsyncadd (%p6725_p9), [#allocation11], 4294967248  ;;  %p6726_p3 = pmov %p6723_p7 }
  0xa7   : > { %3668 = dma.done.wait (%p6726_p3), [#allocation14], 16   ;;  %p6727_p13 = pmov %p6726_p3 }
  0xa9   : > { %3670 = vsyncadd (%p6727_p13), [#allocation14], 4294967280 }
  0xaa   : > { %332 = sfence }
  0xab   : > { %v362_v0 = vld [vmem:[%s3959_s20] sm:$0xff]  ;;  %s3986_s27 = sld [smem:[#allocation9]]  ;;  %s3699_s8 = smov 1   ;;  %v363_v1 = vld [vmem:[%s3959_s20 + $0x8] sm:$0xff]  ;;  %vm452_vm0 = vcmask 146432   ;;  %v3700_v4 = vmov 0.0  }
  0xac   : > { %474 = vrot.lane.b32.xlu1 %v362_v0, %s3699_s8  ;;  %s3989_s19 = sld [smem:[#allocation9 + $0x1]]  ;;  %s3992_s13 = sld [smem:[#allocation9 + $0x2]]  ;;  %v370_v2 = vld [vmem:[%s3967_s2] sm:$0xff]  ;;  %v371_v3 = vld [vmem:[%s3967_s2 + $0x8] sm:$0xff]  ;;  %453 = vst.msk [vmem:[#allocation2] sm:$0xff] %vm452_vm0, %v3700_v4  ;;  %454 = vst.msk [vmem:[#allocation2 + $0x8] sm:$0xff] %vm452_vm0, %v3700_v4 }
  0xad   : > { %s3994_s26 = sld [smem:[#allocation9 + $0x3]]  ;;  %457 = vst.msk [vmem:[#allocation2 + $0x18] sm:$0xff] %vm452_vm0, %v3700_v4  ;;  %458 = vst.msk [vmem:[#allocation2 + $0x20] sm:$0xff] %vm452_vm0, %v3700_v4  ;;  %vm455_vm1 = vcmask 140288   ;;  %v372_v5 = vld [vmem:[%s3967_s2 + $0x10] sm:$0xff]  ;;  %v373_v6 = vld [vmem:[%s3967_s2 + $0x18] sm:$0xff] }
  0xae   : > { %460 = vst.msk [vmem:[#allocation2 + $0x30] sm:$0xff] %vm452_vm0, %v3700_v4  ;;  %461 = vst.msk [vmem:[#allocation2 + $0x38] sm:$0xff] %vm452_vm0, %v3700_v4  ;;  %v374_v7 = vld [vmem:[%s3967_s2 + $0x20] sm:$0xff]  ;;  %v375_v8 = vld [vmem:[%s3967_s2 + $0x28] sm:$0xff]  ;;  %vm402_vm2 = vcmask 130048   ;;  %vm498_vm3 = vcmask 138248  }
  0xaf   : > { %463 = vst.msk [vmem:[#allocation2 + $0x48] sm:$0xff] %vm452_vm0, %v3700_v4  ;;  %464 = vst.msk [vmem:[#allocation2 + $0x50] sm:$0xff] %vm452_vm0, %v3700_v4  ;;  %v365_v10 = vld [vmem:[%s3959_s20 + $0x18] sm:$0xff]  ;;  %v376_v11 = vld [vmem:[%s3967_s2 + $0x30] sm:$0xff]  ;;  %s3193_s15 = sld [smem:[#allocation10 + $0x1]]  ;;  %s3194_s11 = sld [smem:[#allocation10 + $0x25]] }
  0xb0   : > { %476 = vrot.lane.b32.xlu1 %v363_v1, %s3699_s8  ;;  %456 = vst.msk [vmem:[#allocation2 + $0x10] sm:$0x3] %vm455_vm1, %v3700_v4  ;;  %459 = vst.msk [vmem:[#allocation2 + $0x28] sm:$0x3] %vm455_vm1, %v3700_v4  ;;  %v377_v12 = vld [vmem:[%s3967_s2 + $0x38] sm:$0xff]  ;;  %v366_v26 = vld [vmem:[%s3959_s20 + $0x20] sm:$0xff] }
  0xb1   : > { %462 = vst.msk [vmem:[#allocation2 + $0x40] sm:$0x3] %vm455_vm1, %v3700_v4  ;;  %465 = vst.msk [vmem:[#allocation2 + $0x58] sm:$0x3] %vm455_vm1, %v3700_v4  ;;  %v379_v9 = vstv %s3986_s27  ;;  %v367_v31 = vld [vmem:[%s3959_s20 + $0x28] sm:$0xff]  ;;  %v368_v35 = vld [vmem:[%s3959_s20 + $0x30] sm:$0xff] }
  0xb2   : > { %v380_v13 = vmul.f32 %v379_v9, %v370_v2  ;;  %v381_v14 = vmul.f32 %v379_v9, %v371_v3  ;;  %v385_v15 = vstv %s3989_s19  ;;  %v391_v18 = vstv %s3992_s13  ;;  %v369_v36 = vld [vmem:[%s3959_s20 + $0x38] sm:$0xff]  ;;  %v364_v37 = vld [vmem:[%s3959_s20 + $0x10] sm:$0xff]  ;;  %s3195_s18 = sld [smem:[#allocation10 + $0x49]]  ;;  %s4033_s7 = sld [smem:[#allocation10 + $0x6d]] }
  0xb3   : > { %v386_v16 = vmul.f32 %v385_v15, %v372_v5  ;;  %v387_v17 = vmul.f32 %v385_v15, %v373_v6  ;;  %v392_v19 = vmul.f32 %v391_v18, %v374_v7  ;;  %v393_v20 = vmul.f32 %v391_v18, %v375_v8  ;;  %s6613_s16 = smov 127   ;;  %s3197_s29 = sld [smem:[#allocation10 + $0x2]] }
  0xb4   : > { %v397_v21 = vstv %s3994_s26  ;;  %480 = vrot.lane.b32.xlu1 %v365_v10, %s3699_s8  ;;  %s3198_s30 = sld [smem:[#allocation10 + $0x26]]  ;;  %s3199_s10 = sld [smem:[#allocation10 + $0x4a]]  ;;  %vm654_vm4 = vcmask 1046528   ;;  %vm891_vm5 = vcmask 1045504  }
  0xb5   : > { %v388_v22 = vadd.f32 %v386_v16, %v380_v13  ;;  %v389_v23 = vadd.f32 %v387_v17, %v381_v14  ;;  %v398_v24 = vmul.f32 %v397_v21, %v376_v11  ;;  %v399_v25 = vmul.f32 %v397_v21, %v377_v12  ;;  %s3200_s20 = sld [smem:[#allocation10 + $0x6e]]  ;;  %s6611_s0 = smov 126  }
  0xb6   : > { %v535_v40 = vstv %s3193_s15  ;;  %v549_v42 = vstv %s3194_s11  ;;  %s3229_s27 = sld [smem:[#allocation10 + $0xa]]  ;;  %s3206_s19 = sld [smem:[#allocation10 + $0x28]] }
  0xb7   : > { %v394_v27 = vadd.f32 %v392_v19, %v388_v22  ;;  %v395_v28 = vadd.f32 %v393_v20, %v389_v23  ;;  %s3230_s13 = sld [smem:[#allocation10 + $0x2e]]  ;;  %s3207_s26 = sld [smem:[#allocation10 + $0x4c]] }
  0xb8   : > { %482 = vrot.lane.b32.xlu1 %v366_v26, %s3699_s8  ;;  %v563_v47 = vstv %s3195_s18  ;;  %v577_v52 = vstv %s4033_s7  ;;  %s3208_s15 = sld [smem:[#allocation10 + $0x70]]  ;;  %s3209_s11 = sld [smem:[#allocation10 + $0x5]] }
  0xb9   : > { %v4013_v29 = vadd.f32 %v398_v24, %v394_v27  ;;  %v4015_v30 = vadd.f32 %v399_v25, %v395_v28  ;;  %v591_v57 = vstv %s3197_s29  ;;  %s3210_s18 = sld [smem:[#allocation10 + $0x29]]  ;;  %s3211_s7 = sld [smem:[#allocation10 + $0x4d]] }
  0xba   : > { %v605_v61 = vstv %s3198_s30  ;;  %v619_v0 = vstv %s3199_s10  ;;  %s3212_s29 = sld [smem:[#allocation10 + $0x71]]  ;;  %s3217_s30 = sld [smem:[#allocation10 + $0x7]] }
  0xbb   : > { %v403_v32 = vsel %vm402_vm2, %v4013_v29, 0.0  ;;  %v404_v33 = vsel %vm402_vm2, %v4015_v30, 0.0  ;;  %v633_v3 = vstv %s3200_s20  ;;  %s3218_s10 = sld [smem:[#allocation10 + $0x2b]]  ;;  %s3219_s20 = sld [smem:[#allocation10 + $0x4f]] }
  0xbc   : > { %v405_v34 = vadd.f32 %v404_v33, %v403_v32  ;;  %484 = vrot.lane.b32.xlu1 %v367_v31, %s3699_s8  ;;  %v1149_v14 = vstv %s3229_s27  ;;  %v737_v22 = vstv %s3206_s19  ;;  %s3220_s27 = sld [smem:[#allocation10 + $0x73]]  ;;  %s3222_s19 = sld [smem:[#allocation10 + $0x2c]] }
  0xbd   : > { %v1163_v23 = vstv %s3230_s13  ;;  %v758_v27 = vstv %s3207_s26  ;;  %s3223_s13 = sld [smem:[#allocation10 + $0x50]]  ;;  %s3224_s26 = sld [smem:[#allocation10 + $0x74]] }
  0xbe   : > { %406 = vadd.xlane.f32.xlu0 %v405_v34  ;;  %s4473_s1 = sld [smem:[#allocation10 + $0x72]]  ;;  %s4475_s4 = sld [smem:[#allocation10 + $0x9]] }
  0xbf   : > { %s4484_s5 = sld [smem:[#allocation10 + $0x2d]]  ;;  %s4486_s12 = sld [smem:[#allocation10 + $0x51]] }
  0xc0   : > { %486 = vrot.lane.b32.xlu1 %v368_v35, %s3699_s8  ;;  %s4491_s23 = sld [smem:[#allocation10 + $0x16]]  ;;  %s6760_s22 = smov 127  }
  0xc1   : > { %s4494_s14 = sld [smem:[#allocation10 + $0x75]]  ;;  %s4496_s24 = sld [smem:[#allocation10 + $0xc]] }
  0xc2   : > { %s4509_s28 = sld [smem:[#allocation10 + $0x80]]  ;;  %s6763_s6 = smov 126  }
  0xc4   : > { %488 = vrot.lane.b32.xlu1 %v369_v36, %s3699_s8 }
  0xd4   : > { %478 = vrot.lane.b32.xlu0 %v364_v37, %s3699_s8  ;;  %s3205_s8 = sld [smem:[#allocation10 + $0x4]] }
  0xda   : > { %v716_v17 = vstv %s3205_s8  ;;  %s3221_s8 = sld [smem:[#allocation10 + $0x8]] }
 0x11e   : > { %v475_v38 = vpop.permute.xlu1 %474 }
 0x11f   : > { %499 = vst.msk [vmem:[#allocation2 + $0x1] sm:$0xff] %vm498_vm3, %v475_v38  ;;  %v779_v38 = vstv %s3208_s15  ;;  %s3231_s15 = sld [smem:[#allocation10 + $0x52]] }
 0x122   : > { %v477_v39 = vpop.permute.xlu1 %476 }
 0x123   : > { %500 = vst.msk [vmem:[#allocation2 + $0x9] sm:$0xff] %vm498_vm3, %v477_v39 }
 0x126   : > { %v4031_v41 = vld [vmem:[#allocation2] sm:$0xff]  ;;  %v481_v43 = vpop.permute.xlu1 %480 }
 0x127   : > { %v536_v44 = vmul.f32 %v535_v40, %v4031_v41  ;;  %502 = vst.msk [vmem:[#allocation2 + $0x21] sm:$0xff] %vm498_vm3, %v481_v43  ;;  %v550_v45 = vmul.f32 %v549_v42, %v4031_v41  ;;  %v564_v50 = vmul.f32 %v563_v47, %v4031_v41  ;;  %v578_v54 = vmul.f32 %v577_v52, %v4031_v41 }
 0x128   : > { %v592_v59 = vmul.f32 %v591_v57, %v4031_v41  ;;  %v606_v62 = vmul.f32 %v605_v61, %v4031_v41  ;;  %v620_v1 = vmul.f32 %v619_v0, %v4031_v41  ;;  %v634_v4 = vmul.f32 %v633_v3, %v4031_v41 }
 0x129   : > { %540 = vrot.lane.b32.xlu1 %v536_v44, %s6613_s16  ;;  %v717_v24 = vmul.f32 %v716_v17, %v4031_v41  ;;  %v738_v32 = vmul.f32 %v737_v22, %v4031_v41 }
 0x12a   : > { %v4039_v46 = vld [vmem:[#allocation2 + $0x8] sm:$0xff]  ;;  %v483_v48 = vpop.permute.xlu1 %482  ;;  %v4076_v15 = vld [vmem:[#allocation2 + $0x10] sm:$0x3] }
 0x12b   : > { %v537_v49 = vmul.f32 %v535_v40, %v4039_v46  ;;  %503 = vst.msk [vmem:[#allocation2 + $0x31] sm:$0xff] %vm498_vm3, %v483_v48  ;;  %v551_v51 = vmul.f32 %v549_v42, %v4039_v46  ;;  %v565_v55 = vmul.f32 %v563_v47, %v4039_v46  ;;  %v579_v60 = vmul.f32 %v577_v52, %v4039_v46 }
 0x12c   : > { %v593_v63 = vmul.f32 %v591_v57, %v4039_v46  ;;  %v607_v2 = vmul.f32 %v605_v61, %v4039_v46  ;;  %v621_v5 = vmul.f32 %v619_v0, %v4039_v46  ;;  %v635_v6 = vmul.f32 %v633_v3, %v4039_v46 }
 0x12d   : > { %554 = vrot.lane.b32.xlu1 %v550_v45, %s6613_s16  ;;  %542 = vrot.lane.b32.xlu0 %v537_v49, %s6613_s16  ;;  %v718_v25 = vmul.f32 %v716_v17, %v4039_v46  ;;  %v719_v26 = vmul.f32 %v716_v17, %v4076_v15  ;;  %v739_v33 = vmul.f32 %v737_v22, %v4039_v46  ;;  %v723_v34 = vrot.slane %v717_v24, 1 }
 0x12e   : > { %v485_v53 = vpop.permute.xlu1 %484  ;;  %v740_v37 = vmul.f32 %v737_v22, %v4076_v15  ;;  %v744_v39 = vrot.slane %v738_v32, 1  ;;  %v759_v42 = vmul.f32 %v758_v27, %v4031_v41  ;;  %v760_v43 = vmul.f32 %v758_v27, %v4039_v46 }
 0x12f   : > { %504 = vst.msk [vmem:[#allocation2 + $0x39] sm:$0xff] %vm498_vm3, %v485_v53  ;;  %v724_v35 = vrot.slane %v718_v25, 1  ;;  %v726_v36 = vrot.slane %v719_v26, 1  ;;  %v745_v40 = vrot.slane %v739_v33, 1  ;;  %v761_v48 = vmul.f32 %v758_v27, %v4076_v15 }
 0x130   : > { %v747_v47 = vrot.slane %v740_v37, 1  ;;  %v800_v49 = vstv %s3209_s11  ;;  %v780_v52 = vmul.f32 %v779_v38, %v4031_v41  ;;  %v781_v53 = vmul.f32 %v779_v38, %v4039_v46  ;;  %s3232_s11 = sld [smem:[#allocation10 + $0x76]] }
 0x131   : > { %568 = vrot.lane.b32.xlu1 %v564_v50, %s6613_s16  ;;  %556 = vrot.lane.b32.xlu0 %v551_v51, %s6613_s16  ;;  %v725_v44 = vsel %vm654_vm4, %v723_v34, %v724_v35  ;;  %v727_v45 = vsel %vm654_vm4, %v724_v35, %v726_v36  ;;  %v765_v50 = vrot.slane %v759_v42, 1  ;;  %v766_v51 = vrot.slane %v760_v43, 1 }
 0x132   : > { %v487_v56 = vpop.permute.xlu1 %486  ;;  %v782_v57 = vmul.f32 %v779_v38, %v4076_v15  ;;  %v787_v61 = vrot.slane %v781_v53, 1  ;;  %v842_v3 = vstv %s3211_s7  ;;  %v953_v24 = vstv %s3217_s30  ;;  %s3234_s7 = sld [smem:[#allocation10 + $0x2f]]  ;;  %s3241_s30 = sld [smem:[#allocation10 + $0xd]] }
 0x133   : > { %505 = vst.msk [vmem:[#allocation2 + $0x49] sm:$0xff] %vm498_vm3, %v487_v56  ;;  %v768_v56 = vrot.slane %v761_v48, 1  ;;  %v844_v17 = vmul.f32 %v842_v3, %v4039_v46  ;;  %v974_v35 = vstv %s3218_s10  ;;  %v955_v43 = vmul.f32 %v953_v24, %v4039_v46  ;;  %s3236_s10 = sld [smem:[#allocation10 + $0x77]] }
 0x134   : > { %v789_v0 = vrot.slane %v782_v57, 1 }
 0x135   : > { %582 = vrot.lane.b32.xlu1 %v578_v54, %s6613_s16  ;;  %570 = vrot.lane.b32.xlu0 %v565_v55, %s6613_s16  ;;  %v746_v54 = vsel %vm654_vm4, %v744_v39, %v745_v40  ;;  %v748_v55 = vsel %vm654_vm4, %v745_v40, %v747_v47  ;;  %v850_v26 = vrot.slane %v844_v17, 1  ;;  %v954_v39 = vmul.f32 %v953_v24, %v4031_v41 }
 0x136   : > { %v489_v58 = vpop.permute.xlu1 %488 }
 0x137   : > { %506 = vst.msk [vmem:[#allocation2 + $0x51] sm:$0xff] %vm498_vm3, %v489_v58  ;;  %v821_v58 = vstv %s3210_s18  ;;  %v960_v48 = vrot.slane %v954_v39, 2  ;;  %s3233_s18 = sld [smem:[#allocation10 + $0xb]] }
 0x139   : > { %596 = vrot.lane.b32.xlu1 %v592_v59, %s6611_s0  ;;  %584 = vrot.lane.b32.xlu0 %v579_v60, %s6613_s16  ;;  %v767_v59 = vsel %vm654_vm4, %v765_v50, %v766_v51  ;;  %v786_v60 = vrot.slane %v780_v52, 1  ;;  %v976_v50 = vmul.f32 %v974_v35, %v4039_v46  ;;  %v961_v52 = vrot.slane %v955_v43, 2 }
 0x13b   : > { %v982_v57 = vrot.slane %v976_v50, 2 }
 0x13d   : > { %610 = vrot.lane.b32.xlu1 %v606_v62, %s6611_s0  ;;  %598 = vrot.lane.b32.xlu0 %v593_v63, %s6611_s0  ;;  %v801_v62 = vmul.f32 %v800_v49, %v4031_v41  ;;  %v769_v63 = vsel %vm654_vm4, %v766_v51, %v768_v56 }
 0x141   : > { %624 = vrot.lane.b32.xlu1 %v620_v1, %s6611_s0  ;;  %612 = vrot.lane.b32.xlu0 %v607_v2, %s6611_s0  ;;  %v802_v1 = vmul.f32 %v800_v49, %v4039_v46  ;;  %v803_v2 = vmul.f32 %v800_v49, %v4076_v15  ;;  %v975_v49 = vmul.f32 %v974_v35, %v4031_v41 }
 0x143   : > { %v981_v56 = vrot.slane %v975_v49, 2 }
 0x145   : > { %638 = vrot.lane.b32.xlu1 %v634_v4, %s6611_s0  ;;  %626 = vrot.lane.b32.xlu0 %v621_v5, %s6611_s0  ;;  %v788_v4 = vsel %vm654_vm4, %v786_v60, %v787_v61  ;;  %v807_v5 = vrot.slane %v801_v62, 1  ;;  %v962_v60 = vsel %vm891_vm5, %v960_v48, %v961_v52 }
 0x149   : > { %640 = vrot.lane.b32.xlu0 %v635_v6, %s6611_s0  ;;  %v822_v6 = vmul.f32 %v821_v58, %v4031_v41 }
 0x14b   : > { %v407_v7 = vpop.xlane.xlu0 %406 }
 0x14c   : > { %v408_v8 = vrot.slane %v407_v7, 4 }
 0x14e   : > { %v409_v9 = vadd.f32 %v408_v8, %v407_v7  ;;  %v823_v7 = vmul.f32 %v821_v58, %v4039_v46  ;;  %v790_v8 = vsel %vm654_vm4, %v787_v61, %v789_v0  ;;  %v1037_v0 = vstv %s3221_s8  ;;  %s3244_s8 = sld [smem:[#allocation10 + $0x79]] }
 0x14f   : > { %v479_v10 = vpop.permute.xlu0 %478  ;;  %v1039_v17 = vmul.f32 %v1037_v0, %v4039_v46 }
 0x150   : > { %501 = vst.msk [vmem:[#allocation2 + $0x19] sm:$0xff] %vm498_vm3, %v479_v10  ;;  %v410_v11 = vrot.slane %v409_v9, 2  ;;  %v810_v10 = vrot.slane %v803_v2, 1 }
 0x152   : > { %v411_v12 = vadd.f32 %v410_v11, %v409_v9  ;;  %v808_v9 = vrot.slane %v802_v1, 1  ;;  %v824_v11 = vmul.f32 %v821_v58, %v4076_v15 }
 0x154   : > { %v412_v13 = vrot.slane %v411_v12, 1  ;;  %v831_v22 = vrot.slane %v824_v11, 1 }
 0x156   : > { %v413_v16 = vadd.f32 %v412_v13, %v411_v12  ;;  %v863_v12 = vstv %s3212_s29  ;;  %v828_v13 = vrot.slane %v822_v6, 1  ;;  %s3235_s29 = sld [smem:[#allocation10 + $0x53]] }
 0x157   : > { %v4078_v18 = vld [vmem:[#allocation2 + $0x18] sm:$0xff]  ;;  %v4080_v19 = vld [vmem:[#allocation2 + $0x20] sm:$0xff]  ;;  %v864_v27 = vmul.f32 %v863_v12, %v4031_v41  ;;  %v866_v34 = vmul.f32 %v863_v12, %v4076_v15 }
 0x158   : > { %3353 = vpush %v413_v16  ;;  %v1150_v20 = vmul.f32 %v1149_v14, %v4078_v18  ;;  %v1151_v21 = vmul.f32 %v1149_v14, %v4080_v19  ;;  %v1164_v28 = vmul.f32 %v1163_v23, %v4078_v18  ;;  %v1165_v31 = vmul.f32 %v1163_v23, %v4080_v19 }
 0x159   : > { %v829_v14 = vrot.slane %v823_v7, 1  ;;  %v843_v16 = vmul.f32 %v842_v3, %v4031_v41  ;;  %v845_v23 = vmul.f32 %v842_v3, %v4076_v15  ;;  %v870_v37 = vrot.slane %v864_v27, 1 }
 0x15a   : > { %1154 = vrot.lane.b32.xlu1 %v1150_v20, %s6613_s16  ;;  %1156 = vrot.lane.b32.xlu0 %v1151_v21, %s6613_s16  ;;  %v809_v20 = vsel %vm654_vm4, %v807_v5, %v808_v9  ;;  %v811_v21 = vsel %vm654_vm4, %v808_v9, %v810_v10  ;;  %v873_v42 = vrot.slane %v866_v34, 1  ;;  %v983_v5 = vsel %vm891_vm5, %v981_v56, %v982_v57 }
 0x15b   : > { %v849_v25 = vrot.slane %v843_v16, 1  ;;  %v832_v32 = vsel %vm654_vm4, %v829_v14, %v831_v22  ;;  %v852_v33 = vrot.slane %v845_v23, 1  ;;  %v1058_v9 = vstv %s3222_s19  ;;  %s3245_s19 = sld [smem:[#allocation10 + $0xe]] }
 0x15c   : > { %v1045_v27 = vrot.slane %v1039_v17, 2 }
 0x15d   : > { %v851_v36 = vsel %vm654_vm4, %v849_v25, %v850_v26  ;;  %v853_v40 = vsel %vm654_vm4, %v850_v26, %v852_v33  ;;  %v1060_v25 = vmul.f32 %v1058_v9, %v4039_v46 }
 0x15e   : > { %1168 = vrot.lane.b32.xlu1 %v1164_v28, %s6613_s16  ;;  %1170 = vrot.lane.b32.xlu0 %v1165_v31, %s6613_s16  ;;  %v865_v28 = vmul.f32 %v863_v12, %v4039_v46  ;;  %v830_v31 = vsel %vm654_vm4, %v828_v13, %v829_v14  ;;  %v1038_v13 = vmul.f32 %v1037_v0, %v4031_v41 }
 0x15f   : > { %v1066_v34 = vrot.slane %v1060_v25, 2 }
 0x160   : > { %v871_v38 = vrot.slane %v865_v28, 1  ;;  %v1044_v23 = vrot.slane %v1038_v13, 2 }
 0x162   : > { %728 = vrot.lane.b32.xlu1 %v725_v44, %s6613_s16  ;;  %730 = vrot.lane.b32.xlu0 %v727_v45, %s6613_s16  ;;  %v956_v44 = vmul.f32 %v953_v24, %v4076_v15  ;;  %v995_v45 = vstv %s3219_s20  ;;  %v872_v47 = vsel %vm654_vm4, %v870_v37, %v871_v38  ;;  %v874_v51 = vsel %vm654_vm4, %v871_v38, %v873_v42  ;;  %s3242_s20 = sld [smem:[#allocation10 + $0x31]] }
 0x163   : > { %v996_v58 = vmul.f32 %v995_v45, %v4031_v41  ;;  %v1059_v24 = vmul.f32 %v1058_v9, %v4031_v41  ;;  %v1046_v37 = vsel %vm891_vm5, %v1044_v23, %v1045_v27 }
 0x164   : > { %v963_v53 = vrot.slane %v956_v44, 2 }
 0x165   : > { %v1002_v1 = vrot.slane %v996_v58, 2  ;;  %v1065_v33 = vrot.slane %v1059_v24, 2 }
 0x166   : > { %749 = vrot.lane.b32.xlu1 %v746_v54, %s6613_s16  ;;  %751 = vrot.lane.b32.xlu0 %v748_v55, %s6613_s16  ;;  %v977_v54 = vmul.f32 %v974_v35, %v4076_v15  ;;  %v1016_v55 = vstv %s3220_s27  ;;  %v964_v61 = vsel %vm891_vm5, %v961_v52, %v963_v53  ;;  %s3243_s27 = sld [smem:[#allocation10 + $0x55]] }
 0x167   : > { %v1017_v3 = vmul.f32 %v1016_v55, %v4031_v41  ;;  %v1067_v42 = vsel %vm891_vm5, %v1065_v33, %v1066_v34 }
 0x168   : > { %v984_v62 = vrot.slane %v977_v54, 2  ;;  %v1350_v23 = vstv %s3242_s20  ;;  %s3259_s20 = sld [smem:[#allocation10 + $0x59]] }
 0x169   : > { %v1023_v11 = vrot.slane %v1017_v3, 2  ;;  %v1351_v33 = vmul.f32 %v1350_v23, %v4078_v18 }
 0x16a   : > { %770 = vrot.lane.b32.xlu1 %v767_v59, %s6613_s16  ;;  %772 = vrot.lane.b32.xlu0 %v769_v63, %s6613_s16  ;;  %v997_v59 = vmul.f32 %v995_v45, %v4039_v46  ;;  %v998_v63 = vmul.f32 %v995_v45, %v4076_v15  ;;  %v985_v6 = vsel %vm891_vm5, %v982_v57, %v984_v62 }
 0x16c   : > { %v1003_v2 = vrot.slane %v997_v59, 2  ;;  %v1005_v7 = vrot.slane %v998_v63, 2  ;;  %v1371_v24 = vstv %s3243_s27  ;;  %s3260_s27 = sld [smem:[#allocation10 + $0x7d]] }
 0x16e   : > { %791 = vrot.lane.b32.xlu1 %v788_v4, %s6613_s16  ;;  %793 = vrot.lane.b32.xlu0 %v790_v8, %s6613_s16  ;;  %v1018_v4 = vmul.f32 %v1016_v55, %v4039_v46  ;;  %v1019_v8 = vmul.f32 %v1016_v55, %v4076_v15  ;;  %v1004_v10 = vsel %vm891_vm5, %v1002_v1, %v1003_v2  ;;  %v1205_v1 = vstv %s3233_s18  ;;  %s3254_s18 = sld [smem:[#allocation10 + $0x34]] }
 0x16f   : > { %v1006_v14 = vsel %vm891_vm5, %v1003_v2, %v1005_v7  ;;  %v1206_v2 = vmul.f32 %v1205_v1, %v4078_v18  ;;  %v1207_v3 = vmul.f32 %v1205_v1, %v4080_v19 }
 0x170   : > { %v1024_v12 = vrot.slane %v1018_v4, 2  ;;  %v1026_v16 = vrot.slane %v1019_v8, 2  ;;  %v1219_v4 = vstv %s3234_s7  ;;  %s3255_s7 = sld [smem:[#allocation10 + $0x58]] }
 0x171   : > { %v1220_v7 = vmul.f32 %v1219_v4, %v4078_v18  ;;  %v1221_v8 = vmul.f32 %v1219_v4, %v4080_v19 }
 0x172   : > { %812 = vrot.lane.b32.xlu1 %v809_v20, %s6611_s0  ;;  %814 = vrot.lane.b32.xlu0 %v811_v21, %s6611_s0  ;;  %v1040_v20 = vmul.f32 %v1037_v0, %v4076_v15  ;;  %v1079_v21 = vstv %s3223_s13  ;;  %v1025_v22 = vsel %vm891_vm5, %v1023_v11, %v1024_v12  ;;  %v1027_v26 = vsel %vm891_vm5, %v1024_v12, %v1026_v16  ;;  %s3246_s13 = sld [smem:[#allocation10 + $0x32]] }
 0x173   : > { %v1080_v35 = vmul.f32 %v1079_v21, %v4031_v41  ;;  %v1329_v11 = vstv %s3241_s30  ;;  %s3257_s30 = sld [smem:[#allocation10 + $0x11]] }
 0x174   : > { %v1047_v28 = vrot.slane %v1040_v20, 2  ;;  %v1247_v20 = vstv %s3236_s10  ;;  %s3258_s10 = sld [smem:[#allocation10 + $0x35]] }
 0x175   : > { %v1086_v43 = vrot.slane %v1080_v35, 2  ;;  %v1248_v25 = vmul.f32 %v1247_v20, %v4078_v18 }
 0x176   : > { %833 = vrot.lane.b32.xlu1 %v830_v31, %s6611_s0  ;;  %835 = vrot.lane.b32.xlu0 %v832_v32, %s6611_s0  ;;  %v1061_v31 = vmul.f32 %v1058_v9, %v4076_v15  ;;  %v1100_v32 = vstv %s3224_s26  ;;  %v1048_v38 = vsel %vm891_vm5, %v1045_v27, %v1047_v28  ;;  %v4228_v9 = vld [vmem:[#allocation2 + $0x28] sm:$0x3]  ;;  %s3247_s26 = sld [smem:[#allocation10 + $0x56]] }
 0x177   : > { %v1101_v45 = vmul.f32 %v1100_v32, %v4031_v41  ;;  %v1102_v49 = vmul.f32 %v1100_v32, %v4039_v46  ;;  %v1103_v50 = vmul.f32 %v1100_v32, %v4076_v15  ;;  %v1332_v17 = vmul.f32 %v1329_v11, %v4228_v9 }
 0x178   : > { %v1068_v39 = vrot.slane %v1061_v31, 2  ;;  %v1353_v28 = vmul.f32 %v1350_v23, %v4228_v9 }
 0x179   : > { %v1107_v53 = vrot.slane %v1101_v45, 2  ;;  %v1108_v54 = vrot.slane %v1102_v49, 2  ;;  %v1110_v55 = vrot.slane %v1103_v50, 2  ;;  %v1339_v27 = vrot.slane %v1332_v17, 1 }
 0x17a   : > { %854 = vrot.lane.b32.xlu1 %v851_v36, %s6611_s0  ;;  %856 = vrot.lane.b32.xlu0 %v853_v40, %s6611_s0  ;;  %v1081_v36 = vmul.f32 %v1079_v21, %v4039_v46  ;;  %v1082_v40 = vmul.f32 %v1079_v21, %v4076_v15  ;;  %v1177_v15 = vstv %s3231_s15  ;;  %v1330_v21 = vmul.f32 %v1329_v11, %v4078_v18  ;;  %s3248_s15 = sld [smem:[#allocation10 + $0x7a]] }
 0x17b   : > { %v1109_v41 = vsel %vm891_vm5, %v1107_v53, %v1108_v54  ;;  %v1111_v46 = vsel %vm891_vm5, %v1108_v54, %v1110_v55  ;;  %v1178_v58 = vmul.f32 %v1177_v15, %v4078_v18  ;;  %v1179_v59 = vmul.f32 %v1177_v15, %v4080_v19 }
 0x17c   : > { %v1087_v44 = vrot.slane %v1081_v36, 2  ;;  %v1089_v48 = vrot.slane %v1082_v40, 2  ;;  %v1336_v31 = vrot.slane %v1330_v21, 1  ;;  %v1373_v40 = vmul.f32 %v1371_v24, %v4080_v19 }
 0x17d   : > { %v1357_v45 = vrot.slane %v1351_v33, 1 }
 0x17e   : > { %875 = vrot.lane.b32.xlu1 %v872_v47, %s6611_s0  ;;  %877 = vrot.lane.b32.xlu0 %v874_v51, %s6611_s0  ;;  %v1069_v47 = vsel %vm891_vm5, %v1066_v34, %v1068_v39  ;;  %v1088_v51 = vsel %vm891_vm5, %v1086_v43, %v1087_v44  ;;  %v1090_v52 = vsel %vm891_vm5, %v1087_v44, %v1089_v48  ;;  %v1413_v48 = vstv %s3245_s19  ;;  %s3266_s19 = sld [smem:[#allocation10 + $0x37]] }
 0x17f   : > { %v1352_v34 = vmul.f32 %v1350_v23, %v4080_v19  ;;  %v1372_v39 = vmul.f32 %v1371_v24, %v4078_v18  ;;  %v1379_v15 = vrot.slane %v1373_v40, 1  ;;  %v1415_v4 = vmul.f32 %v1413_v48, %v4080_v19 }
 0x181   : > { %v1421_v21 = vrot.slane %v1415_v4, 1 }
 0x182   : > { %965 = vrot.lane.b32.xlu1 %v962_v60, %s6613_s16  ;;  %967 = vrot.lane.b32.xlu0 %v964_v61, %s6613_s16  ;;  %v1191_v60 = vstv %s3232_s11  ;;  %s3253_s11 = sld [smem:[#allocation10 + $0x10]] }
 0x183   : > { %v1192_v63 = vmul.f32 %v1191_v60, %v4078_v18  ;;  %v1193_v0 = vmul.f32 %v1191_v60, %v4080_v19 }
 0x186   : > { %986 = vrot.lane.b32.xlu1 %v983_v5, %s6613_s16  ;;  %988 = vrot.lane.b32.xlu0 %v985_v6, %s6613_s16 }
 0x189   : > { %s4511_s21 = spop %3353 }
 0x18a   : > { %1007 = vrot.lane.b32.xlu1 %v1004_v10, %s6613_s16  ;;  %1009 = vrot.lane.b32.xlu0 %v1006_v14, %s6613_s16  ;;  %v1233_v10 = vstv %s3235_s29  ;;  %s3256_s29 = sld [smem:[#allocation10 + $0x7c]] }
 0x18b   : > { %v1234_v14 = vmul.f32 %v1233_v10, %v4078_v18  ;;  %v1235_v16 = vmul.f32 %v1233_v10, %v4080_v19  ;;  %v1455_v10 = vstv %s3247_s26  ;;  %s4426_s26 = sld [smem:[#allocation10 + $0x7f]] }
 0x18e   : > { %1028 = vrot.lane.b32.xlu1 %v1025_v22, %s6613_s16  ;;  %1030 = vrot.lane.b32.xlu0 %v1027_v26, %s6613_s16  ;;  %v1331_v22 = vmul.f32 %v1329_v11, %v4080_v19  ;;  %v1249_v26 = vmul.f32 %v1247_v20, %v4080_v19 }
 0x190   : > { %v1337_v32 = vrot.slane %v1331_v22, 1 }
 0x192   : > { %1049 = vrot.lane.b32.xlu1 %v1046_v37, %s6611_s0  ;;  %1051 = vrot.lane.b32.xlu0 %v1048_v38, %s6611_s0  ;;  %v1392_v37 = vstv %s3244_s8  ;;  %v1360_v38 = vrot.slane %v1353_v28, 1  ;;  %v1338_v43 = vsel %vm654_vm4, %v1336_v31, %v1337_v32  ;;  %v1340_v44 = vsel %vm654_vm4, %v1337_v32, %v1339_v27  ;;  %s3265_s8 = sld [smem:[#allocation10 + $0x13]] }
 0x193   : > { %v1394_v53 = vmul.f32 %v1392_v37, %v4080_v19  ;;  %v1395_v54 = vmul.f32 %v1392_v37, %v4228_v9  ;;  %v1456_v28 = vmul.f32 %v1455_v10, %v4078_v18  ;;  %v1457_v31 = vmul.f32 %v1455_v10, %v4080_v19 }
 0x194   : > { %v1458_v32 = vmul.f32 %v1455_v10, %v4228_v9 }
 0x195   : > { %v1400_v60 = vrot.slane %v1394_v53, 1  ;;  %v1463_v53 = vrot.slane %v1457_v31, 1 }
 0x196   : > { %1070 = vrot.lane.b32.xlu1 %v1067_v42, %s6611_s0  ;;  %1072 = vrot.lane.b32.xlu0 %v1069_v47, %s6611_s0  ;;  %v1374_v42 = vmul.f32 %v1371_v24, %v4228_v9  ;;  %v1358_v47 = vrot.slane %v1352_v34, 1  ;;  %v1476_v24 = vstv %s3248_s15  ;;  %s4430_s15 = sld [smem:[#allocation10]] }
 0x198   : > { %v1359_v55 = vsel %vm654_vm4, %v1357_v45, %v1358_v47  ;;  %v1478_v45 = vmul.f32 %v1476_v24, %v4080_v19 }
 0x19a   : > { %1091 = vrot.lane.b32.xlu1 %v1088_v51, %s6611_s0  ;;  %1093 = vrot.lane.b32.xlu0 %v1090_v52, %s6611_s0  ;;  %v1381_v51 = vrot.slane %v1374_v42, 1  ;;  %v1393_v52 = vmul.f32 %v1392_v37, %v4078_v18 }
 0x19b   : > { %v4200_v56 = vpop.permute.xlu1 %540 }
 0x19e   : > { %1112 = vrot.lane.b32.xlu1 %v1109_v41, %s6611_s0  ;;  %1114 = vrot.lane.b32.xlu0 %v1111_v46, %s6611_s0  ;;  %v1361_v41 = vsel %vm654_vm4, %v1358_v47, %v1360_v38  ;;  %v1378_v46 = vrot.slane %v1372_v39, 1  ;;  %v1565_v39 = vstv %s3253_s11  ;;  %v1479_v47 = vmul.f32 %v1476_v24, %v4228_v9  ;;  %s4438_s11 = sld [smem:[#allocation10 + $0x24]] }
 0x19f   : > { %v4204_v57 = vpop.permute.xlu0 %542  ;;  %v4210_v61 = vpop.permute.xlu1 %554 }
 0x1a0   : > { %6728 = vst [vmem:[#allocation29_spill] sm:$0xff] %v4204_v57  ;;  %v1380_v1 = vsel %vm654_vm4, %v1378_v46, %v1379_v15 }
 0x1a2   : > { %1182 = vrot.lane.b32.xlu1 %v1178_v58, %s6613_s16  ;;  %1184 = vrot.lane.b32.xlu0 %v1179_v59, %s6613_s16  ;;  %v1434_v58 = vstv %s3246_s13  ;;  %v1399_v59 = vrot.slane %v1393_v52, 1  ;;  %v1462_v52 = vrot.slane %v1456_v28, 1  ;;  %s3267_s13 = sld [smem:[#allocation10 + $0x5b]] }
 0x1a3   : > { %v4212_v62 = vpop.permute.xlu0 %556  ;;  %v4220_v5 = vpop.permute.xlu1 %568  ;;  %v1437_v17 = vmul.f32 %v1434_v58, %v4228_v9  ;;  %v1435_v22 = vmul.f32 %v1434_v58, %v4078_v18  ;;  %v1436_v23 = vmul.f32 %v1434_v58, %v4080_v19  ;;  %v1486_v58 = vrot.slane %v1479_v47, 1 }
 0x1a4   : > { %6729 = vst [vmem:[#allocation30_spill] sm:$0xff] %v4212_v62  ;;  %v1401_v11 = vsel %vm654_vm4, %v1399_v59, %v1400_v60  ;;  %v1568_v59 = vmul.f32 %v1565_v39, %v4228_v9 }
 0x1a5   : > { %v1444_v27 = vrot.slane %v1437_v17, 1  ;;  %v1441_v37 = vrot.slane %v1435_v22, 1  ;;  %v1442_v38 = vrot.slane %v1436_v23, 1  ;;  %v1628_v23 = vstv %s3256_s29  ;;  %s4444_s29 = sld [smem:[#allocation10 + $0x6c]] }
 0x1a6   : > { %1196 = vrot.lane.b32.xlu1 %v1192_v63, %s6613_s16  ;;  %1198 = vrot.lane.b32.xlu0 %v1193_v0, %s6613_s16  ;;  %v1402_v63 = vrot.slane %v1395_v54, 1  ;;  %v1416_v0 = vmul.f32 %v1413_v48, %v4228_v9  ;;  %v1586_v54 = vstv %s3254_s18  ;;  %s4440_s18 = sld [smem:[#allocation10 + $0x14]] }
 0x1a7   : > { %v4222_v6 = vpop.permute.xlu0 %570  ;;  %v4232_v12 = vpop.permute.xlu1 %582  ;;  %v1589_v22 = vmul.f32 %v1586_v54, %v4228_v9 }
 0x1a8   : > { %6730 = vst [vmem:[#allocation31_spill] sm:$0xff] %v4222_v6  ;;  %v6776_v6 = vstv %s4509_s28 }
 0x1aa   : > { %1210 = vrot.lane.b32.xlu1 %v1206_v2, %s6611_s0  ;;  %1212 = vrot.lane.b32.xlu0 %v1207_v3, %s6611_s0  ;;  %v1382_v2 = vsel %vm654_vm4, %v1379_v15, %v1381_v51  ;;  %v1414_v3 = vmul.f32 %v1413_v48, %v4078_v18  ;;  %v1443_v48 = vsel %vm654_vm4, %v1441_v37, %v1442_v38  ;;  %v1484_v15 = vrot.slane %v1478_v45, 1 }
 0x1ab   : > { %v4234_v13 = vpop.permute.xlu0 %584  ;;  %v4248_v35 = vpop.permute.xlu1 %596  ;;  %v1445_v51 = vsel %vm654_vm4, %v1442_v38, %v1444_v27  ;;  %v1596_v38 = vrot.slane %v1589_v22, 2 }
 0x1ac   : > { %6731 = vst [vmem:[#allocation32_spill] sm:$0xff] %v4234_v13  ;;  %v1420_v20 = vrot.slane %v1414_v3, 1  ;;  %v1487_v17 = vsel %vm654_vm4, %v1484_v15, %v1486_v58  ;;  %v1670_v58 = vstv %s3258_s10  ;;  %s4450_s10 = sld [smem:[#allocation10 + $0x27]] }
 0x1ae   : > { %1224 = vrot.lane.b32.xlu1 %v1220_v7, %s6611_s0  ;;  %1226 = vrot.lane.b32.xlu0 %v1221_v8, %s6611_s0  ;;  %v1422_v33 = vsel %vm654_vm4, %v1420_v20, %v1421_v21 }
 0x1af   : > { %v4250_v36 = vpop.permute.xlu0 %598  ;;  %v4261_v49 = vpop.permute.xlu1 %610 }
 0x1b0   : > { %6732 = vst [vmem:[#allocation33_spill] sm:$0xff] %v4250_v36 }
 0x1b2   : > { %1238 = vrot.lane.b32.xlu1 %v1234_v14, %s6611_s0  ;;  %1240 = vrot.lane.b32.xlu0 %v1235_v16, %s6611_s0  ;;  %v1403_v14 = vsel %vm654_vm4, %v1400_v60, %v1402_v63  ;;  %v1423_v16 = vrot.slane %v1416_v0, 1  ;;  %v1464_v60 = vsel %vm654_vm4, %v1462_v52, %v1463_v53  ;;  %v1566_v0 = vmul.f32 %v1565_v39, %v4078_v18 }
 0x1b3   : > { %v4263_v50 = vpop.permute.xlu0 %612  ;;  %v4277_v7 = vpop.permute.xlu1 %624  ;;  %v1629_v52 = vmul.f32 %v1628_v23, %v4078_v18 }
 0x1b4   : > { %6733 = vst [vmem:[#allocation34_spill] sm:$0xff] %v4263_v50  ;;  %v1424_v34 = vsel %vm654_vm4, %v1421_v21, %v1423_v16  ;;  %v1588_v16 = vmul.f32 %v1586_v54, %v4080_v19  ;;  %v1572_v20 = vrot.slane %v1566_v0, 2 }
 0x1b5   : > { %v1635_v0 = vrot.slane %v1629_v52, 2 }
 0x1b6   : > { %1252 = vrot.lane.b32.xlu1 %v1248_v25, %s6611_s0  ;;  %1254 = vrot.lane.b32.xlu0 %v1249_v26, %s6611_s0  ;;  %v1594_v31 = vrot.slane %v1588_v16, 2 }
 0x1b7   : > { %v4279_v8 = vpop.permute.xlu0 %626  ;;  %v4290_v25 = vpop.permute.xlu1 %638 }
 0x1b8   : > { %6734 = vst [vmem:[#allocation35_spill] sm:$0xff] %v4279_v8 }
 0x1ba   : > { %1341 = vrot.lane.b32.xlu1 %v1338_v43, %s6613_s16  ;;  %1343 = vrot.lane.b32.xlu0 %v1340_v44, %s6613_s16  ;;  %v1465_v43 = vrot.slane %v1458_v32, 1  ;;  %v1477_v44 = vmul.f32 %v1476_v24, %v4078_v18 }
 0x1bb   : > { %v4292_v26 = vpop.permute.xlu0 %640 }
 0x1bc   : > { %6735 = vst [vmem:[#allocation36_spill] sm:$0xff] %v4292_v26  ;;  %v1483_v46 = vrot.slane %v1477_v44, 1  ;;  %v1466_v63 = vsel %vm654_vm4, %v1463_v53, %v1465_v43  ;;  %v1649_v43 = vstv %s3257_s30  ;;  %v1597_v53 = vsel %vm891_vm5, %v1594_v31, %v1596_v38  ;;  %s4448_s30 = sld [smem:[#allocation10 + $0x3]] }
 0x1bd   : > { %v1652_v16 = vmul.f32 %v1649_v43, %v4228_v9 }
 0x1be   : > { %1362 = vrot.lane.b32.xlu1 %v1359_v55, %s6613_s16  ;;  %1364 = vrot.lane.b32.xlu0 %v1361_v41, %s6613_s16  ;;  %v1485_v10 = vsel %vm654_vm4, %v1483_v46, %v1484_v15  ;;  %v1630_v46 = vmul.f32 %v1628_v23, %v4080_v19  ;;  %v1631_v15 = vmul.f32 %v1628_v23, %v4228_v9 }
 0x1bf   : > { %v1673_v23 = vmul.f32 %v1670_v58, %v4228_v9 }
 0x1c2   : > { %1383 = vrot.lane.b32.xlu1 %v1380_v1, %s6613_s16  ;;  %1385 = vrot.lane.b32.xlu0 %v1382_v2, %s6613_s16  ;;  %v1567_v1 = vmul.f32 %v1565_v39, %v4080_v19  ;;  %v1607_v2 = vstv %s3255_s7  ;;  %s4442_s7 = sld [smem:[#allocation10 + $0x48]] }
 0x1c3   : > { %v1608_v32 = vmul.f32 %v1607_v2, %v4078_v18  ;;  %v1610_v39 = vmul.f32 %v1607_v2, %v4228_v9 }
 0x1c4   : > { %v1573_v21 = vrot.slane %v1567_v1, 2  ;;  %v1650_v1 = vmul.f32 %v1649_v43, %v4078_v18 }
 0x1c6   : > { %1404 = vrot.lane.b32.xlu1 %v1401_v11, %s6613_s16  ;;  %1406 = vrot.lane.b32.xlu0 %v1403_v14, %s6613_s16  ;;  %v1575_v11 = vrot.slane %v1568_v59, 2  ;;  %v1587_v14 = vmul.f32 %v1586_v54, %v4078_v18  ;;  %v1617_v54 = vrot.slane %v1610_v39, 2  ;;  %v1656_v22 = vrot.slane %v1650_v1, 2 }
 0x1c8   : > { %v1593_v28 = vrot.slane %v1587_v14, 2  ;;  %v1576_v37 = vsel %vm891_vm5, %v1573_v21, %v1575_v11  ;;  %v1636_v11 = vrot.slane %v1630_v46, 2  ;;  %v1638_v14 = vrot.slane %v1631_v15, 2 }
 0x1c9   : > { %v1712_v15 = vstv %s3260_s27  ;;  %s4454_s27 = sld [smem:[#allocation10 + $0x6f]] }
 0x1ca   : > { %1425 = vrot.lane.b32.xlu1 %v1422_v33, %s6611_s0  ;;  %1427 = vrot.lane.b32.xlu0 %v1424_v34, %s6611_s0  ;;  %v1609_v33 = vmul.f32 %v1607_v2, %v4080_v19  ;;  %v1574_v34 = vsel %vm891_vm5, %v1572_v20, %v1573_v21  ;;  %v1595_v47 = vsel %vm891_vm5, %v1593_v28, %v1594_v31  ;;  %v1691_v31 = vstv %s3259_s20  ;;  %s4452_s20 = sld [smem:[#allocation10 + $0x4b]] }
 0x1cb   : > { %v1651_v2 = vmul.f32 %v1649_v43, %v4080_v19  ;;  %v1671_v28 = vmul.f32 %v1670_v58, %v4078_v18  ;;  %v1694_v52 = vmul.f32 %v1691_v31, %v4228_v9  ;;  %v1692_v46 = vmul.f32 %v1691_v31, %v4078_v18 }
 0x1cc   : > { %v4301_v40 = vpop.permute.xlu0 %1156  ;;  %v4303_v42 = vpop.permute.xlu1 %1154 }
 0x1cd   : > { %6736 = vst [vmem:[#allocation37_spill] sm:$0xff] %v4301_v40  ;;  %6737 = vst [vmem:[#allocation38_spill] sm:$0xff] %v4303_v42 }
 0x1ce   : > { %1446 = vrot.lane.b32.xlu1 %v1443_v48, %s6611_s0  ;;  %1448 = vrot.lane.b32.xlu0 %v1445_v51, %s6611_s0  ;;  %v1614_v48 = vrot.slane %v1608_v32, 2  ;;  %v1615_v51 = vrot.slane %v1609_v33, 2  ;;  %v1637_v32 = vsel %vm891_vm5, %v1635_v0, %v1636_v11  ;;  %v1639_v33 = vsel %vm891_vm5, %v1636_v11, %v1638_v14 }
 0x1cf   : > { %v1698_v11 = vrot.slane %v1692_v46, 2  ;;  %v1714_v14 = vmul.f32 %v1712_v15, %v4080_v19 }
 0x1d0   : > { %v4312_v55 = vpop.permute.xlu0 %1170  ;;  %v4314_v41 = vpop.permute.xlu1 %1168 }
 0x1d1   : > { %6738 = vst [vmem:[#allocation39_spill] sm:$0xff] %v4312_v55  ;;  %6739 = vst [vmem:[#allocation40_spill] sm:$0xff] %v4314_v41 }
 0x1d2   : > { %1467 = vrot.lane.b32.xlu1 %v1464_v60, %s6611_s0  ;;  %1469 = vrot.lane.b32.xlu0 %v1466_v63, %s6611_s0  ;;  %v1616_v63 = vsel %vm891_vm5, %v1614_v48, %v1615_v51  ;;  %v1677_v48 = vrot.slane %v1671_v28, 2 }
 0x1d4   : > { %v4323_v3 = vpop.permute.xlu0 %730  ;;  %v4325_v4 = vpop.permute.xlu1 %728 }
 0x1d5   : > { %6740 = vst [vmem:[#allocation41_spill] sm:$0xff] %v4323_v3  ;;  %v4571_v3 = vld [vmem:[#allocation2 + $0x10] sm:$0x3] }
 0x1d6   : > { %1488 = vrot.lane.b32.xlu1 %v1485_v10, %s6611_s0  ;;  %1490 = vrot.lane.b32.xlu0 %v1487_v17, %s6611_s0  ;;  %v1618_v10 = vsel %vm891_vm5, %v1615_v51, %v1617_v54  ;;  %v1672_v17 = vmul.f32 %v1670_v58, %v4080_v19  ;;  %v1693_v51 = vmul.f32 %v1691_v31, %v4080_v19 }
 0x1d8   : > { %v4334_v24 = vpop.permute.xlu0 %751  ;;  %v4336_v27 = vpop.permute.xlu1 %749  ;;  %v1678_v38 = vrot.slane %v1672_v17, 2  ;;  %v1713_v17 = vmul.f32 %v1712_v15, %v4078_v18 }
 0x1d9   : > { %6741 = vst [vmem:[#allocation42_spill] sm:$0xff] %v4334_v24 }
 0x1da   : > { %1577 = vrot.lane.b32.xlu1 %v1574_v34, %s6613_s16  ;;  %1579 = vrot.lane.b32.xlu0 %v1576_v37, %s6613_s16  ;;  %v1657_v34 = vrot.slane %v1651_v2, 2  ;;  %v1659_v37 = vrot.slane %v1652_v16, 2  ;;  %v1679_v1 = vsel %vm891_vm5, %v1677_v48, %v1678_v38  ;;  %v1699_v2 = vrot.slane %v1693_v51, 2 }
 0x1db   : > { %v1715_v16 = vmul.f32 %v1712_v15, %v4228_v9  ;;  %v1719_v19 = vrot.slane %v1713_v17, 2  ;;  %v1761_v51 = vstv %s3265_s8  ;;  %v1775_v15 = vstv %s3266_s19  ;;  %s4462_s8 = sld [smem:[#allocation10 + $0x6]]  ;;  %s4465_s19 = sld [smem:[#allocation10 + $0x38]] }
 0x1dc   : > { %v4345_v44 = vpop.permute.xlu0 %772  ;;  %v4347_v45 = vpop.permute.xlu1 %770  ;;  %v1660_v54 = vsel %vm891_vm5, %v1657_v34, %v1659_v37  ;;  %v1700_v31 = vsel %vm891_vm5, %v1698_v11, %v1699_v2  ;;  %v4412_v37 = vld [vmem:[#allocation2 + $0x30] sm:$0xff]  ;;  %v1789_v11 = vstv %s3267_s13  ;;  %s4467_s13 = sld [smem:[#allocation10 + $0x2a]] }
 0x1dd   : > { %6742 = vst [vmem:[#allocation43_spill] sm:$0xff] %v4345_v44  ;;  %6743 = vst [vmem:[#allocation44_spill] sm:$0xff] %v4347_v45  ;;  %v1762_v46 = vmul.f32 %v1761_v51, %v4412_v37 }
 0x1de   : > { %1598 = vrot.lane.b32.xlu1 %v1595_v47, %s6613_s16  ;;  %1600 = vrot.lane.b32.xlu0 %v1597_v53, %s6613_s16  ;;  %v1680_v47 = vrot.slane %v1673_v23, 2  ;;  %v1658_v53 = vsel %vm891_vm5, %v1656_v22, %v1657_v34 }
 0x1e0   : > { %v4356_v59 = vpop.permute.xlu0 %793  ;;  %v4358_v60 = vpop.permute.xlu1 %791  ;;  %v1681_v0 = vsel %vm891_vm5, %v1678_v38, %v1680_v47  ;;  %v4414_v38 = vld [vmem:[#allocation2 + $0x38] sm:$0xff] }
 0x1e1   : > { %6744 = vst [vmem:[#allocation45_spill] sm:$0xff] %v4356_v59  ;;  %v1791_v17 = vmul.f32 %v1789_v11, %v4414_v38 }
 0x1e2   : > { %1619 = vrot.lane.b32.xlu1 %v1616_v63, %s6613_s16  ;;  %1621 = vrot.lane.b32.xlu0 %v1618_v10, %s6613_s16  ;;  %v1701_v10 = vrot.slane %v1694_v52, 2 }
 0x1e4   : > { %v4368_v20 = vpop.permute.xlu0 %814  ;;  %v4370_v21 = vpop.permute.xlu1 %812  ;;  %v1702_v28 = vsel %vm891_vm5, %v1699_v2, %v1701_v10  ;;  %v1777_v2 = vmul.f32 %v1775_v15, %v4414_v38  ;;  %v1776_v10 = vmul.f32 %v1775_v15, %v4412_v37  ;;  %v517_v15 = vstv %s4438_s11  ;;  %s4547_s11 = sld [smem:[#allocation10 + $0x5e]] }
 0x1e5   : > { %6745 = vst [vmem:[#allocation46_spill] sm:$0xff] %v4368_v20  ;;  %v4560_v20 = vstv %s4496_s24  ;;  %s4657_s24 = sld [smem:[#allocation10 + $0x3b]] }
 0x1e6   : > { %1640 = vrot.lane.b32.xlu1 %v1637_v32, %s6613_s16  ;;  %1642 = vrot.lane.b32.xlu0 %v1639_v33, %s6613_s16  ;;  %v1720_v32 = vrot.slane %v1714_v14, 2  ;;  %v1722_v33 = vrot.slane %v1715_v16, 2 }
 0x1e8   : > { %v4378_v39 = vpop.permute.xlu0 %835  ;;  %v4380_v43 = vpop.permute.xlu1 %833  ;;  %v1723_v47 = vsel %vm891_vm5, %v1720_v32, %v1722_v33  ;;  %v1721_v48 = vsel %vm891_vm5, %v1719_v19, %v1720_v32 }
 0x1e9   : > { %6746 = vst [vmem:[#allocation47_spill] sm:$0xff] %v4378_v39 }
 0x1ea   : > { %1661 = vrot.lane.b32.xlu1 %v1658_v53, %s6611_s0  ;;  %1663 = vrot.lane.b32.xlu0 %v1660_v54, %s6611_s0  ;;  %v1763_v54 = vmul.f32 %v1761_v51, %v4414_v38 }
 0x1ec   : > { %v4389_v58 = vpop.permute.xlu0 %856  ;;  %v4391_v63 = vpop.permute.xlu1 %854 }
 0x1ed   : > { %6747 = vst [vmem:[#allocation48_spill] sm:$0xff] %v4389_v58  ;;  %6748 = vst [vmem:[#allocation49_spill] sm:$0xff] %v4391_v63  ;;  %v4549_v58 = vld [vmem:[#allocation2] sm:$0xff] }
 0x1ee   : > { %1684 = vrot.lane.b32.xlu0 %v1681_v0, %s6611_s0  ;;  %1682 = vrot.lane.b32.xlu1 %v1679_v1, %s6611_s0  ;;  %v4568_v44 = vmul.f32 %v4549_v58, %v517_v15 }
 0x1f0   : > { %v4400_v22 = vpop.permute.xlu0 %877  ;;  %v4402_v23 = vpop.permute.xlu1 %875 }
 0x1f1   : > { %6749 = vst [vmem:[#allocation50_spill] sm:$0xff] %v4400_v22  ;;  %v4545_v22 = vstv %s4491_s23  ;;  %s4643_s23 = sld [smem:[#allocation10 + $0x30]] }
 0x1f2   : > { %1705 = vrot.lane.b32.xlu0 %v1702_v28, %s6611_s0  ;;  %1703 = vrot.lane.b32.xlu1 %v1700_v31, %s6611_s0  ;;  %v1790_v28 = vmul.f32 %v1789_v11, %v4412_v37  ;;  %v6624_v31 = vstv %s4426_s26  ;;  %v529_v11 = vstv %s4444_s29  ;;  %s4743_s29 = sld [smem:[#allocation10 + $0x83]] }
 0x1f3   : > { %v1804_v19 = vmul.f32 %v6624_v31, %v4412_v37  ;;  %v4524_v31 = vstv %s4462_s8  ;;  %s4863_s8 = sld [smem:[#allocation10 + $0xf]] }
 0x1f4   : > { %v4408_v18 = vpop.permute.xlu0 %967  ;;  %v4410_v34 = vpop.permute.xlu1 %965 }
 0x1f5   : > { %6750 = vst [vmem:[#allocation51_spill] sm:$0xff] %v4408_v18  ;;  %6751 = vst [vmem:[#allocation52_spill] sm:$0xff] %v4410_v34 }
 0x1f6   : > { %1726 = vrot.lane.b32.xlu0 %v1723_v47, %s6611_s0  ;;  %1724 = vrot.lane.b32.xlu1 %v1721_v48, %s6611_s0  ;;  %s4469_s0 = sld [smem:[#allocation10 + $0x4e]]  ;;  %v6623_v47 = vstv %s4440_s18 }
 0x1f8   : > { %v4420_v52 = vpop.permute.xlu0 %988  ;;  %v4422_v53 = vpop.permute.xlu1 %986 }
 0x1f9   : > { %6752 = vst [vmem:[#allocation53_spill] sm:$0xff] %v4420_v52  ;;  %6753 = vst [vmem:[#allocation54_spill] sm:$0xff] %v4422_v53  ;;  %v415_v52 = vstv %s4511_s21  ;;  %s4638_s21 = sld [smem:[#allocation10 + $0x17]] }
 0x1fa   : > { %1768 = vrot.lane.b32.xlu0 %v1763_v54, %s6613_s16  ;;  %1766 = vrot.lane.b32.xlu1 %v1762_v46, %s6613_s16  ;;  %v1818_v54 = vmul.f32 %v6623_v47, %v4412_v37  ;;  %v511_v46 = vstv %s4430_s15  ;;  %s4517_s15 = sld [smem:[#allocation10 + $0x3a]]  ;;  %v4521_v47 = vstv %s4454_s27  ;;  %v417_v40 = vmul.f32 0.00390625, %v415_v52  ;;  %s4861_s27 = sld [smem:[#allocation10 + $0x61]] }
 0x1fb   : > { %v4552_v39 = vmul.f32 %v4549_v58, %v511_v46  ;;  %v4593_v52 = vmul.f32 %v4545_v22, %v4414_v38 }
 0x1fc   : > { %v4432_v0 = vpop.permute.xlu0 %1009  ;;  %v4434_v1 = vpop.permute.xlu1 %1007  ;;  %v4530_v55 = vstv %s4469_s0  ;;  %v4609_v53 = vsub.f32 %v4013_v29, %v417_v40  ;;  %s4683_s0 = sld [smem:[#allocation10 + $0x5f]] }
 0x1fd   : > { %6754 = vst [vmem:[#allocation55_spill] sm:$0xff] %v4432_v0  ;;  %6755 = vst [vmem:[#allocation56_spill] sm:$0xff] %v4434_v1 }
 0x1fe   : > { %1782 = vrot.lane.b32.xlu0 %v1777_v2, %s6613_s16  ;;  %1780 = vrot.lane.b32.xlu1 %v1776_v10, %s6613_s16  ;;  %v523_v2 = vstv %s4442_s7  ;;  %v4527_v10 = vstv %s4467_s13  ;;  %6772 = vst [vmem:[#allocation69_spill] sm:$0xff] %v4609_v53  ;;  %s4732_s7 = sld [smem:[#allocation10 + $0x54]]  ;;  %s5072_s13 = sld [smem:[#allocation10 + $0x86]] }
 0x1ff   : > { %v4585_v42 = vmul.f32 %v4549_v58, %v523_v2 }
 0x200   : > { %v4456_v14 = vpop.permute.xlu0 %1030  ;;  %v4458_v16 = vpop.permute.xlu1 %1028  ;;  %v4602_v50 = vstv %s4517_s15  ;;  %s5226_s15 = sld [smem:[#allocation10 + $0x64]] }
 0x201   : > { %6756 = vst [vmem:[#allocation57_spill] sm:$0xff] %v4456_v14  ;;  %6757 = vst [vmem:[#allocation58_spill] sm:$0xff] %v4458_v16  ;;  %v4533_v14 = vstv %s4473_s1  ;;  %s4604_s1 = sld [smem:[#allocation10 + $0x82]]  ;;  %v4626_v29 = vmul.f32 %v4602_v50, %v4414_v38 }
 0x202   : > { %1796 = vrot.lane.b32.xlu0 %v1791_v17, %s6613_s16  ;;  %1794 = vrot.lane.b32.xlu1 %v1790_v28, %s6613_s16  ;;  %s4489_s16 = sld [smem:[#allocation10 + $0x5c]]  ;;  %v647_v17 = vstv %s4448_s30  ;;  %v665_v28 = vstv %s4450_s10  ;;  %s4774_s30 = sld [smem:[#allocation10 + $0x78]] }
 0x203   : > { %v666_v13 = vmul.f32 %v4549_v58, %v665_v28  ;;  %s4779_s10 = sld [smem:[#allocation10 + $0x19]] }
 0x204   : > { %v4477_v32 = vpop.permute.xlu0 %1051  ;;  %v4479_v33 = vpop.permute.xlu1 %1049 }
 0x205   : > { %6758 = vst [vmem:[#allocation59_spill] sm:$0xff] %v4477_v32  ;;  %6759 = vst [vmem:[#allocation60_spill] sm:$0xff] %v4479_v33  ;;  %v4562_v32 = vld [vmem:[#allocation2 + $0x8] sm:$0xff] }
 0x206   : > { %1808 = vrot.lane.b32.xlu1 %v1804_v19, %s6760_s22  ;;  %v682_v19 = vstv %s4452_s20  ;;  %v4565_v18 = vmul.f32 %v4562_v32, %v511_v46  ;;  %v649_v24 = vmul.f32 %v4562_v32, %v647_v17  ;;  %v4588_v1 = vmul.f32 %v4562_v32, %v523_v2  ;;  %s4796_s20 = sld [smem:[#allocation10 + $0x3d]] }
 0x207   : > { %v667_v8 = vmul.f32 %v4562_v32, %v665_v28  ;;  %v4667_v45 = vstv %s4604_s1  ;;  %s5260_s1 = sld [smem:[#allocation10 + $0x1d]] }
 0x208   : > { %v4498_v48 = vpop.permute.xlu0 %1072  ;;  %v4500_v51 = vpop.permute.xlu1 %1070  ;;  %6767 = vst [vmem:[#allocation65_spill] sm:$0xff] %v4565_v18  ;;  %v6770_v41 = vstv %s4489_s16  ;;  %6771 = vst [vmem:[#allocation68_spill] sm:$0xff] %v4588_v1  ;;  %v656_v2 = vrot.slane %v649_v24, 1  ;;  %v1860_v1 = vmul.f32 %v6776_v6, %v4412_v37  ;;  %v683_v6 = vmul.f32 %v4549_v58, %v682_v19 }
 0x209   : > { %6761 = vst [vmem:[#allocation61_spill] sm:$0xff] %v4498_v48  ;;  %6762 = vst [vmem:[#allocation62_spill] sm:$0xff] %v4500_v51  ;;  %v1846_v46 = vmul.f32 %v6770_v41, %v4412_v37  ;;  %v648_v41 = vmul.f32 %v4549_v58, %v647_v17  ;;  %v668_v51 = vmul.f32 %v4571_v3, %v665_v28  ;;  %v4629_v28 = vstv %s4547_s11  ;;  %s5258_s11 = sld [smem:[#allocation10 + $0x88]] }
 0x20a   : > { %1822 = vrot.lane.b32.xlu1 %v1818_v54, %s6763_s6  ;;  %v6765_v54 = vstv %s4465_s19 }
 0x20b   : > { %v1832_v48 = vmul.f32 %v6765_v54, %v4412_v37  ;;  %v4575_v54 = vmul.f32 %v4562_v32, %v517_v15  ;;  %v4596_v15 = vmul.f32 %v4549_v58, %v529_v11  ;;  %v655_v24 = vrot.slane %v648_v41, 1 }
 0x20c   : > { %v4536_v0 = vpop.permute.xlu1 %1091  ;;  %v4554_v59 = vpop.permute.xlu0 %1093 }
 0x20d   : > { %6764 = vst [vmem:[#allocation63_spill] sm:$0xff] %v4536_v0  ;;  %6766 = vst [vmem:[#allocation64_spill] sm:$0xff] %v4554_v59  ;;  %v1942_v0 = vmul.f32 %v4545_v22, %v4412_v37  ;;  %v4670_v36 = vsel %vm654_vm4, %v655_v24, %v656_v2 }
 0x20e   : > { %1836 = vrot.lane.b32.xlu1 %v1832_v48, %s6763_s6  ;;  %v650_v48 = vmul.f32 %v4571_v3, %v647_v17  ;;  %6768 = vst [vmem:[#allocation66_spill] sm:$0xff] %v4575_v54  ;;  %v4612_v17 = vsub.f32 %v4015_v30, %v417_v40  ;;  %v4632_v30 = vmul.f32 %v4562_v32, %v529_v11  ;;  %v675_v54 = vrot.slane %v668_v51, 1 }
 0x20f   : > { %v1948_v62 = vrot.slane %v1942_v0, 1  ;;  %v684_v40 = vmul.f32 %v4562_v32, %v682_v19  ;;  %v420_v11 = vmul.f32 %v4609_v53, %v4609_v53  ;;  %v6780_v51 = vrot.slane %v4593_v52, 1 }
 0x210   : > { %v4577_v59 = vpop.permute.xlu1 %1112  ;;  %v658_v26 = vrot.slane %v650_v48, 1  ;;  %6773 = vst [vmem:[#allocation70_spill] sm:$0xff] %v4612_v17  ;;  %v4614_v63 = vpop.permute.xlu0 %1114  ;;  %v1963_v48 = vmul.f32 %v4602_v50, %v4412_v37  ;;  %6777 = vst [vmem:[#allocation73_spill] sm:$0xff] %v4632_v30  ;;  %v421_v30 = vmul.f32 %v4612_v17, %v4612_v17 }
 0x211   : > { %6769 = vst [vmem:[#allocation67_spill] sm:$0xff] %v4577_v59  ;;  %6774 = vst [vmem:[#allocation71_spill] sm:$0xff] %v4614_v63  ;;  %v685_v63 = vmul.f32 %v4571_v3, %v682_v19  ;;  %v1950_v41 = vsel %vm654_vm4, %v1948_v62, %v6780_v51  ;;  %v690_v17 = vrot.slane %v684_v40, 1  ;;  %v702_v62 = vmul.f32 %v4571_v3, %v4521_v47 }
 0x212   : > { %1850 = vrot.lane.b32.xlu1 %v1846_v46, %s6763_s6  ;;  %v4641_v0 = vsel %vm654_vm4, %v656_v2, %v658_v26  ;;  %v4655_v26 = vmul.f32 %v4629_v28, %v4414_v38  ;;  %v1969_v53 = vrot.slane %v1963_v48, 1  ;;  %v422_v40 = vsel %vm402_vm2, %v420_v11, 0.0 }
 0x213   : > { %6778 = vst [vmem:[#allocation74_spill] sm:$0xff] %v4641_v0  ;;  %v6627_v0 = vrot.slane %v4626_v29, 1  ;;  %v692_v59 = vrot.slane %v685_v63, 1  ;;  %v700_v63 = vmul.f32 %v4549_v58, %v4521_v47  ;;  %v709_v2 = vrot.slane %v702_v62, 1 }
 0x214   : > { %v4616_v46 = vpop.permute.xlu1 %1182  ;;  %v4663_v33 = vpop.permute.xlu0 %1184  ;;  %v903_v62 = vmul.f32 %v4549_v58, %v4527_v10 }
 0x215   : > { %6775 = vst [vmem:[#allocation72_spill] sm:$0xff] %v4616_v46  ;;  %v673_v46 = vrot.slane %v667_v8, 1  ;;  %v672_v8 = vrot.slane %v666_v13, 1  ;;  %6781 = vst [vmem:[#allocation76_spill] sm:$0xff] %v4663_v33  ;;  %v701_v13 = vmul.f32 %v4562_v32, %v4521_v47  ;;  %v2005_v47 = vmul.f32 %v4667_v45, %v4412_v37 }
 0x216   : > { %1864 = vrot.lane.b32.xlu1 %v1860_v1, %s6763_s6  ;;  %v1984_v1 = vmul.f32 %v4629_v28, %v4412_v37 }
 0x217   : > { %v4686_v24 = vsel %vm654_vm4, %v673_v46, %v675_v54  ;;  %v4698_v11 = vsel %vm654_vm4, %v672_v8, %v673_v46  ;;  %v886_v46 = vmul.f32 %v4562_v32, %v4524_v31 }
 0x218   : > { %v4649_v19 = vpop.permute.xlu1 %1196  ;;  %v1990_v51 = vrot.slane %v1984_v1, 1  ;;  %6783 = vst [vmem:[#allocation78_spill] sm:$0xff] %v4686_v24  ;;  %v4701_v1 = vsel %vm654_vm4, %v690_v17, %v692_v59  ;;  %v706_v24 = vrot.slane %v700_v63, 1  ;;  %v4715_v8 = vpop.permute.xlu0 %1198 }
 0x219   : > { %6779 = vst [vmem:[#allocation75_spill] sm:$0xff] %v4649_v19  ;;  %v689_v19 = vrot.slane %v683_v6, 1  ;;  %v423_v6 = vsel %vm402_vm2, %v421_v30, 0.0  ;;  %v4695_v30 = vmul.f32 %v4667_v45, %v4414_v38  ;;  %6784 = vst [vmem:[#allocation79_spill] sm:$0xff] %v4701_v1  ;;  %v893_v1 = vrot.slane %v886_v46, 2 }
 0x21a   : > { %1953 = vrot.lane.b32.xlu1 %v1950_v41, %s6760_s22  ;;  %v1971_v41 = vsel %vm654_vm4, %v1969_v53, %v6627_v0  ;;  %v4708_v53 = vstv %s4638_s21  ;;  %v707_v0 = vrot.slane %v701_v13, 1  ;;  %v424_v33 = vadd.f32 %v423_v6, %v422_v40  ;;  %6786 = vst [vmem:[#allocation81_spill] sm:$0xff] %v4715_v8  ;;  %s5269_s21 = sld [smem:[#allocation10 + $0x12]] }
 0x21b   : > { %v4704_v54 = vsel %vm654_vm4, %v689_v19, %v690_v17  ;;  %v6788_v17 = vrot.slane %v4655_v26, 1  ;;  %v2011_v13 = vrot.slane %v2005_v47, 1  ;;  %v2026_v63 = vmul.f32 %v4708_v53, %v4412_v37 }
 0x21c   : > { %v4678_v48 = vpop.permute.xlu1 %1210  ;;  %6785 = vst [vmem:[#allocation80_spill] sm:$0xff] %v4704_v54  ;;  %v4730_v40 = vmul.f32 %v4708_v53, %v4414_v38  ;;  %v887_v6 = vmul.f32 %v4571_v3, %v4524_v31  ;;  %v905_v47 = vmul.f32 %v4571_v3, %v4527_v10  ;;  %v4752_v8 = vmul.f32 %v4562_v32, %v4530_v55  ;;  %v4776_v18 = vpop.permute.xlu0 %1212 }
 0x21d   : > { %6782 = vst [vmem:[#allocation77_spill] sm:$0xff] %v4678_v48  ;;  %v4711_v48 = vstv %s4643_s23  ;;  %v1992_v19 = vsel %vm654_vm4, %v1990_v51, %v6788_v17  ;;  %v885_v51 = vmul.f32 %v4549_v58, %v4524_v31  ;;  %v4746_v17 = vsel %vm654_vm4, %v707_v0, %v709_v2  ;;  %6795 = vst [vmem:[#allocation88_spill] sm:$0xff] %v4776_v18  ;;  %s5296_s23 = sld [smem:[#allocation10 + $0x41]] }
 0x21e   : > { %1974 = vrot.lane.b32.xlu1 %v1971_v41, %s6760_s22  ;;  %v4723_v41 = vstv %s4657_s24  ;;  %6789 = vst [vmem:[#allocation83_spill] sm:$0xff] %v4730_v40  ;;  %6790 = vst [vmem:[#allocation84_spill] sm:$0xff] %v4746_v17  ;;  %v922_v31 = vmul.f32 %v4571_v3, %v4530_v55  ;;  %v4764_v17 = vstv %s4683_s0  ;;  %v2032_v34 = vrot.slane %v2026_v63, 1  ;;  %s5313_s24 = sld [smem:[#allocation10 + $0x36]]  ;;  %s5315_s0 = sld [smem:[#allocation10 + $0x5a]] }
 0x21f   : > { %v2047_v2 = vmul.f32 %v4723_v41, %v4412_v37  ;;  %6792 = vst [vmem:[#allocation86_spill] sm:$0xff] %v4764_v17  ;;  %v4772_v57 = vmul.f32 %v4723_v41, %v4414_v38  ;;  %v927_v63 = vrot.slane %v4752_v8, 2  ;;  %v920_v54 = vmul.f32 %v4549_v58, %v4530_v55 }
 0x220   : > { %v4717_v59 = vpop.permute.xlu1 %1224  ;;  %v6798_v8 = vrot.slane %v4730_v40, 1 }
 0x221   : > { %6787 = vst [vmem:[#allocation82_spill] sm:$0xff] %v4717_v59  ;;  %425 = vadd.xlane.f32.xlu0 %v424_v33  ;;  %v904_v33 = vmul.f32 %v4562_v32, %v4527_v10  ;;  %v4757_v59 = vsel %vm654_vm4, %v706_v24, %v707_v0  ;;  %v6793_v10 = vrot.slane %v4695_v30, 1  ;;  %6794 = vst [vmem:[#allocation87_spill] sm:$0xff] %v4772_v57  ;;  %v895_v0 = vrot.slane %v887_v6, 2 }
 0x222   : > { %1995 = vrot.lane.b32.xlu1 %v1992_v19, %s6760_s22  ;;  %v892_v24 = vrot.slane %v885_v51, 2  ;;  %v938_v6 = vmul.f32 %v4562_v32, %v4533_v14  ;;  %v939_v51 = vmul.f32 %v4571_v3, %v4533_v14  ;;  %v2034_v55 = vsel %vm654_vm4, %v2032_v34, %v6798_v8  ;;  %v4831_v32 = vld [vmem:[#allocation2 + $0x20] sm:$0xff] }
 0x223   : > { %v2013_v16 = vsel %vm654_vm4, %v2011_v13, %v6793_v10  ;;  %v910_v46 = vrot.slane %v904_v33, 2  ;;  %v909_v13 = vrot.slane %v903_v62, 2  ;;  %v929_v10 = vrot.slane %v922_v31, 2 }
 0x224   : > { %v4759_v19 = vpop.permute.xlu1 %1238  ;;  %v4794_v62 = vmul.f32 %v4764_v17, %v4414_v38  ;;  %v4803_v31 = vstv %s4732_s7  ;;  %v4806_v3 = vsel %vm891_vm5, %v893_v1, %v895_v0  ;;  %v4809_v18 = vsel %vm891_vm5, %v892_v24, %v893_v1  ;;  %s5325_s7 = sld [smem:[#allocation10 + $0x65]] }
 0x225   : > { %6791 = vst [vmem:[#allocation85_spill] sm:$0xff] %v4759_v19  ;;  %v912_v19 = vrot.slane %v905_v47, 2  ;;  %v2053_v47 = vrot.slane %v2047_v2, 1  ;;  %6799 = vst [vmem:[#allocation91_spill] sm:$0xff] %v4806_v3  ;;  %v4821_v2 = vsel %vm891_vm5, %v909_v13, %v910_v46  ;;  %v4824_v0 = vsel %vm891_vm5, %v927_v63, %v929_v10 }
 0x226   : > { %2016 = vrot.lane.b32.xlu1 %v2013_v16, %s6760_s22  ;;  %v2068_v16 = vmul.f32 %v4764_v17, %v4412_v37  ;;  %6797 = vst [vmem:[#allocation90_spill] sm:$0xff] %v4794_v62  ;;  %v4815_v17 = vstv %s4743_s29  ;;  %6802 = vst [vmem:[#allocation94_spill] sm:$0xff] %v4821_v2  ;;  %v926_v8 = vrot.slane %v920_v54, 2  ;;  %v944_v1 = vrot.slane %v938_v6, 2  ;;  %v5037_v2 = vld [vmem:[#allocation2 + $0x40] sm:$0x3] }
 0x227   : > { %6800 = vst [vmem:[#allocation92_spill] sm:$0xff] %v4815_v17  ;;  %v4818_v34 = vsel %vm891_vm5, %v910_v46, %v912_v19  ;;  %6803 = vst [vmem:[#allocation95_spill] sm:$0xff] %v4824_v0  ;;  %v946_v24 = vrot.slane %v939_v51, 2  ;;  %v6806_v46 = vstv %s4475_s4  ;;  %v6808_v54 = vrot.slane %v4772_v57, 1  ;;  %v4847_v19 = vld [vmem:[#allocation2 + $0x18] sm:$0xff]  ;;  %s4918_s4 = sld [smem:[#allocation10 + $0x85]] }
 0x228   : > { %v4788_v33 = vpop.permute.xlu1 %1252  ;;  %6801 = vst [vmem:[#allocation93_spill] sm:$0xff] %v4818_v34  ;;  %v4836_v13 = vmul.f32 %v4831_v32, %v6806_v46  ;;  %v2089_v6 = vmul.f32 %v4815_v17, %v4412_v37  ;;  %v4845_v51 = vmul.f32 %v4815_v17, %v4414_v38  ;;  %v1497_v57 = vstv %s4863_s8  ;;  %s5327_s29 = sld [smem:[#allocation10 + $0x89]]  ;;  %s5446_s8 = sld [smem:[#allocation10 + $0x8b]] }
 0x229   : > { %6796 = vst [vmem:[#allocation89_spill] sm:$0xff] %v4788_v33  ;;  %v937_v33 = vmul.f32 %v4549_v58, %v4533_v14  ;;  %v4826_v58 = vpop.permute.xlu0 %1226  ;;  %v2055_v10 = vsel %vm654_vm4, %v2053_v47, %v6808_v54  ;;  %v4859_v47 = vstv %s4779_s10  ;;  %v6814_v54 = vstv %s4484_s5  ;;  %s4939_s5 = sld [smem:[#allocation10 + $0x1a]]  ;;  %s5369_s10 = sld [smem:[#allocation10 + $0x1f]] }
 0x22a   : > { %2037 = vrot.lane.b32.xlu1 %v2034_v55, %s6763_s6  ;;  %6804 = vst [vmem:[#allocation96_spill] sm:$0xff] %v4826_v58  ;;  %v2074_v55 = vrot.slane %v2068_v16, 1  ;;  %6807 = vst [vmem:[#allocation98_spill] sm:$0xff] %v4836_v13  ;;  %v6810_v58 = vmov %v6806_v46  ;;  %v4856_v13 = vstv %s4774_s30  ;;  %v4871_v0 = vmul.f32 %v4831_v32, %v6814_v54  ;;  %s5347_s30 = sld [smem:[#allocation10 + $0x7e]] }
 0x22b   : > { %6809 = vst [vmem:[#allocation99_spill] sm:$0xff] %v4845_v51  ;;  %v943_v16 = vrot.slane %v937_v33, 2  ;;  %v4852_v46 = vmul.f32 %v4847_v19, %v6810_v58  ;;  %6812 = vst [vmem:[#allocation101_spill] sm:$0xff] %v4859_v47  ;;  %v4866_v33 = vsel %vm891_vm5, %v926_v8, %v927_v63  ;;  %v1263_v58 = vmul.f32 %v4831_v32, %v4560_v20 }
 0x22c   : > { %v4828_v14 = vpop.permute.xlu1 %1341  ;;  %6813 = vst [vmem:[#allocation102_spill] sm:$0xff] %v4866_v33  ;;  %6815 = vst [vmem:[#allocation103_spill] sm:$0xff] %v4871_v0  ;;  %v4878_v34 = vsel %vm891_vm5, %v944_v1, %v946_v24  ;;  %v6817_v3 = vmov %v6814_v54  ;;  %v6820_v63 = vrot.slane %v4794_v62, 1  ;;  %v4891_v54 = vstv %s4796_s20  ;;  %s5391_s20 = sld [smem:[#allocation10 + $0x43]] }
 0x22d   : > { %6805 = vst [vmem:[#allocation97_spill] sm:$0xff] %v4828_v14  ;;  %6811 = vst [vmem:[#allocation100_spill] sm:$0xff] %v4852_v46  ;;  %v4883_v14 = vmul.f32 %v4847_v19, %v6817_v3  ;;  %v2095_v0 = vrot.slane %v2089_v6, 1  ;;  %v2178_v24 = vmul.f32 %v4859_v47, %v4412_v37  ;;  %v4901_v3 = vsel %vm891_vm5, %v943_v16, %v944_v1  ;;  %v4913_v6 = vpop.permute.xlu0 %1240 }
 0x22e   : > { %2058 = vrot.lane.b32.xlu1 %v2055_v10, %s6763_s6  ;;  %v1264_v10 = vmul.f32 %v4560_v20, %v4228_v9  ;;  %6816 = vst [vmem:[#allocation104_spill] sm:$0xff] %v4878_v34  ;;  %v2076_v8 = vsel %vm654_vm4, %v2074_v55, %v6820_v63  ;;  %6821 = vst [vmem:[#allocation107_spill] sm:$0xff] %v4891_v54  ;;  %v4898_v34 = vmul.f32 %v4859_v47, %v4414_v38 }
 0x22f   : > { %6818 = vst [vmem:[#allocation105_spill] sm:$0xff] %v4883_v14  ;;  %6827 = vst [vmem:[#allocation111_spill] sm:$0xff] %v4913_v6  ;;  %v1262_v33 = vmul.f32 %v4847_v19, %v4560_v20  ;;  %v1269_v1 = vrot.slane %v1263_v58, 1  ;;  %v1279_v20 = vmul.f32 %v4847_v19, %v4711_v48  ;;  %v2199_v58 = vmul.f32 %v4891_v54, %v4412_v37 }
 0x230   : > { %v4885_v46 = vpop.permute.xlu1 %1362  ;;  %6822 = vst [vmem:[#allocation108_spill] sm:$0xff] %v4898_v34  ;;  %v1271_v16 = vrot.slane %v1264_v10, 1  ;;  %v4937_v10 = vmul.f32 %v4891_v54, %v4414_v38  ;;  %v2184_v47 = vrot.slane %v2178_v24, 2  ;;  %v4955_v54 = vstv %s4861_s27  ;;  %s5421_s27 = sld [smem:[#allocation10 + $0x67]] }
 0x231   : > { %6819 = vst [vmem:[#allocation106_spill] sm:$0xff] %v4885_v46  ;;  %v6823_v46 = vstv %s4486_s12  ;;  %v1268_v17 = vrot.slane %v1262_v33, 1  ;;  %6836 = vst [vmem:[#allocation116_spill] sm:$0xff] %v4955_v54  ;;  %v1297_v24 = vmul.f32 %v4831_v32, %v4803_v31  ;;  %v1285_v33 = vrot.slane %v1279_v20, 1  ;;  %s4998_s12 = sld [smem:[#allocation10 + $0x3e]] }
 0x232   : > { %v4906_v14 = vmul.f32 %v4831_v32, %v6823_v46  ;;  %v6825_v55 = vmov %v6823_v46  ;;  %2079 = vrot.lane.b32.xlu1 %v2076_v8, %s6763_s6  ;;  %v1280_v46 = vmul.f32 %v4831_v32, %v4711_v48  ;;  %6831 = vst [vmem:[#allocation114_spill] sm:$0xff] %v4937_v10  ;;  %v2220_v20 = vmul.f32 %v4955_v54, %v4412_v37 }
 0x233   : > { %v4911_v63 = vmul.f32 %v4847_v19, %v6825_v55  ;;  %v1281_v55 = vmul.f32 %v4711_v48, %v4228_v9  ;;  %v6832_v9 = vrot.slane %v4845_v51, 1  ;;  %v4959_v51 = vsel %vm654_vm4, %v1269_v1, %v1271_v16 }
 0x234   : > { %6824 = vst [vmem:[#allocation109_spill] sm:$0xff] %v4906_v14  ;;  %v6828_v14 = vstv %s4494_s14  ;;  %v4931_v8 = vpop.permute.xlu1 %1383  ;;  %6837 = vst [vmem:[#allocation117_spill] sm:$0xff] %v4959_v51  ;;  %v2205_v16 = vrot.slane %v2199_v58, 2  ;;  %v4988_v58 = vsel %vm654_vm4, %v1268_v17, %v1269_v1  ;;  %v1313_v1 = vmul.f32 %v4847_v19, %v4856_v13 }
 0x235   : > { %6826 = vst [vmem:[#allocation110_spill] sm:$0xff] %v4911_v63  ;;  %v4927_v6 = vmul.f32 %v4831_v32, %v6828_v14  ;;  %6830 = vst [vmem:[#allocation113_spill] sm:$0xff] %v4931_v8  ;;  %v2097_v63 = vsel %vm654_vm4, %v2095_v0, %v6832_v9  ;;  %v6833_v14 = vstv %s4426_s26  ;;  %v6834_v8 = vstv %s4494_s14  ;;  %s4973_s14 = sld [smem:[#allocation10 + $0x33]]  ;;  %s5026_s26 = sld [smem:[#allocation10 + $0x62]] }
 0x236   : > { %v4951_v62 = vmul.f32 %v4847_v19, %v6834_v8  ;;  %2100 = vrot.lane.b32.xlu1 %v2097_v63, %s6763_s6  ;;  %v1286_v0 = vrot.slane %v1280_v46, 1  ;;  %v1288_v9 = vrot.slane %v1281_v55, 1  ;;  %v4966_v8 = vld [vmem:[#allocation2 + $0x28] sm:$0x3]  ;;  %v6840_v55 = vrot.slane %v4898_v34, 2  ;;  %6843 = vst [vmem:[#allocation121_spill] sm:$0xff] %v4988_v58 }
 0x237   : > { %6829 = vst [vmem:[#allocation112_spill] sm:$0xff] %v4927_v6  ;;  %v1805_v6 = vmul.f32 %v6833_v14, %v4414_v38  ;;  %v4964_v14 = vpop.permute.xlu0 %1254  ;;  %v1298_v63 = vmul.f32 %v4966_v8, %v4803_v31  ;;  %v1296_v46 = vmul.f32 %v4847_v19, %v4803_v31  ;;  %v1315_v17 = vmul.f32 %v4966_v8, %v4856_v13 }
 0x238   : > { %6835 = vst [vmem:[#allocation115_spill] sm:$0xff] %v4951_v62  ;;  %6838 = vst [vmem:[#allocation118_spill] sm:$0xff] %v4964_v14  ;;  %v4970_v48 = vpop.permute.xlu1 %1404  ;;  %v6841_v14 = vstv %s4440_s18  ;;  %v4985_v62 = vmul.f32 %v4955_v54, %v4414_v38  ;;  %v1303_v54 = vrot.slane %v1297_v24, 1  ;;  %v6848_v58 = vstv %s4465_s19  ;;  %s5035_s18 = sld [smem:[#allocation10 + $0x57]]  ;;  %s5042_s19 = sld [smem:[#allocation10 + $0x7b]] }
 0x239   : > { %1810 = vrot.lane.b32.xlu0 %v1805_v6, %s6760_s22  ;;  %6839 = vst [vmem:[#allocation119_spill] sm:$0xff] %v4970_v48  ;;  %v2186_v6 = vsel %vm891_vm5, %v2184_v47, %v6840_v55  ;;  %v1819_v51 = vmul.f32 %v6841_v14, %v4414_v38  ;;  %v1314_v47 = vmul.f32 %v4831_v32, %v4856_v13  ;;  %v4996_v14 = vstv %s4918_s4  ;;  %s5499_s4 = sld [smem:[#allocation10 + $0x20]] }
 0x23a   : > { %6842 = vst [vmem:[#allocation120_spill] sm:$0xff] %v4985_v62  ;;  %2189 = vrot.lane.b32.xlu1 %v2186_v6, %s6760_s22  ;;  %6844 = vst [vmem:[#allocation122_spill] sm:$0xff] %v4996_v14  ;;  %v5001_v55 = vsel %vm654_vm4, %v1286_v0, %v1288_v9  ;;  %v1305_v31 = vrot.slane %v1298_v63, 1  ;;  %v6847_v6 = vrot.slane %v4937_v10, 2  ;;  %v1833_v9 = vmul.f32 %v6848_v58, %v4414_v38 }
 0x23b   : > { %6845 = vst [vmem:[#allocation123_spill] sm:$0xff] %v5001_v55  ;;  %v5017_v55 = vstv %s4939_s5  ;;  %v2226_v24 = vrot.slane %v2220_v20, 2  ;;  %v2241_v13 = vmul.f32 %v4996_v14, %v4412_v37  ;;  %v5028_v63 = vpop.permute.xlu0 %1343  ;;  %v1302_v58 = vrot.slane %v1296_v46, 1  ;;  %s5509_s5 = sld [smem:[#allocation10 + $0x15]] }
 0x23c   : > { %v5008_v34 = vpop.permute.xlu1 %1425  ;;  %v2207_v48 = vsel %vm891_vm5, %v2205_v16, %v6847_v6  ;;  %6849 = vst [vmem:[#allocation125_spill] sm:$0xff] %v5017_v55  ;;  %6851 = vst [vmem:[#allocation127_spill] sm:$0xff] %v5028_v63  ;;  %v5031_v16 = vsel %vm654_vm4, %v1285_v33, %v1286_v0  ;;  %v1320_v6 = vrot.slane %v1314_v47, 1  ;;  %v1499_v20 = vmul.f32 %v4831_v32, %v1497_v57 }
 0x23d   : > { %1824 = vrot.lane.b32.xlu0 %v1819_v51, %s6763_s6  ;;  %6846 = vst [vmem:[#allocation124_spill] sm:$0xff] %v5008_v34  ;;  %v5024_v51 = vmul.f32 %v4996_v14, %v4414_v38  ;;  %6852 = vst [vmem:[#allocation128_spill] sm:$0xff] %v5031_v16  ;;  %v1322_v10 = vrot.slane %v1315_v17, 1  ;;  %v1319_v34 = vrot.slane %v1313_v1, 1  ;;  %v1500_v63 = vmul.f32 %v4966_v8, %v1497_v57 }
 0x23e   : > { %2210 = vrot.lane.b32.xlu1 %v2207_v48, %s6760_s22  ;;  %v1498_v0 = vmul.f32 %v4847_v19, %v1497_v57  ;;  %v5045_v48 = vsel %vm654_vm4, %v1303_v54, %v1305_v31  ;;  %v2262_v46 = vmul.f32 %v5017_v55, %v4412_v37  ;;  %v5053_v47 = vmul.f32 %v5017_v55, %v4414_v38 }
 0x23f   : > { %6850 = vst [vmem:[#allocation126_spill] sm:$0xff] %v5024_v51  ;;  %6853 = vst [vmem:[#allocation129_spill] sm:$0xff] %v5045_v48  ;;  %v1514_v17 = vstv %s4973_s14  ;;  %v6855_v1 = vrot.slane %v4985_v62, 2  ;;  %v6856_v57 = vstv %s4489_s16  ;;  %v2247_v31 = vrot.slane %v2241_v13, 2  ;;  %s5199_s16 = sld [smem:[#allocation10 + $0x40]]  ;;  %s5517_s14 = sld [smem:[#allocation10 + $0x44]] }
 0x240   : > { %v5047_v33 = vpop.permute.xlu1 %1446  ;;  %v1847_v16 = vmul.f32 %v6856_v57, %v4414_v38  ;;  %v1944_v55 = vmul.f32 %v4545_v22, %v5037_v2  ;;  %v1505_v14 = vrot.slane %v1499_v20, 2  ;;  %v5070_v40 = vstv %s4998_s12  ;;  %s5527_s12 = sld [smem:[#allocation10 + $0x39]] }
 0x241   : > { %1838 = vrot.lane.b32.xlu0 %v1833_v9, %s6763_s6  ;;  %6854 = vst [vmem:[#allocation130_spill] sm:$0xff] %v5047_v33  ;;  %v2228_v9 = vsel %vm891_vm5, %v2226_v24, %v6855_v1  ;;  %v5064_v33 = vsel %vm654_vm4, %v1302_v58, %v1303_v54  ;;  %v5075_v24 = vsel %vm654_vm4, %v1320_v6, %v1322_v10  ;;  %v1507_v54 = vrot.slane %v1500_v63, 2  ;;  %v5081_v1 = vpop.permute.xlu0 %1364 }
 0x242   : > { %2231 = vrot.lane.b32.xlu1 %v2228_v9, %s6760_s22  ;;  %6857 = vst [vmem:[#allocation131_spill] sm:$0xff] %v5075_v24  ;;  %v5078_v13 = vsel %vm654_vm4, %v1319_v34, %v1320_v6  ;;  %v1504_v58 = vrot.slane %v1498_v0, 2  ;;  %6858 = vst [vmem:[#allocation132_spill] sm:$0xff] %v5081_v1  ;;  %v6860_v22 = vstv %s4509_s28  ;;  %v2268_v57 = vrot.slane %v2262_v46, 2  ;;  %s5164_s28 = sld [smem:[#allocation10 + $0x1c]] }
 0x243   : > { %v1861_v20 = vmul.f32 %v6860_v22, %v4414_v38  ;;  %v1516_v48 = vmul.f32 %v4831_v32, %v1514_v17  ;;  %v6861_v34 = vrot.slane %v5024_v51, 2  ;;  %v2283_v63 = vmul.f32 %v5070_v40, %v4412_v37 }
 0x244   : > { %v5083_v9 = vpop.permute.xlu1 %1467  ;;  %v5097_v6 = vmul.f32 %v5070_v40, %v4414_v38  ;;  %v5100_v0 = vstv %s5026_s26  ;;  %v1951_v46 = vrot.slane %v1944_v55, 1  ;;  %v1965_v22 = vmul.f32 %v4602_v50, %v5037_v2  ;;  %s5579_s26 = sld [smem:[#allocation10 + $0x68]] }
 0x245   : > { %1852 = vrot.lane.b32.xlu0 %v1847_v16, %s6763_s6  ;;  %6859 = vst [vmem:[#allocation133_spill] sm:$0xff] %v5083_v9  ;;  %v2249_v16 = vsel %vm891_vm5, %v2247_v31, %v6861_v34  ;;  %6862 = vst [vmem:[#allocation134_spill] sm:$0xff] %v5100_v0  ;;  %v1517_v10 = vmul.f32 %v4966_v8, %v1514_v17  ;;  %v1515_v24 = vmul.f32 %v4847_v19, %v1514_v17 }
 0x246   : > { %2252 = vrot.lane.b32.xlu1 %v2249_v16, %s6760_s22  ;;  %v5109_v31 = vsel %vm891_vm5, %v1505_v14, %v1507_v54  ;;  %v5112_v34 = vsel %vm891_vm5, %v1504_v58, %v1505_v14  ;;  %v1531_v1 = vstv %s5035_s18  ;;  %v1548_v9 = vstv %s5042_s19  ;;  %s5588_s18 = sld [smem:[#allocation10 + $0x5d]]  ;;  %s5609_s19 = sld [smem:[#allocation10 + $0x8c]] }
 0x247   : > { %6863 = vst [vmem:[#allocation135_spill] sm:$0xff] %v5109_v31  ;;  %v546_v55 = vadd.f32 %v4200_v56, %v4552_v39  ;;  %v1522_v50 = vrot.slane %v1516_v48, 2  ;;  %v2304_v17 = vmul.f32 %v5100_v0, %v4412_v37  ;;  %v588_v14 = vadd.f32 %v4232_v12, %v4596_v15  ;;  %v5132_v39 = vpop.permute.xlu0 %1385 }
 0x248   : > { %v5118_v16 = vpop.permute.xlu1 %1488  ;;  %v6864_v54 = vrot.slane %v5053_v47, 2  ;;  %v2289_v31 = vrot.slane %v2283_v63, 2  ;;  %v6865_v48 = vrot.slane %v4593_v52, 1  ;;  %v1986_v62 = vmul.f32 %v4629_v28, %v5037_v2 }
 0x249   : > { %1866 = vrot.lane.b32.xlu0 %v1861_v20, %s6763_s6  ;;  %v5124_v20 = vmul.f32 %v5100_v0, %v4414_v38  ;;  %v1972_v0 = vrot.slane %v1965_v22, 1  ;;  %v5141_v12 = vstv %s5072_s13  ;;  %v602_v15 = vadd.f32 %v4248_v35, %v546_v55  ;;  %s5611_s13 = sld [smem:[#allocation10 + $0x81]] }
 0x24a   : > { %v2270_v58 = vsel %vm891_vm5, %v2268_v57, %v6864_v54  ;;  %v1952_v51 = vsel %vm654_vm4, %v6865_v48, %v1951_v46  ;;  %v644_v57 = vadd.f32 %v4290_v25, %v588_v14  ;;  %v1524_v63 = vrot.slane %v1517_v10, 2 }
 0x24b   : > { %2273 = vrot.lane.b32.xlu1 %v2270_v58, %s6763_s6  ;;  %v1521_v54 = vrot.slane %v1515_v24, 2  ;;  %v2310_v58 = vrot.slane %v2304_v17, 2  ;;  %v6651_v52 = vrot.slane %v5124_v20, 2  ;;  %v5150_v46 = vmul.f32 %v4831_v32, %v1531_v1 }
 0x24c   : > { %v5146_v56 = vpop.permute.xlu1 %1577  ;;  %v1534_v28 = vmul.f32 %v4966_v8, %v1531_v1  ;;  %v560_v22 = vadd.f32 %v4210_v61, %v4568_v44  ;;  %v6866_v35 = vrot.slane %v5097_v6, 2  ;;  %v5162_v24 = vmul.f32 %v5141_v12, %v4414_v38 }
 0x24d   : > { %1955 = vrot.lane.b32.xlu0 %v1952_v51, %s6760_s22  ;;  %v2325_v51 = vmul.f32 %v5141_v12, %v4412_v37  ;;  %v6867_v10 = vrot.slane %v4626_v29, 1  ;;  %v1993_v61 = vrot.slane %v1986_v62, 1  ;;  %v1532_v44 = vmul.f32 %v4847_v19, %v1531_v1  ;;  %v5180_v29 = vpop.permute.xlu0 %1406 }
 0x24e   : > { %v2291_v25 = vsel %vm891_vm5, %v2289_v31, %v6866_v35  ;;  %v2007_v31 = vmul.f32 %v4667_v45, %v5037_v2  ;;  %v616_v37 = vadd.f32 %v4261_v49, %v560_v22  ;;  %v662_v17 = vadd.f32 %v4670_v36, %v602_v15 }
 0x24f   : > { %2294 = vrot.lane.b32.xlu1 %v2291_v25, %s6763_s6  ;;  %v1973_v55 = vsel %vm654_vm4, %v6867_v10, %v1972_v0  ;;  %v713_v38 = vadd.f32 %v4757_v59, %v644_v57  ;;  %v5178_v14 = vmul.f32 %v4831_v32, %v1548_v9  ;;  %v5183_v62 = vsel %vm891_vm5, %v1522_v50, %v1524_v63 }
 0x250   : > { %v5186_v1 = vsel %vm891_vm5, %v1521_v54, %v1522_v50  ;;  %v5188_v45 = vpop.permute.xlu1 %1598  ;;  %v2312_v36 = vsel %vm891_vm5, %v2310_v58, %v6651_v52  ;;  %v5194_v49 = vmul.f32 %v4966_v8, %v1548_v9  ;;  %v734_v59 = vadd.f32 %v4325_v4, %v662_v17 }
 0x251   : > { %1976 = vrot.lane.b32.xlu0 %v1973_v55, %s6760_s22  ;;  %v797_v32 = vadd.f32 %v4358_v60, %v713_v38  ;;  %v2331_v0 = vrot.slane %v2325_v51, 2  ;;  %v6648_v48 = vrot.slane %v5162_v24, 2  ;;  %v6868_v50 = vrot.slane %v4655_v26, 1 }
 0x252   : > { %v2014_v57 = vrot.slane %v2007_v31, 1  ;;  %v1549_v63 = vmul.f32 %v4847_v19, %v1548_v9  ;;  %v2028_v4 = vmul.f32 %v4708_v53, %v5037_v2  ;;  %v574_v60 = vadd.f32 %v4220_v5, %v4585_v42  ;;  %v5218_v53 = vld [vmem:[#allocation2 + $0x48] sm:$0xff] }
 0x253   : > { %2315 = vrot.lane.b32.xlu1 %v2312_v36, %s6763_s6  ;;  %v1994_v15 = vsel %vm654_vm4, %v6868_v50, %v1993_v61  ;;  %v679_v8 = vadd.f32 %v4698_v11, %v616_v37  ;;  %v818_v54 = vadd.f32 %v4370_v21, %v734_v59  ;;  %v881_v58 = vadd.f32 %v4402_v23, %v797_v32  ;;  %v5228_v11 = vpop.permute.xlu0 %1427  ;;  %v6875_v36 = vld [vmem:[#allocation58_spill] sm:$0xff]  ;;  %v6876_v32 = vld [vmem:[#allocation33_spill] sm:$0xff]  ;;  %v6877_v50 = vld [vmem:[#allocation83_spill] sm:$0xff] }
 0x254   : > { %v1539_v26 = vrot.slane %v5150_v46, 2  ;;  %v1541_v22 = vrot.slane %v1534_v28, 2  ;;  %v1538_v35 = vrot.slane %v1532_v44, 2  ;;  %v5215_v19 = vpop.permute.xlu1 %1619  ;;  %v1556_v9 = vrot.slane %v5178_v14, 2  ;;  %v6870_v44 = vld [vmem:[#allocation65_spill] sm:$0xff] }
 0x255   : > { %1997 = vrot.lane.b32.xlu0 %v1994_v15, %s6760_s22  ;;  %v630_v5 = vadd.f32 %v4277_v7, %v574_v60  ;;  %v755_v42 = vadd.f32 %v4336_v27, %v679_v8  ;;  %v2333_v21 = vsel %vm891_vm5, %v2331_v0, %v6648_v48  ;;  %v6650_v23 = vstv %s5164_s28  ;;  %v6880_v8 = vld [vmem:[#allocation44_spill] sm:$0xff] }
 0x256   : > { %v6869_v46 = vrot.slane %v4695_v30, 1  ;;  %v1558_v7 = vrot.slane %v5194_v49, 2  ;;  %v2035_v27 = vrot.slane %v2028_v4, 1  ;;  %v2049_v25 = vmul.f32 %v4723_v41, %v5037_v2  ;;  %v6871_v30 = vld [vmem:[#allocation29_spill] sm:$0xff]  ;;  %v6879_v4 = vld [vmem:[#allocation86_spill] sm:$0xff] }
 0x257   : > { %2336 = vrot.lane.b32.xlu1 %v2333_v21, %s6763_s6  ;;  %v839_v51 = vadd.f32 %v4380_v43, %v755_v42  ;;  %v899_v10 = vadd.f32 %v4809_v18, %v818_v54  ;;  %v950_v55 = vadd.f32 %v4901_v3, %v881_v58  ;;  %v1555_v61 = vrot.slane %v1549_v63, 2  ;;  %v6873_v18 = vld [vmem:[#allocation80_spill] sm:$0xff]  ;;  %v6881_v58 = vld [vmem:[#allocation94_spill] sm:$0xff] }
 0x258   : > { %v2015_v28 = vsel %vm654_vm4, %v6869_v46, %v2014_v57  ;;  %v547_v31 = vadd.f32 %v6871_v30, %v6870_v44  ;;  %v5244_v37 = vsel %vm891_vm5, %v1539_v26, %v1541_v22  ;;  %v5247_v17 = vsel %vm891_vm5, %v1538_v35, %v1539_v26  ;;  %v5249_v38 = vpop.permute.xlu1 %1640  ;;  %v6874_v3 = vld [vmem:[#allocation52_spill] sm:$0xff]  ;;  %v6884_v21 = vld [vmem:[#allocation66_spill] sm:$0xff]  ;;  %v6888_v30 = vld [vmem:[#allocation31_spill] sm:$0xff] }
 0x259   : > { %2018 = vrot.lane.b32.xlu0 %v2015_v28, %s6760_s22  ;;  %6872 = vst [vmem:[#allocation65_spill] sm:$0xff] %v5244_v37  ;;  %v2374_v43 = vmul.f32 %v6650_v23, %v5218_v53  ;;  %v696_v41 = vadd.f32 %v6873_v18, %v630_v5  ;;  %v971_v14 = vadd.f32 %v6874_v3, %v899_v10  ;;  %v6647_v59 = vstv %s5199_s16  ;;  %v6882_v22 = vld [vmem:[#allocation60_spill] sm:$0xff]  ;;  %v6883_v5 = vld [vmem:[#allocation67_spill] sm:$0xff]  ;;  %v6885_v46 = vld [vmem:[#allocation30_spill] sm:$0xff] }
 0x25a   : > { %v1034_v49 = vadd.f32 %v6875_v36, %v950_v55  ;;  %v603_v0 = vadd.f32 %v6876_v32, %v547_v31  ;;  %v6878_v15 = vrot.slane %v6877_v50, 1  ;;  %v2056_v63 = vrot.slane %v2049_v25, 1  ;;  %v6887_v44 = vld [vmem:[#allocation68_spill] sm:$0xff] }
 0x25b   : > { %2378 = vrot.lane.b32.xlu1 %v2374_v43, %s6760_s22  ;;  %v2070_v60 = vmul.f32 %v6879_v4, %v5037_v2  ;;  %v776_v54 = vadd.f32 %v6880_v8, %v696_v41  ;;  %v916_v26 = vadd.f32 %v6881_v58, %v839_v51  ;;  %v1055_v35 = vadd.f32 %v6882_v22, %v971_v14  ;;  %v6889_v43 = vld [vmem:[#allocation49_spill] sm:$0xff]  ;;  %v6890_v41 = vld [vmem:[#allocation54_spill] sm:$0xff]  ;;  %v6892_v36 = vld [vmem:[#allocation32_spill] sm:$0xff] }
 0x25c   : > { %v2036_v57 = vsel %vm654_vm4, %v6878_v15, %v2035_v27  ;;  %v1118_v42 = vadd.f32 %v6883_v5, %v1034_v49  ;;  %v561_v28 = vadd.f32 %v6885_v46, %v6884_v21  ;;  %v5278_v27 = vpop.permute.xlu0 %1448  ;;  %v5281_v25 = vsel %vm891_vm5, %v1556_v9, %v1558_v7  ;;  %v5286_v55 = vpop.permute.xlu1 %1661  ;;  %v6891_v7 = vld [vmem:[#allocation73_spill] sm:$0xff]  ;;  %v6895_v15 = vld [vmem:[#allocation92_spill] sm:$0xff]  ;;  %v6896_v4 = vld [vmem:[#allocation74_spill] sm:$0xff] }
 0x25d   : > { %2039 = vrot.lane.b32.xlu0 %v2036_v57, %s6763_s6  ;;  %6886 = vst [vmem:[#allocation29_spill] sm:$0xff] %v5281_v25  ;;  %v5284_v10 = vsel %vm891_vm5, %v1555_v61, %v1556_v9  ;;  %v2388_v51 = vmul.f32 %v6647_v59, %v5218_v53  ;;  %v575_v31 = vadd.f32 %v6888_v30, %v6887_v44  ;;  %v6646_v14 = vstv %s5226_s15  ;;  %v6893_v9 = vld [vmem:[#allocation87_spill] sm:$0xff]  ;;  %v6927_v59 = vld [vmem:[#allocation108_spill] sm:$0xff] }
 0x25e   : > { %v860_v18 = vadd.f32 %v6889_v43, %v776_v54  ;;  %v992_v3 = vadd.f32 %v6890_v41, %v916_v26  ;;  %v589_v49 = vadd.f32 %v6892_v36, %v6891_v7  ;;  %v6894_v61 = vrot.slane %v6893_v9, 1  ;;  %v6897_v54 = vld [vmem:[#allocation100_spill] sm:$0xff]  ;;  %v6898_v26 = vld [vmem:[#allocation62_spill] sm:$0xff]  ;;  %v6899_v5 = vld [vmem:[#allocation115_spill] sm:$0xff] }
 0x25f   : > { %2392 = vrot.lane.b32.xlu1 %v2388_v51, %s6760_s22  ;;  %v2077_v50 = vrot.slane %v2070_v60, 1  ;;  %v2091_v57 = vmul.f32 %v6895_v15, %v5037_v2  ;;  %v5307_v8 = vadd.f32 %v6896_v4, %v603_v0  ;;  %v1128_v58 = vadd.f32 %v6897_v54, %v1055_v35  ;;  %v6901_v46 = vld [vmem:[#allocation35_spill] sm:$0xff]  ;;  %v6902_v51 = vld [vmem:[#allocation36_spill] sm:$0xff] }
 0x260   : > { %v2057_v32 = vsel %vm654_vm4, %v6894_v61, %v2056_v63  ;;  %v1076_v22 = vadd.f32 %v6898_v26, %v992_v3  ;;  %v1146_v21 = vadd.f32 %v6899_v5, %v1118_v42  ;;  %v6900_v63 = vld [vmem:[#allocation34_spill] sm:$0xff]  ;;  %v631_v0 = vadd.f32 %v6901_v46, %v575_v31  ;;  %v5320_v30 = vpop.permute.xlu1 %1682  ;;  %v6904_v41 = vld [vmem:[#allocation75_spill] sm:$0xff]  ;;  %v5333_v36 = vpop.permute.xlu0 %1469  ;;  %v6908_v4 = vld [vmem:[#allocation56_spill] sm:$0xff] }
 0x261   : > { %2060 = vrot.lane.b32.xlu0 %v2057_v32, %s6763_s6  ;;  %v617_v60 = vadd.f32 %v6900_v63, %v561_v28  ;;  %v645_v44 = vadd.f32 %v6902_v51, %v589_v49  ;;  %v2402_v35 = vmul.f32 %v6646_v14, %v5218_v53  ;;  %v6903_v42 = vld [vmem:[#allocation102_spill] sm:$0xff]  ;;  %v6645_v7 = vstv %s5258_s11  ;;  %v6907_v32 = vld [vmem:[#allocation101_spill] sm:$0xff] }
 0x262   : > { %v933_v43 = vadd.f32 %v6903_v42, %v860_v18  ;;  %v1202_v3 = vadd.f32 %v6904_v41, %v1146_v21  ;;  %v6644_v28 = vstv %s5260_s1  ;;  %v6905_v31 = vld [vmem:[#allocation90_spill] sm:$0xff]  ;;  %v2098_v61 = vrot.slane %v2091_v57, 1  ;;  %v6909_v26 = vld [vmem:[#allocation105_spill] sm:$0xff]  ;;  %v6914_v41 = vld [vmem:[#allocation84_spill] sm:$0xff] }
 0x263   : > { %2406 = vrot.lane.b32.xlu1 %v2402_v35, %s6760_s22  ;;  %v6906_v49 = vrot.slane %v6905_v31, 1  ;;  %v2180_v15 = vmul.f32 %v6907_v32, %v5037_v2  ;;  %v1737_v18 = vstv %s5269_s21  ;;  %v1134_v5 = vadd.f32 %v6909_v26, %v1076_v22  ;;  %v6910_v21 = vld [vmem:[#allocation38_spill] sm:$0xff]  ;;  %v6911_v46 = vld [vmem:[#allocation89_spill] sm:$0xff]  ;;  %v6913_v35 = vld [vmem:[#allocation79_spill] sm:$0xff]  ;;  %s5636_s21 = sld [smem:[#allocation10 + $0x22]] }
 0x264   : > { %v1013_v54 = vadd.f32 %v6908_v4, %v933_v43  ;;  %v1160_v63 = vadd.f32 %v6910_v21, %v1128_v58  ;;  %v1258_v51 = vadd.f32 %v6911_v46, %v1202_v3  ;;  %v5353_v42 = vadd.f32 %v6913_v35, %v631_v0  ;;  %v5358_v43 = vpop.permute.xlu1 %1703  ;;  %v6915_v22 = vld [vmem:[#allocation63_spill] sm:$0xff] }
 0x265   : > { %v2078_v9 = vsel %vm654_vm4, %v6906_v49, %v2077_v50  ;;  %v6912_v50 = vld [vmem:[#allocation78_spill] sm:$0xff]  ;;  %v5356_v31 = vadd.f32 %v6914_v41, %v645_v44  ;;  %v2416_v58 = vmul.f32 %v6645_v7, %v5218_v53  ;;  %v6916_v49 = vld [vmem:[#allocation77_spill] sm:$0xff]  ;;  %v6649_v32 = vstv %s5296_s23  ;;  %v6917_v0 = vld [vmem:[#allocation99_spill] sm:$0xff] }
 0x266   : > { %2081 = vrot.lane.b32.xlu0 %v2078_v9, %s6763_s6  ;;  %v5350_v57 = vadd.f32 %v6912_v50, %v617_v60  ;;  %v1097_v3 = vadd.f32 %v6915_v22, %v1013_v54  ;;  %v1216_v9 = vadd.f32 %v6916_v49, %v1160_v63  ;;  %v2430_v60 = vmul.f32 %v6644_v28, %v5218_v53  ;;  %v5375_v54 = vld [vmem:[#allocation2 + $0x38] sm:$0xff]  ;;  %v6920_v63 = vld [vmem:[#allocation107_spill] sm:$0xff]  ;;  %v5393_v22 = vpop.permute.xlu0 %1490 }
 0x267   : > { %2420 = vrot.lane.b32.xlu1 %v2416_v58, %s6760_s22  ;;  %v6918_v44 = vrot.slane %v6917_v0, 1  ;;  %v2187_v26 = vrot.slane %v2180_v15, 2  ;;  %v5378_v21 = vmul.f32 %v5375_v54, %v1737_v18  ;;  %v2201_v46 = vmul.f32 %v6920_v63, %v5037_v2  ;;  %v6921_v50 = vld [vmem:[#allocation40_spill] sm:$0xff]  ;;  %v5385_v58 = vld [vmem:[#allocation2 + $0x30] sm:$0xff]  ;;  %6922 = vst [vmem:[#allocation52_spill] sm:$0xff] %v5393_v22  ;;  %v6924_v63 = vld [vmem:[#allocation82_spill] sm:$0xff] }
 0x268   : > { %v1174_v35 = vadd.f32 %v6921_v50, %v1134_v5  ;;  %v1326_v41 = vadd.f32 %v5078_v13, %v1258_v51  ;;  %v6652_v15 = vstv %s5313_s24  ;;  %v1725_v49 = vpop.permute.xlu1 %1724  ;;  %v2444_v0 = vmul.f32 %v6649_v32, %v5218_v53  ;;  %v6925_v50 = vld [vmem:[#allocation121_spill] sm:$0xff]  ;;  %v6926_v7 = vld [vmem:[#allocation119_spill] sm:$0xff] }
 0x269   : > { %v2099_v4 = vsel %vm654_vm4, %v6918_v44, %v2098_v61  ;;  %6919 = vst [vmem:[#allocation80_spill] sm:$0xff] %v5378_v21  ;;  %v5388_v61 = vmul.f32 %v5385_v58, %v1737_v18  ;;  %v6655_v5 = vstv %s5325_s7  ;;  %v6653_v13 = vstv %s5315_s0  ;;  %v6923_v44 = vld [vmem:[#allocation110_spill] sm:$0xff] }
 0x26a   : > { %2102 = vrot.lane.b32.xlu0 %v2099_v4, %s6763_s6  ;;  %v6654_v51 = vstv %s5327_s29  ;;  %v1140_v4 = vadd.f32 %v6923_v44, %v1097_v3  ;;  %v1230_v18 = vadd.f32 %v6924_v63, %v1174_v35  ;;  %v1275_v28 = vadd.f32 %v6925_v50, %v1216_v9  ;;  %v6929_v3 = vld [vmem:[#allocation116_spill] sm:$0xff]  ;;  %v6931_v63 = vld [vmem:[#allocation97_spill] sm:$0xff] }
 0x26b   : > { %v1410_v14 = vadd.f32 %v6926_v7, %v1326_v41  ;;  %2434 = vrot.lane.b32.xlu1 %v2430_v60, %s6763_s6  ;;  %v6928_v48 = vrot.slane %v6927_v59, 2  ;;  %v2208_v23 = vrot.slane %v2201_v46, 2  ;;  %v5412_v52 = vmul.f32 %v5385_v58, %v6652_v15  ;;  %v6930_v44 = vld [vmem:[#allocation72_spill] sm:$0xff]  ;;  %v6933_v46 = vld [vmem:[#allocation85_spill] sm:$0xff] }
 0x26c   : > { %v2222_v35 = vmul.f32 %v6929_v3, %v5037_v2  ;;  %v1188_v9 = vadd.f32 %v6930_v44, %v1140_v4  ;;  %v1347_v50 = vadd.f32 %v6931_v63, %v1275_v28  ;;  %v2458_v60 = vmul.f32 %v6655_v5, %v5218_v53  ;;  %v6934_v4 = vld [vmem:[#allocation128_spill] sm:$0xff] }
 0x26d   : > { %v2188_v32 = vsel %vm891_vm5, %v6928_v48, %v2187_v26  ;;  %v1494_v7 = vadd.f32 %v5118_v16, %v1410_v14  ;;  %v5423_v48 = vpop.permute.xlu1 %1766  ;;  %v5431_v26 = vmul.f32 %v5385_v58, %v6653_v13  ;;  %v2472_v28 = vmul.f32 %v6654_v51, %v5218_v53  ;;  %v6932_v16 = vld [vmem:[#allocation122_spill] sm:$0xff]  ;;  %v6935_v44 = vld [vmem:[#allocation124_spill] sm:$0xff]  ;;  %v5448_v13 = vpop.permute.xlu0 %1579 }
 0x26e   : > { %2191 = vrot.lane.b32.xlu0 %v2188_v32, %s6760_s22  ;;  %v2243_v14 = vmul.f32 %v6932_v16, %v5037_v2  ;;  %v5438_v32 = vld [vmem:[#allocation2 + $0x50] sm:$0xff]  ;;  %v1244_v41 = vadd.f32 %v6933_v46, %v1188_v9  ;;  %v1292_v3 = vadd.f32 %v6934_v4, %v1230_v18  ;;  %v1431_v63 = vadd.f32 %v6935_v44, %v1347_v50  ;;  %v6936_v51 = vld [vmem:[#allocation114_spill] sm:$0xff]  ;;  %v6939_v18 = vld [vmem:[#allocation125_spill] sm:$0xff] }
 0x26f   : > { %v5444_v15 = vstv %s5369_s10  ;;  %2448 = vrot.lane.b32.xlu1 %v2444_v0, %s6763_s6  ;;  %v6937_v5 = vrot.slane %v6936_v51, 2  ;;  %v2229_v59 = vrot.slane %v2222_v35, 2  ;;  %v6938_v25 = vstv %s5347_s30  ;;  %v6940_v50 = vld [vmem:[#allocation106_spill] sm:$0xff]  ;;  %s5758_s10 = sld [smem:[#allocation10 + $0x23]] }
 0x270   : > { %v1756_v9 = vmul.f32 %v5385_v58, %v6938_v25  ;;  %v2264_v46 = vmul.f32 %v6939_v18, %v5037_v2  ;;  %v1368_v4 = vadd.f32 %v6940_v50, %v1292_v3  ;;  %v1562_v44 = vadd.f32 %v5284_v10, %v1494_v7  ;;  %v6942_v3 = vld [vmem:[#allocation130_spill] sm:$0xff]  ;;  %v6943_v18 = vld [vmem:[#allocation120_spill] sm:$0xff] }
 0x271   : > { %v2209_v16 = vsel %vm891_vm5, %v6937_v5, %v2208_v23  ;;  %v5463_v21 = vstv %s5391_s20  ;;  %v2285_v0 = vmul.f32 %v5070_v40, %v5037_v2  ;;  %v6941_v23 = vld [vmem:[#allocation41_spill] sm:$0xff]  ;;  %v5471_v51 = vpop.permute.xlu1 %1780  ;;  %v2250_v25 = vrot.slane %v2243_v14, 2  ;;  %s5790_s20 = sld [smem:[#allocation10 + $0x47]] }
 0x272   : > { %2212 = vrot.lane.b32.xlu0 %v2209_v16, %s6760_s22  ;;  %v5469_v5 = vadd.f32 %v6941_v23, %v5307_v8  ;;  %v2554_v35 = vmul.f32 %v5444_v15, %v5218_v53  ;;  %v5477_v10 = vmul.f32 %v5444_v15, %v5438_v32  ;;  %v1309_v7 = vadd.f32 %v5064_v33, %v1244_v41  ;;  %v6945_v33 = vld [vmem:[#allocation113_spill] sm:$0xff] }
 0x273   : > { %v1452_v16 = vadd.f32 %v6942_v3, %v1368_v4  ;;  %v1511_v40 = vadd.f32 %v5112_v34, %v1431_v63  ;;  %v1646_v8 = vadd.f32 %v5249_v38, %v1562_v44  ;;  %2462 = vrot.lane.b32.xlu1 %v2458_v60, %s6763_s6  ;;  %v6944_v14 = vrot.slane %v6943_v18, 2 }
 0x274   : > { %v2271_v23 = vrot.slane %v2264_v46, 2  ;;  %v2575_v37 = vmul.f32 %v5463_v21, %v5218_v53  ;;  %v5491_v22 = vmul.f32 %v5463_v21, %v5438_v32  ;;  %v1389_v41 = vadd.f32 %v6945_v33, %v1309_v7  ;;  %v6946_v46 = vld [vmem:[#allocation126_spill] sm:$0xff] }
 0x275   : > { %v2230_v50 = vsel %vm891_vm5, %v6944_v14, %v2229_v59  ;;  %v1583_v34 = vadd.f32 %v5146_v56, %v1511_v40  ;;  %v1730_v38 = vadd.f32 %v1725_v49, %v1646_v8  ;;  %v5497_v60 = vstv %s5421_s27  ;;  %v5501_v59 = vpop.permute.xlu0 %1600  ;;  %v5503_v63 = vpop.permute.xlu1 %1794  ;;  %v6948_v56 = vld [vmem:[#allocation133_spill] sm:$0xff]  ;;  %s5950_s27 = sld [smem:[#allocation10 + $0x84]] }
 0x276   : > { %2233 = vrot.lane.b32.xlu0 %v2230_v50, %s6760_s22  ;;  %v6947_v4 = vrot.slane %v6946_v46, 2  ;;  %v2560_v3 = vrot.slane %v2554_v35, 1  ;;  %v6663_v7 = vrot.slane %v5477_v10, 1  ;;  %v2292_v18 = vrot.slane %v2285_v0, 2 }
 0x277   : > { %v1473_v49 = vadd.f32 %v6948_v56, %v1389_v41  ;;  %v1528_v40 = vadd.f32 %v5186_v1, %v1452_v16  ;;  %v1667_v8 = vadd.f32 %v5286_v55, %v1583_v34  ;;  %v5515_v14 = vstv %s5446_s8  ;;  %2476 = vrot.lane.b32.xlu1 %v2472_v28, %s6763_s6  ;;  %v6949_v1 = vld [vmem:[#allocation42_spill] sm:$0xff]  ;;  %s6159_s8 = sld [smem:[#allocation10 + $0x87]] }
 0x278   : > { %v2251_v44 = vsel %vm891_vm5, %v6947_v4, %v2250_v25  ;;  %v2581_v50 = vrot.slane %v2575_v37, 1  ;;  %v6659_v25 = vrot.slane %v5491_v22, 1  ;;  %v2596_v0 = vmul.f32 %v5497_v60, %v5218_v53 }
 0x279   : > { %v5525_v35 = vmul.f32 %v5497_v60, %v5438_v32  ;;  %v5531_v55 = vadd.f32 %v6949_v1, %v5350_v57  ;;  %v1604_v16 = vadd.f32 %v5188_v45, %v1528_v40  ;;  %v1758_v37 = vadd.f32 %v1756_v9, %v1730_v38  ;;  %v1809_v41 = vpop.permute.xlu1 %1808  ;;  %v6952_v57 = vld [vmem:[#allocation134_spill] sm:$0xff] }
 0x27a   : > { %2254 = vrot.lane.b32.xlu0 %v2251_v44, %s6760_s22  ;;  %v6950_v28 = vrot.slane %v5053_v47, 2  ;;  %v2562_v34 = vsel %vm654_vm4, %v2560_v3, %v6663_v7  ;;  %v6951_v46 = vrot.slane %v5097_v6, 2  ;;  %v2306_v56 = vmul.f32 %v6952_v57, %v5037_v2  ;;  %v5553_v44 = vpop.permute.xlu0 %1621 }
 0x27b   : > { %v2617_v45 = vmul.f32 %v5515_v14, %v5218_v53  ;;  %v1545_v47 = vadd.f32 %v5247_v17, %v1473_v49  ;;  %v1688_v9 = vadd.f32 %v5320_v30, %v1604_v16  ;;  %v5551_v38 = vadd.f32 %v1809_v41, %v1758_v37  ;;  %2565 = vrot.lane.b32.xlu1 %v2562_v34, %s6760_s22 }
 0x27c   : > { %v2272_v33 = vsel %vm891_vm5, %v6950_v28, %v2271_v23  ;;  %v2293_v4 = vsel %vm891_vm5, %v6951_v46, %v2292_v18  ;;  %v1740_v23 = vadd.f32 %v5388_v61, %v1667_v8  ;;  %v2583_v6 = vsel %vm654_vm4, %v2581_v50, %v6659_v25  ;;  %v6953_v8 = vld [vmem:[#allocation43_spill] sm:$0xff] }
 0x27d   : > { %v2602_v3 = vrot.slane %v2596_v0, 1  ;;  %v6658_v18 = vrot.slane %v5525_v35, 1  ;;  %v5562_v17 = vmul.f32 %v5515_v14, %v5438_v32  ;;  %v1625_v30 = vadd.f32 %v5215_v19, %v1545_v47  ;;  %v1823_v0 = vpop.permute.xlu1 %1822 }
 0x27e   : > { %v1772_v61 = vadd.f32 %v5423_v48, %v1740_v23  ;;  %2275 = vrot.lane.b32.xlu0 %v2272_v33, %s6763_s6  ;;  %v2327_v49 = vmul.f32 %v5141_v12, %v5037_v2  ;;  %v5570_v40 = vstv %s5499_s4  ;;  %v5574_v50 = vadd.f32 %v6953_v8, %v5353_v42  ;;  %v5613_v57 = vpop.permute.xlu0 %1642  ;;  %s3310_s4 = sld [smem:[#allocation10 + $0x42]] }
 0x27f   : > { %v2313_v1 = vrot.slane %v2306_v56, 2  ;;  %v2623_v16 = vrot.slane %v2617_v45, 1  ;;  %v5577_v37 = vstv %s5509_s5  ;;  %v1709_v19 = vadd.f32 %v5358_v43, %v1625_v30  ;;  %2586 = vrot.lane.b32.xlu1 %v2583_v6, %s6760_s22  ;;  %s3311_s5 = sld [smem:[#allocation10 + $0x66]] }
 0x280   : > { %6954 = vst [vmem:[#allocation58_spill] sm:$0xff] %v5577_v37  ;;  %v1746_v48 = vadd.f32 %v5412_v52, %v1688_v9  ;;  %v5583_v28 = vadd.f32 %v1823_v0, %v1772_v61  ;;  %v5586_v2 = vstv %s5517_s14  ;;  %v6657_v12 = vrot.slane %v5562_v17, 1  ;;  %s3312_s14 = sld [smem:[#allocation10 + $0x8a]] }
 0x281   : > { %v2638_v42 = vmul.f32 %v5570_v40, %v5218_v53  ;;  %v5596_v33 = vmul.f32 %v5570_v40, %v5438_v32  ;;  %v5599_v43 = vstv %s5527_s12  ;;  %v2334_v41 = vrot.slane %v2327_v49, 2  ;;  %v1837_v56 = vpop.permute.xlu1 %1836  ;;  %s3321_s12 = sld [smem:[#allocation10 + $0x21]] }
 0x282   : > { %6955 = vst [vmem:[#allocation33_spill] sm:$0xff] %v5599_v43  ;;  %v1786_v52 = vadd.f32 %v5471_v51, %v1746_v48  ;;  %2296 = vrot.lane.b32.xlu0 %v2293_v4, %s6763_s6  ;;  %v1874_v34 = vmul.f32 %v5385_v58, %v5577_v37  ;;  %v5607_v46 = vmul.f32 %v5375_v54, %v5577_v37  ;;  %v6957_v4 = vrot.slane %v5124_v20, 2 }
 0x283   : > { %v2604_v51 = vsel %vm654_vm4, %v2602_v3, %v6658_v18  ;;  %v2659_v47 = vmul.f32 %v5586_v2, %v5218_v53  ;;  %v5625_v9 = vmul.f32 %v5586_v2, %v5438_v32  ;;  %v1752_v23 = vadd.f32 %v5431_v26, %v1709_v19 }
 0x284   : > { %6956 = vst [vmem:[#allocation83_spill] sm:$0xff] %v5607_v46  ;;  %v2314_v45 = vsel %vm891_vm5, %v6957_v4, %v2313_v1  ;;  %v5628_v6 = vadd.f32 %v1837_v56, %v1786_v52  ;;  %v1891_v30 = vmul.f32 %v5385_v58, %v5599_v43  ;;  %v5634_v3 = vmul.f32 %v5375_v54, %v5599_v43 }
 0x285   : > { %6958 = vst [vmem:[#allocation86_spill] sm:$0xff] %v5625_v9  ;;  %2607 = vrot.lane.b32.xlu1 %v2604_v51, %s6760_s22  ;;  %v2625_v20 = vsel %vm654_vm4, %v2623_v16, %v6657_v12  ;;  %v2644_v61 = vrot.slane %v2638_v42, 1  ;;  %v6656_v26 = vrot.slane %v5596_v33, 1  ;;  %v6960_v49 = vstv %s5164_s28  ;;  %v6962_v16 = vld [vmem:[#allocation46_spill] sm:$0xff]  ;;  %v1851_v56 = vpop.permute.xlu1 %1850  ;;  %s5664_s28 = sld [smem:[#allocation10 + $0x46]] }
 0x286   : > { %6959 = vst [vmem:[#allocation44_spill] sm:$0xff] %v5634_v3  ;;  %v2375_v8 = vmul.f32 %v6960_v49, %v5438_v32  ;;  %v1800_v0 = vadd.f32 %v5503_v63, %v1752_v23  ;;  %2317 = vrot.lane.b32.xlu0 %v2314_v45, %s6763_s6  ;;  %v6961_v1 = vrot.slane %v5162_v24, 2  ;;  %v1880_v48 = vrot.slane %v1874_v34, 1  ;;  %v6964_v23 = vld [vmem:[#allocation45_spill] sm:$0xff]  ;;  %v5668_v49 = vpop.permute.xlu0 %1663 }
 0x287   : > { %v6661_v52 = vrot.slane %v5607_v46, 1  ;;  %v819_v42 = vadd.f32 %v6962_v16, %v5469_v5  ;;  %v2665_v51 = vrot.slane %v2659_v47, 1  ;;  %v6662_v4 = vrot.slane %v5625_v9, 1 }
 0x288   : > { %v2335_v19 = vsel %vm891_vm5, %v6961_v1, %v2334_v41  ;;  %v5656_v63 = vstv %s5579_s26  ;;  %v5658_v45 = vadd.f32 %v1851_v56, %v1800_v0  ;;  %v1897_v24 = vrot.slane %v1891_v30, 1  ;;  %s3322_s26 = sld [smem:[#allocation10 + $0x45]] }
 0x289   : > { %v6660_v41 = vrot.slane %v5634_v3, 1  ;;  %v5662_v34 = vstv %s5588_s18  ;;  %v798_v5 = vadd.f32 %v6964_v23, %v5356_v31  ;;  %2628 = vrot.lane.b32.xlu1 %v2625_v20, %s6760_s22  ;;  %v2646_v47 = vsel %vm654_vm4, %v2644_v61, %v6656_v26  ;;  %v6970_v23 = vld [vmem:[#allocation91_spill] sm:$0xff]  ;;  %v1865_v26 = vpop.permute.xlu1 %1864  ;;  %s6305_s18 = sld [smem:[#allocation10 + $0x69]] }
 0x28a   : > { %6963 = vst [vmem:[#allocation94_spill] sm:$0xff] %v5662_v34  ;;  %v6965_v0 = vstv %s5199_s16  ;;  %v6966_v1 = vstv %s5226_s15  ;;  %2338 = vrot.lane.b32.xlu0 %v2335_v19, %s6763_s6  ;;  %v2680_v31 = vmul.f32 %v5656_v63, %v5218_v53  ;;  %v5687_v20 = vmul.f32 %v5656_v63, %v5438_v32  ;;  %s5695_s16 = sld [smem:[#allocation10 + $0x6a]]  ;;  %s5737_s15 = sld [smem:[#allocation10 + $0x8e]]  ;;  %v5739_v7 = vpop.permute.xlu0 %1684 }
 0x28b   : > { %v2389_v30 = vmul.f32 %v6965_v0, %v5438_v32  ;;  %v5680_v16 = vmul.f32 %v6966_v1, %v5438_v32  ;;  %v5690_v56 = vstv %s5609_s19  ;;  %v5693_v61 = vstv %s5611_s13  ;;  %s6332_s19 = sld [smem:[#allocation10 + $0x8d]]  ;;  %s6369_s13 = sld [smem:[#allocation12]] }
 0x28c   : > { %6967 = vst [vmem:[#allocation60_spill] sm:$0xff] %v5687_v20  ;;  %6968 = vst [vmem:[#allocation67_spill] sm:$0xff] %v5690_v56  ;;  %v900_v0 = vadd.f32 %v6970_v23, %v819_v42  ;;  %v1882_v19 = vsel %vm654_vm4, %v1880_v48, %v6661_v52  ;;  %v2667_v1 = vsel %vm654_vm4, %v2665_v51, %v6662_v4  ;;  %v5717_v48 = vstv %s5636_s21  ;;  %v6975_v23 = vld [vmem:[#allocation47_spill] sm:$0xff]  ;;  %s6390_s21 = sld [smem:[#allocation13]] }
 0x28d   : > { %6969 = vst [vmem:[#allocation66_spill] sm:$0xff] %v5693_v61  ;;  %v1908_v12 = vmul.f32 %v5385_v58, %v5662_v34  ;;  %v5707_v18 = vadd.f32 %v1865_v26, %v5551_v38  ;;  %v1899_v25 = vsel %vm654_vm4, %v1897_v24, %v6660_v41  ;;  %v5714_v42 = vmul.f32 %v5375_v54, %v5662_v34  ;;  %v1954_v3 = vpop.permute.xlu1 %1953 }
 0x28e   : > { %6972 = vst [vmem:[#allocation68_spill] sm:$0xff] %v5717_v48  ;;  %2649 = vrot.lane.b32.xlu1 %v2646_v47, %s6763_s6  ;;  %v2701_v51 = vmul.f32 %v5690_v56, %v5218_v53  ;;  %v5724_v38 = vmul.f32 %v5690_v56, %v5438_v32  ;;  %v1925_v26 = vmul.f32 %v5385_v58, %v5693_v61  ;;  %v2686_v52 = vrot.slane %v2680_v31, 1  ;;  %v6980_v56 = vld [vmem:[#allocation93_spill] sm:$0xff] }
 0x28f   : > { %6971 = vst [vmem:[#allocation30_spill] sm:$0xff] %v5714_v42  ;;  %v5730_v24 = vmul.f32 %v5375_v54, %v5693_v61  ;;  %v840_v41 = vadd.f32 %v6975_v23, %v5531_v55  ;;  %2380 = vrot.lane.b32.xlu0 %v2375_v8, %s6760_s22  ;;  %v1887_v47 = vadd.f32 %v1882_v19, %v5583_v28  ;;  %v1914_v34 = vrot.slane %v1908_v12, 1  ;;  %v6978_v28 = vld [vmem:[#allocation48_spill] sm:$0xff] }
 0x290   : > { %6973 = vst [vmem:[#allocation31_spill] sm:$0xff] %v5724_v38  ;;  %v6976_v61 = vstv %s5258_s11  ;;  %v2790_v43 = vmul.f32 %v5717_v48, %v5218_v53  ;;  %v5748_v55 = vmul.f32 %v5717_v48, %v5438_v32  ;;  %v861_v8 = vadd.f32 %v6978_v28, %v5574_v50  ;;  %s5772_s11 = sld [smem:[#allocation10 + $0x18]] }
 0x291   : > { %6974 = vst [vmem:[#allocation49_spill] sm:$0xff] %v5730_v24  ;;  %v2417_v46 = vmul.f32 %v6976_v61, %v5438_v32  ;;  %v5752_v31 = vadd.f32 %v1954_v3, %v1887_v47  ;;  %v6672_v19 = vrot.slane %v5714_v42, 1  ;;  %v5756_v23 = vstv %s5664_s28  ;;  %s6403_s28 = sld [smem:[#allocation12 + $0x1]] }
 0x292   : > { %6977 = vst [vmem:[#allocation54_spill] sm:$0xff] %v5748_v55  ;;  %6979 = vst [vmem:[#allocation73_spill] sm:$0xff] %v5756_v23  ;;  %2670 = vrot.lane.b32.xlu1 %v2667_v1, %s6763_s6  ;;  %v2707_v12 = vrot.slane %v2701_v51, 1  ;;  %v1931_v4 = vrot.slane %v1925_v26, 1  ;;  %v917_v9 = vadd.f32 %v6980_v56, %v840_v41  ;;  %v1904_v50 = vadd.f32 %v1899_v25, %v5628_v6  ;;  %v6983_v1 = vld [vmem:[#allocation50_spill] sm:$0xff]  ;;  %v1975_v26 = vpop.permute.xlu1 %1974 }
 0x293   : > { %2394 = vrot.lane.b32.xlu0 %v2389_v30, %s6760_s22  ;;  %v6981_v3 = vrot.slane %v5687_v20, 1  ;;  %v5770_v28 = vstv %s5695_s16  ;;  %v882_v51 = vadd.f32 %v6983_v1, %v798_v5  ;;  %v2796_v61 = vrot.slane %v2790_v43, 2  ;;  %v6984_v30 = vld [vmem:[#allocation95_spill] sm:$0xff]  ;;  %v5792_v43 = vpop.permute.xlu0 %1705  ;;  %s6418_s16 = sld [smem:[#allocation13 + $0x1]] }
 0x294   : > { %6982 = vst [vmem:[#allocation32_spill] sm:$0xff] %v5770_v28  ;;  %v2811_v41 = vmul.f32 %v5756_v23, %v5218_v53  ;;  %v5779_v25 = vadd.f32 %v6984_v30, %v861_v8  ;;  %v5781_v6 = vadd.f32 %v1975_v26, %v1904_v50  ;;  %v5788_v5 = vmul.f32 %v5756_v23, %v5438_v32  ;;  %v5806_v30 = vld [vmem:[#allocation2 + $0x58] sm:$0x3] }
 0x295   : > { %v2688_v47 = vsel %vm654_vm4, %v2686_v52, %v6981_v3  ;;  %v1916_v52 = vsel %vm654_vm4, %v1914_v34, %v6672_v19  ;;  %v6986_v56 = vrot.slane %v5724_v38, 1  ;;  %v6987_v50 = vrot.slane %v5730_v24, 1  ;;  %v6989_v19 = vld [vmem:[#allocation51_spill] sm:$0xff] }
 0x296   : > { %6985 = vst [vmem:[#allocation87_spill] sm:$0xff] %v5788_v5  ;;  %2691 = vrot.lane.b32.xlu1 %v2688_v47, %s6763_s6  ;;  %v6988_v34 = vstv %s5260_s1  ;;  %v2832_v26 = vmul.f32 %v5770_v28, %v5218_v53  ;;  %v972_v48 = vadd.f32 %v6989_v19, %v900_v0  ;;  %v5814_v47 = vmul.f32 %v5770_v28, %v5438_v32  ;;  %v6995_v19 = vld [vmem:[#allocation59_spill] sm:$0xff]  ;;  %s5833_s1 = sld [smem:[#allocation10 + $0x3c]] }
 0x297   : > { %v2709_v8 = vsel %vm654_vm4, %v2707_v12, %v6986_v56  ;;  %v1933_v3 = vsel %vm654_vm4, %v1931_v4, %v6987_v50  ;;  %v2431_v1 = vmul.f32 %v6988_v34, %v5438_v32  ;;  %2408 = vrot.lane.b32.xlu0 %v5680_v16, %s6760_s22  ;;  %v1921_v12 = vadd.f32 %v1916_v52, %v5658_v45  ;;  %v6992_v56 = vld [vmem:[#allocation104_spill] sm:$0xff]  ;;  %v1996_v34 = vpop.permute.xlu1 %1995 }
 0x298   : > { %6990 = vst [vmem:[#allocation92_spill] sm:$0xff] %v5814_v47  ;;  %v5817_v4 = vstv %s5737_s15  ;;  %v951_v50 = vadd.f32 %v6992_v56, %v882_v51  ;;  %v6993_v24 = vrot.slane %v5748_v55, 2  ;;  %v2817_v23 = vrot.slane %v2811_v41, 2  ;;  %v6997_v51 = vld [vmem:[#allocation53_spill] sm:$0xff]  ;;  %s6424_s15 = sld [smem:[#allocation12 + $0x2]] }
 0x299   : > { %6991 = vst [vmem:[#allocation74_spill] sm:$0xff] %v5817_v4  ;;  %v6994_v0 = vstv %s5296_s23  ;;  %v1056_v45 = vadd.f32 %v6995_v19, %v972_v48  ;;  %v5827_v52 = vadd.f32 %v1996_v34, %v1921_v12  ;;  %v5831_v38 = vstv %s5758_s10  ;;  %v5852_v19 = vpop.permute.xlu0 %1726  ;;  %s5872_s23 = sld [smem:[#allocation10 + $0x6b]]  ;;  %s6437_s10 = sld [smem:[#allocation13 + $0x2]] }
 0x29a   : > { %v2798_v42 = vsel %vm891_vm5, %v2796_v61, %v6993_v24  ;;  %v2445_v16 = vmul.f32 %v6994_v0, %v5438_v32  ;;  %6996 = vst [vmem:[#allocation100_spill] sm:$0xff] %v5831_v38  ;;  %v993_v56 = vadd.f32 %v6997_v51, %v917_v9  ;;  %2712 = vrot.lane.b32.xlu1 %v2709_v8, %s6763_s6  ;;  %v2838_v12 = vrot.slane %v2832_v26, 2  ;;  %v7000_v8 = vld [vmem:[#allocation61_spill] sm:$0xff] }
 0x29b   : > { %v2853_v24 = vmul.f32 %v5817_v4, %v5218_v53  ;;  %v5841_v61 = vmul.f32 %v5817_v4, %v5438_v32  ;;  %v2556_v48 = vmul.f32 %v5444_v15, %v5806_v30  ;;  %2422 = vrot.lane.b32.xlu0 %v2417_v46, %s6760_s22  ;;  %v1938_v41 = vadd.f32 %v1933_v3, %v5707_v18  ;;  %v2017_v51 = vpop.permute.xlu1 %2016  ;;  %v7003_v46 = vld [vmem:[#allocation98_spill] sm:$0xff] }
 0x29c   : > { %v5849_v34 = vstv %s5772_s11  ;;  %v1077_v0 = vadd.f32 %v7000_v8, %v993_v56  ;;  %7001 = vst [vmem:[#allocation34_spill] sm:$0xff] %v5852_v19  ;;  %v7002_v28 = vstv %s5325_s7  ;;  %v2874_v15 = vmul.f32 %v5831_v38, %v5218_v53  ;;  %s5895_s7 = sld [smem:[#allocation10 + $0x60]]  ;;  %s6448_s11 = sld [smem:[#allocation12 + $0x3]] }
 0x29d   : > { %6998 = vst [vmem:[#allocation62_spill] sm:$0xff] %v5841_v61  ;;  %6999 = vst [vmem:[#allocation115_spill] sm:$0xff] %v5849_v34  ;;  %v2459_v4 = vmul.f32 %v7002_v28, %v5438_v32  ;;  %v5861_v18 = vmul.f32 %v5831_v38, %v5438_v32  ;;  %v1129_v3 = vadd.f32 %v7003_v46, %v1056_v45  ;;  %v7004_v56 = vrot.slane %v5788_v5, 2 }
 0x29e   : > { %v5864_v26 = vadd.f32 %v2017_v51, %v1938_v41  ;;  %v5870_v9 = vstv %s5790_s20  ;;  %2801 = vrot.lane.b32.xlu1 %v2798_v42, %s6760_s22  ;;  %v2859_v28 = vrot.slane %v2853_v24, 2  ;;  %v2563_v20 = vrot.slane %v2556_v48, 1  ;;  %v7009_v48 = vld [vmem:[#allocation103_spill] sm:$0xff]  ;;  %s6461_s20 = sld [smem:[#allocation13 + $0x3]] }
 0x29f   : > { %v2819_v8 = vsel %vm891_vm5, %v2817_v23, %v7004_v56  ;;  %7005 = vst [vmem:[#allocation35_spill] sm:$0xff] %v5870_v9  ;;  %v2110_v45 = vmul.f32 %v5385_v58, %v5849_v34  ;;  %2436 = vrot.lane.b32.xlu0 %v2431_v1, %s6763_s6  ;;  %v7006_v41 = vrot.slane %v5814_v47, 2  ;;  %v7007_v51 = vstv %s5327_s29  ;;  %v2038_v55 = vpop.permute.xlu1 %2037  ;;  %s5942_s29 = sld [smem:[#allocation10 + $0x8f]] }
 0x2a0   : > { %v2473_v46 = vmul.f32 %v7007_v51, %v5438_v32  ;;  %v5887_v42 = vmul.f32 %v5375_v54, %v5849_v34  ;;  %v2577_v24 = vmul.f32 %v5463_v21, %v5806_v30  ;;  %v1135_v56 = vadd.f32 %v7009_v48, %v1077_v0  ;;  %v7011_v51 = vld [vmem:[#allocation37_spill] sm:$0xff]  ;;  %v5906_v0 = vpop.permute.xlu0 %1768 }
 0x2a1   : > { %v2840_v23 = vsel %vm891_vm5, %v2838_v12, %v7006_v41  ;;  %v2880_v38 = vrot.slane %v2874_v15, 2  ;;  %v2895_v47 = vmul.f32 %v5870_v9, %v5218_v53  ;;  %v7010_v12 = vld [vmem:[#allocation55_spill] sm:$0xff]  ;;  %v1161_v34 = vadd.f32 %v7011_v51, %v1129_v3 }
 0x2a2   : > { %7008 = vst [vmem:[#allocation36_spill] sm:$0xff] %v5887_v42  ;;  %v1014_v41 = vadd.f32 %v7010_v12, %v5779_v25  ;;  %v5901_v5 = vadd.f32 %v2038_v55, %v5752_v31  ;;  %v5904_v21 = vstv %s5833_s1  ;;  %2822 = vrot.lane.b32.xlu1 %v2819_v8, %s6760_s22  ;;  %v7013_v15 = vrot.slane %v5841_v61, 2  ;;  %v7015_v31 = vld [vmem:[#allocation64_spill] sm:$0xff]  ;;  %v7018_v61 = vld [vmem:[#allocation39_spill] sm:$0xff]  ;;  %s6477_s1 = scalar_lea.vmem [#allocation15], %s3955_s9  ;;  %s3352_s9 = sshll.u32 %s3762_s25, 10 }
 0x2a3   : > { %7012 = vst [vmem:[#allocation102_spill] sm:$0xff] %v5904_v21  ;;  %v7014_v1 = vrot.slane %v5477_v10, 1  ;;  %v2116_v25 = vrot.slane %v2110_v45, 2  ;;  %v5919_v55 = vmul.f32 %v5870_v9, %v5438_v32  ;;  %v7016_v12 = vld [vmem:[#allocation88_spill] sm:$0xff]  ;;  %2450 = vrot.lane.b32.xlu0 %v2445_v16, %s6763_s6  ;;  %v6688_v8 = vrot.slane %v5887_v42, 2 }
 0x2a4   : > { %v2861_v48 = vsel %vm891_vm5, %v2859_v28, %v7013_v15  ;;  %v1098_v3 = vadd.f32 %v7015_v31, %v1014_v41  ;;  %v1217_v51 = vadd.f32 %v7016_v12, %v1161_v34  ;;  %v2584_v28 = vrot.slane %v2577_v24, 1  ;;  %v7017_v15 = vld [vmem:[#allocation57_spill] sm:$0xff] }
 0x2a5   : > { %v5915_v37 = vsel %vm654_vm4, %v7014_v1, %v2563_v20  ;;  %v1035_v10 = vadd.f32 %v7017_v15, %v951_v50  ;;  %v1175_v20 = vadd.f32 %v7018_v61, %v1135_v56  ;;  %v2059_v1 = vpop.permute.xlu1 %2058  ;;  %v7019_v45 = vrot.slane %v5861_v18, 2  ;;  %v7021_v50 = vld [vmem:[#allocation71_spill] sm:$0xff]  ;;  %v7022_v56 = vld [vmem:[#allocation96_spill] sm:$0xff]  ;;  %v7024_v15 = vld [vmem:[#allocation117_spill] sm:$0xff] }
 0x2a6   : > { %v2127_v9 = vmul.f32 %v5385_v58, %v5904_v21  ;;  %v5933_v41 = vadd.f32 %v2059_v1, %v5781_v6  ;;  %v2901_v34 = vrot.slane %v2895_v47, 2  ;;  %v5937_v16 = vmul.f32 %v5375_v54, %v5904_v21  ;;  %2843 = vrot.lane.b32.xlu1 %v2840_v23, %s6760_s22  ;;  %v7023_v47 = vld [vmem:[#allocation109_spill] sm:$0xff] }
 0x2a7   : > { %v2882_v19 = vsel %vm891_vm5, %v2880_v38, %v7019_v45  ;;  %v5940_v24 = vstv %s5872_s23  ;;  %v1119_v61 = vadd.f32 %v7021_v50, %v1035_v10  ;;  %v1231_v38 = vadd.f32 %v7022_v56, %v1175_v20  ;;  %2464 = vrot.lane.b32.xlu0 %v2459_v4, %s6763_s6  ;;  %v5961_v45 = vpop.permute.xlu0 %1782  ;;  %s3029_s23 = sshll.u32 %s6477_s1, 4  ;;  %s6553_s23 = int_to_ptr.vmem [resolvable:$true] %s3029_s23 }
 0x2a8   : > { %7020 = vst [vmem:[#allocation75_spill] sm:$0xff] %v5940_v24  ;;  %v2598_v6 = vmul.f32 %v5497_v60, %v5806_v30  ;;  %v1141_v12 = vadd.f32 %v7023_v47, %v1098_v3  ;;  %v1276_v1 = vadd.f32 %v7024_v15, %v1217_v51  ;;  %v2118_v10 = vsel %vm891_vm5, %v2116_v25, %v6688_v8  ;;  %v7026_v51 = vld [vmem:[#allocation76_spill] sm:$0xff]  ;;  %v7027_v25 = vld [vmem:[#allocation127_spill] sm:$0xff]  ;;  %s3607_s25 = scalar_lea.vmem %s6553_s23, 1024 }
 0x2a9   : > { %v7025_v20 = vrot.slane %v5491_v22, 1  ;;  %v2080_v50 = vpop.permute.xlu1 %2079  ;;  %v2133_v60 = vrot.slane %v2127_v9, 2  ;;  %v2916_v56 = vmul.f32 %v5940_v24, %v5218_v53  ;;  %v5967_v3 = vmul.f32 %v5940_v24, %v5438_v32  ;;  %v7029_v8 = vld [vmem:[#allocation123_spill] sm:$0xff]  ;;  %p3608_p0 = scmp.ne.s32.totalorder %s6553_s23, %s3607_s25 }
 0x2aa   : > { %v5970_v4 = vstv %s5895_s7  ;;  %v1189_v47 = vadd.f32 %v7026_v51, %v1141_v12  ;;  %v1348_v15 = vadd.f32 %v7027_v25, %v1276_v1  ;;  %v5975_v22 = vadd.f32 %v2080_v50, %v5827_v52  ;;  %2864 = vrot.lane.b32.xlu1 %v2861_v48, %s6760_s22  ;;  %v7031_v12 = vld [vmem:[#allocation111_spill] sm:$0xff]  ;;  %v7032_v48 = vld [vmem:[#allocation81_spill] sm:$0xff] }
 0x2ab   : > { %v2585_v23 = vsel %vm654_vm4, %v7025_v20, %v2584_v28  ;;  %v2134_v28 = vrot.slane %v5937_v16, 2  ;;  %v7028_v20 = vld [vmem:[#allocation112_spill] sm:$0xff]  ;;  %v1293_v31 = vadd.f32 %v7029_v8, %v1231_v38  ;;  %v7030_v42 = vrot.slane %v5919_v55, 2  ;;  %2478 = vrot.lane.b32.xlu0 %v2473_v46, %s6763_s6  ;;  %p3609_p1 = pnand %p3608_p0, %p3853_p6 }
 0x2ac   : > { %v1147_v9 = vadd.f32 %v7028_v20, %v1119_v61  ;;  %v2605_v24 = vrot.slane %v2598_v6, 1  ;;  %v1245_v51 = vadd.f32 %v7031_v12, %v1189_v47  ;;  %v1432_v1 = vadd.f32 %v5228_v11, %v1348_v15  ;;  %v7033_v38 = vld [vmem:[#allocation132_spill] sm:$0xff]  ;;  %v7034_v15 = vld [vmem:[#allocation118_spill] sm:$0xff] }
 0x2ad   : > { %v2903_v21 = vsel %vm891_vm5, %v2901_v34, %v7030_v42  ;;  %v2144_v52 = vmul.f32 %v5385_v58, %v5970_v4  ;;  %v5991_v8 = vmul.f32 %v5375_v54, %v5970_v4  ;;  %v1369_v50 = vadd.f32 %v7033_v38, %v1293_v31  ;;  %v2101_v42 = vpop.permute.xlu1 %2100  ;;  %v7037_v38 = vld [vmem:[#allocation135_spill] sm:$0xff]  ;;  %p3610_p5 = pneg %p3609_p1 }
 0x2ae   : > { %v1203_v61 = vadd.f32 %v7032_v48, %v1147_v9  ;;  %v2922_v34 = vrot.slane %v2916_v56, 2  ;;  %v2923_v6 = vrot.slane %v5967_v3, 2  ;;  %v5997_v11 = vadd.f32 %v2101_v42, %v5864_v26  ;;  %v6009_v9 = vpop.permute.xlu0 %1796  ;;  %2885 = vrot.lane.b32.xlu1 %v2882_v19, %s6763_s6 }
 0x2af   : > { %v2135_v46 = vsel %vm891_vm5, %v2133_v60, %v2134_v28  ;;  %v6003_v47 = vstv %s5942_s29  ;;  %v2619_v25 = vmul.f32 %v5515_v14, %v5806_v30  ;;  %v1453_v31 = vadd.f32 %v5278_v27, %v1369_v50  ;;  %v7036_v60 = vld [vmem:[#allocation129_spill] sm:$0xff]  ;;  %2567 = vrot.lane.b32.xlu0 %v5915_v37, %s6760_s22 }
 0x2b0   : > { %v1259_v20 = vadd.f32 %v7034_v15, %v1203_v61  ;;  %v7035_v26 = vrot.slane %v5525_v35, 1  ;;  %v6016_v12 = vstv %s5950_s27  ;;  %v1310_v48 = vadd.f32 %v7036_v60, %v1245_v51  ;;  %s7091_s27 = sld [smem:[#allocation142_spill]] }
 0x2b1   : > { %v1512_v42 = vadd.f32 %v7037_v38, %v1432_v1  ;;  %v2123_v14 = vadd.f32 %v2118_v10, %v5901_v5  ;;  %v2150_v27 = vrot.slane %v2144_v52, 2  ;;  %v2190_v61 = vpop.permute.xlu1 %2189  ;;  %v2924_v19 = vsel %vm891_vm5, %v2922_v34, %v2923_v6  ;;  %v7038_v52 = vld [vmem:[#allocation131_spill] sm:$0xff] }
 0x2b2   : > { %v2606_v56 = vsel %vm654_vm4, %v7035_v26, %v2605_v24  ;;  %v2151_v35 = vrot.slane %v5991_v8, 2  ;;  %v2937_v24 = vmul.f32 %v6003_v47, %v5218_v53  ;;  %v6031_v51 = vmul.f32 %v6003_v47, %v5438_v32  ;;  %v426_v15 = vpop.xlane.xlu0 %425  ;;  %2906 = vrot.lane.b32.xlu1 %v2903_v21, %s6763_s6 }
 0x2b3   : > { %v1390_v1 = vadd.f32 %v5132_v39, %v1310_v48  ;;  %v1584_v37 = vadd.f32 %v5448_v13, %v1512_v42  ;;  %v6035_v5 = vadd.f32 %v2190_v61, %v2123_v14  ;;  %v2161_v10 = vmul.f32 %v5385_v58, %v6016_v12  ;;  %2588 = vrot.lane.b32.xlu0 %v2585_v23, %s6760_s22  ;;  %v7039_v23 = vld [vmem:[#allocation52_spill] sm:$0xff]  ;;  %v7040_v42 = vld [vmem:[#allocation65_spill] sm:$0xff] }
 0x2b4   : > { %v1327_v50 = vadd.f32 %v7038_v52, %v1259_v20  ;;  %v1529_v34 = vadd.f32 %v5183_v62, %v1453_v31  ;;  %v2626_v53 = vrot.slane %v2619_v25, 1  ;;  %v6044_v32 = vmul.f32 %v5375_v54, %v6016_v12  ;;  %v7041_v61 = vld [vmem:[#allocation80_spill] sm:$0xff] }
 0x2b5   : > { %v1474_v39 = vadd.f32 %v5333_v36, %v1390_v1  ;;  %v1668_v13 = vadd.f32 %v5668_v49, %v1584_v37  ;;  %v427_v26 = vrot.slane %v426_v15, 4  ;;  %v2140_v58 = vadd.f32 %v2135_v46, %v5933_v41  ;;  %v2211_v31 = vpop.permute.xlu1 %2210 }
 0x2b6   : > { %v1411_v20 = vadd.f32 %v5180_v29, %v1327_v50  ;;  %v1605_v62 = vadd.f32 %v5501_v59, %v1529_v34  ;;  %v2943_v21 = vrot.slane %v2937_v24, 2  ;;  %v2944_v25 = vrot.slane %v6031_v51, 2  ;;  %v1811_v29 = vpop.permute.xlu0 %1810  ;;  %2927 = vrot.lane.b32.xlu1 %v2924_v19, %s6763_s6 }
 0x2b7   : > { %v428_v60 = vadd.f32 %v427_v26, %v426_v15  ;;  %v6053_v48 = vadd.f32 %v2211_v31, %v2140_v58  ;;  %v2152_v36 = vsel %vm891_vm5, %v2150_v27, %v2151_v35  ;;  %v2167_v49 = vrot.slane %v2161_v10, 2  ;;  %2609 = vrot.lane.b32.xlu0 %v2606_v56, %s6760_s22 }
 0x2b8   : > { %v1495_v38 = vadd.f32 %v7039_v23, %v1411_v20  ;;  %v1689_v41 = vadd.f32 %v5739_v7, %v1605_v62  ;;  %v2168_v59 = vrot.slane %v6044_v32, 2  ;;  %v2640_v46 = vmul.f32 %v5570_v40, %v5806_v30  ;;  %v7089_v32 = vld [vmem:[#allocation69_spill] sm:$0xff] }
 0x2b9   : > { %v1546_v14 = vadd.f32 %v7040_v42, %v1474_v39  ;;  %v1741_v24 = vadd.f32 %v7041_v61, %v1668_v13  ;;  %v429_v1 = vrot.slane %v428_v60, 2  ;;  %v2157_v27 = vadd.f32 %v2152_v36, %v5975_v22  ;;  %v2232_v10 = vpop.permute.xlu1 %2231  ;;  %v7044_v39 = vld [vmem:[#allocation29_spill] sm:$0xff]  ;;  %v7047_v42 = vld [vmem:[#allocation34_spill] sm:$0xff] }
 0x2ba   : > { %v7042_v37 = vstv %s5313_s24  ;;  %v2945_v19 = vsel %vm891_vm5, %v2943_v21, %v2944_v25  ;;  %v7043_v52 = vrot.slane %v5562_v17, 1  ;;  %v2661_v50 = vmul.f32 %v5586_v2, %v5806_v30  ;;  %v1825_v58 = vpop.permute.xlu0 %1824  ;;  %s6115_s24 = sld [smem:[#allocation10 + $0x1b]] }
 0x2bb   : > { %v1745_v7 = vmul.f32 %v5375_v54, %v7042_v37  ;;  %v1626_v56 = vadd.f32 %v5553_v44, %v1546_v14  ;;  %v1773_v22 = vadd.f32 %v5906_v0, %v1741_v24  ;;  %v2237_v34 = vadd.f32 %v2232_v10, %v2157_v27  ;;  %2948 = vrot.lane.b32.xlu1 %v2945_v19, %s6763_s6  ;;  %v7050_v19 = vld [vmem:[#allocation86_spill] sm:$0xff] }
 0x2bc   : > { %v2627_v40 = vsel %vm654_vm4, %v7043_v52, %v2626_v53  ;;  %v430_v15 = vadd.f32 %v429_v1, %v428_v60  ;;  %v1563_v13 = vadd.f32 %v7044_v39, %v1495_v38  ;;  %v2169_v17 = vsel %vm891_vm5, %v2167_v49, %v2168_v59  ;;  %v7048_v1 = vld [vmem:[#allocation58_spill] sm:$0xff] }
 0x2bd   : > { %v1747_v26 = vadd.f32 %v1745_v7, %v1689_v41  ;;  %v2647_v53 = vrot.slane %v2640_v46, 1  ;;  %v1710_v2 = vadd.f32 %v5792_v43, %v1626_v56  ;;  %v1829_v20 = vadd.f32 %v1825_v58, %v1773_v22  ;;  %2630 = vrot.lane.b32.xlu0 %v2627_v40, %s6760_s22  ;;  %v2253_v21 = vpop.permute.xlu1 %2252  ;;  %v7052_v56 = vld [vmem:[#allocation67_spill] sm:$0xff] }
 0x2be   : > { %v2174_v44 = vadd.f32 %v2169_v17, %v5997_v11  ;;  %v431_v0 = vrot.slane %v430_v15, 1  ;;  %v7045_v62 = vstv %s5315_s0  ;;  %v1647_v60 = vadd.f32 %v5613_v57, %v1563_v13  ;;  %v1839_v38 = vpop.permute.xlu0 %1838  ;;  %s6126_s0 = sld [smem:[#allocation10 + $0x3f]] }
 0x2bf   : > { %v1751_v31 = vmul.f32 %v5375_v54, %v7045_v62  ;;  %v1787_v36 = vadd.f32 %v5961_v45, %v1747_v26  ;;  %v7046_v43 = vrot.slane %v5596_v33, 1  ;;  %v2668_v46 = vrot.slane %v2661_v50, 1  ;;  %v6101_v45 = vld [vmem:[#allocation2 + $0x40] sm:$0x3]  ;;  %v7056_v62 = vld [vmem:[#allocation68_spill] sm:$0xff] }
 0x2c0   : > { %v2258_v23 = vadd.f32 %v2253_v21, %v2174_v44  ;;  %v432_v49 = vadd.f32 %v431_v0, %v430_v15  ;;  %v2682_v11 = vmul.f32 %v5656_v63, %v5806_v30  ;;  %v1731_v14 = vadd.f32 %v7047_v42, %v1647_v60  ;;  %v7060_v42 = vld [vmem:[#allocation31_spill] sm:$0xff] }
 0x2c1   : > { %v2648_v41 = vsel %vm654_vm4, %v7046_v43, %v2647_v53  ;;  %v1753_v61 = vadd.f32 %v1751_v31, %v1710_v2  ;;  %v1843_v24 = vadd.f32 %v1839_v38, %v1787_v36  ;;  %v2274_v57 = vpop.permute.xlu1 %2273  ;;  %v1876_v27 = vmul.f32 %v6101_v45, %v7048_v1  ;;  %v7054_v53 = vld [vmem:[#allocation60_spill] sm:$0xff]  ;;  %v7057_v36 = vld [vmem:[#allocation83_spill] sm:$0xff]  ;;  %v7059_v38 = vld [vmem:[#allocation94_spill] sm:$0xff] }
 0x2c2   : > { %3355 = vpush %v432_v49  ;;  %2651 = vrot.lane.b32.xlu0 %v2648_v41, %s6763_s6  ;;  %v7049_v37 = vstv %s5347_s30  ;;  %v2279_v63 = vadd.f32 %v2274_v57, %v6035_v5  ;;  %v1853_v10 = vpop.permute.xlu0 %1852  ;;  %v7051_v52 = vrot.slane %v7050_v19, 1  ;;  %v2689_v50 = vrot.slane %v2682_v11, 1  ;;  %s6140_s30 = sld [smem:[#allocation10 + $0x63]] }
 0x2c3   : > { %v1801_v33 = vadd.f32 %v6009_v9, %v1753_v61  ;;  %v1757_v7 = vmul.f32 %v5375_v54, %v7049_v37  ;;  %v2703_v22 = vmul.f32 %v7052_v56, %v5806_v30  ;;  %v1883_v13 = vrot.slane %v1876_v27, 1  ;;  %v7053_v54 = vld [vmem:[#allocation33_spill] sm:$0xff] }
 0x2c4   : > { %v2669_v40 = vsel %vm654_vm4, %v7051_v52, %v2668_v46  ;;  %v1893_v5 = vmul.f32 %v6101_v45, %v7053_v54  ;;  %v7055_v2 = vrot.slane %v7054_v53, 1  ;;  %v2792_v31 = vmul.f32 %v7056_v62, %v5806_v30  ;;  %v7062_v27 = vld [vmem:[#allocation73_spill] sm:$0xff]  ;;  %v7065_v52 = vld [vmem:[#allocation66_spill] sm:$0xff]  ;;  %v7068_v53 = vld [vmem:[#allocation32_spill] sm:$0xff] }
 0x2c5   : > { %v1759_v15 = vadd.f32 %v1757_v7, %v1731_v14  ;;  %v1857_v39 = vadd.f32 %v1853_v10, %v1801_v33  ;;  %v2295_v9 = vpop.permute.xlu1 %2294  ;;  %v2710_v0 = vrot.slane %v2703_v22, 1  ;;  %v1910_v43 = vmul.f32 %v6101_v45, %v7059_v38  ;;  %v6148_v22 = vld [vmem:[#allocation2 + $0x48] sm:$0xff]  ;;  %v7071_v38 = vld [vmem:[#allocation87_spill] sm:$0xff] }
 0x2c6   : > { %2672 = vrot.lane.b32.xlu0 %v2669_v40, %s6763_s6  ;;  %v2300_v58 = vadd.f32 %v2295_v9, %v6053_v48  ;;  %v1867_v17 = vpop.permute.xlu0 %1866  ;;  %v2690_v44 = vsel %vm654_vm4, %v7055_v2, %v2689_v50  ;;  %v1900_v49 = vrot.slane %v1893_v5, 1  ;;  %v7061_v14 = vrot.slane %v7060_v42, 1  ;;  %v7073_v42 = vld [vmem:[#allocation74_spill] sm:$0xff] }
 0x2c7   : > { %v1815_v26 = vadd.f32 %v1811_v29, %v1759_v15  ;;  %v7058_v29 = vrot.slane %v7057_v36, 1  ;;  %v2799_v57 = vrot.slane %v2792_v31, 2  ;;  %v2349_v1 = vstv %s6115_s24  ;;  %s6551_s24 = scalar_lea.hbm %s7091_s27, %s3352_s9 }
 0x2c8   : > { %v2711_v61 = vsel %vm654_vm4, %v7061_v14, %v2710_v0  ;;  %v2813_v33 = vmul.f32 %v7062_v27, %v5806_v30  ;;  %v1917_v19 = vrot.slane %v1910_v43, 1  ;;  %v1927_v40 = vmul.f32 %v6101_v45, %v7065_v52  ;;  %v7069_v0 = vld [vmem:[#allocation30_spill] sm:$0xff]  ;;  %v7074_v27 = vld [vmem:[#allocation49_spill] sm:$0xff]  ;;  %v7076_v52 = vld [vmem:[#allocation92_spill] sm:$0xff] }
 0x2c9   : > { %v1871_v21 = vadd.f32 %v1867_v17, %v1815_v26  ;;  %v2316_v60 = vpop.permute.xlu1 %2315  ;;  %v1884_v48 = vsel %vm654_vm4, %v7058_v29, %v1883_v13  ;;  %v2350_v15 = vmul.f32 %v6148_v22, %v2349_v1  ;;  %v7066_v13 = vld [vmem:[#allocation54_spill] sm:$0xff]  ;;  %v2355_v17 = vstv %s6126_s0  ;;  %s3016_s0 = scalar_lea.sflag [#allocation5], %s3952_s3 }
 0x2ca   : > { %2693 = vrot.lane.b32.xlu0 %v2690_v44, %s6763_s6  ;;  %v2321_v41 = vadd.f32 %v2316_v60, %v2237_v34  ;;  %v1888_v46 = vadd.f32 %v1884_v48, %v1829_v20  ;;  %v1956_v11 = vpop.permute.xlu0 %1955  ;;  %v7063_v34 = vld [vmem:[#allocation44_spill] sm:$0xff]  ;;  %v7067_v54 = vrot.slane %v7066_v13, 2  ;;  %v2820_v26 = vrot.slane %v2813_v33, 2 }
 0x2cb   : > { %v7064_v20 = vrot.slane %v7063_v34, 1  ;;  %v2834_v2 = vmul.f32 %v7068_v53, %v5806_v30  ;;  %v7070_v62 = vrot.slane %v7069_v0, 1  ;;  %v1934_v60 = vrot.slane %v1927_v40, 1 }
 0x2cc   : > { %v1960_v37 = vadd.f32 %v1956_v11, %v1888_v46  ;;  %v2800_v5 = vsel %vm891_vm5, %v7067_v54, %v2799_v57  ;;  %v2356_v48 = vmul.f32 %v6148_v22, %v2355_v17  ;;  %v7072_v43 = vrot.slane %v7071_v38, 2 }
 0x2cd   : > { %v2337_v7 = vpop.permute.xlu1 %2336  ;;  %v1901_v10 = vsel %vm654_vm4, %v7064_v20, %v1900_v49  ;;  %v1918_v31 = vsel %vm654_vm4, %v7070_v62, %v1917_v19  ;;  %v2361_v11 = vstv %s6140_s30  ;;  %v2855_v14 = vmul.f32 %v7073_v42, %v5806_v30  ;;  %v7083_v42 = vld [vmem:[#allocation75_spill] sm:$0xff]  ;;  %s3703_s30 = smov [#allocation15]  }
 0x2ce   : > { %2714 = vrot.lane.b32.xlu0 %v2711_v61, %s6763_s6  ;;  %v2342_v50 = vadd.f32 %v2337_v7, %v2258_v23  ;;  %v1905_v56 = vadd.f32 %v1901_v10, %v1843_v24  ;;  %v1977_v9 = vpop.permute.xlu0 %1976  ;;  %v2352_v24 = vadd.f32 %v2350_v15, %v2279_v63  ;;  %v1922_v29 = vadd.f32 %v1918_v31, %v1857_v39  ;;  %v7081_v31 = vld [vmem:[#allocation35_spill] sm:$0xff] }
 0x2cf   : > { %v2821_v46 = vsel %vm891_vm5, %v7072_v43, %v2820_v26  ;;  %v2841_v63 = vrot.slane %v2834_v2, 2  ;;  %v2358_v57 = vadd.f32 %v2356_v48, %v2300_v58  ;;  %v7075_v33 = vrot.slane %v7074_v27, 1  ;;  %v7078_v58 = vld [vmem:[#allocation100_spill] sm:$0xff] }
 0x2d0   : > { %v1981_v23 = vadd.f32 %v1977_v9, %v1905_v56  ;;  %v2362_v10 = vmul.f32 %v6148_v22, %v2361_v11  ;;  %v7077_v40 = vrot.slane %v7076_v52, 2  ;;  %v2862_v15 = vrot.slane %v2855_v14, 2  ;;  %v7086_v52 = vld [vmem:[#allocation102_spill] sm:$0xff] }
 0x2d1   : > { %v2379_v44 = vpop.permute.xlu1 %2378  ;;  %v1935_v7 = vsel %vm654_vm4, %v7075_v33, %v1934_v60  ;;  %v2367_v9 = vstv %s6159_s8  ;;  %v2876_v13 = vmul.f32 %v7078_v58, %v5806_v30  ;;  %v2897_v60 = vmul.f32 %v7081_v31, %v5806_v30  ;;  %s3611_s8 = sshll.u32 %s3703_s30, 4  ;;  %s3612_s8 = int_to_ptr.vmem [resolvable:$false] %s3611_s8 }
 0x2d2   : > { %2803 = vrot.lane.b32.xlu0 %v2800_v5, %s6760_s22  ;;  %v6165_v36 = vadd.f32 %v2379_v44, %v2352_v24  ;;  %v1998_v49 = vpop.permute.xlu0 %1997  ;;  %v1939_v20 = vadd.f32 %v1935_v7, %v1871_v21  ;;  %v2842_v56 = vsel %vm891_vm5, %v7077_v40, %v2841_v63  ;;  %v2364_v5 = vadd.f32 %v2362_v10, %v2321_v41  ;;  %v7079_v24 = vld [vmem:[#allocation62_spill] sm:$0xff]  ;;  %p3614_p4 = scmp.lt.s32.totalorder %s6553_s23, %s3612_s8 }
 0x2d3   : > { %v2002_v61 = vadd.f32 %v1998_v49, %v1922_v29  ;;  %v2368_v21 = vmul.f32 %v6148_v22, %v2367_v9  ;;  %v7080_v44 = vrot.slane %v7079_v24, 2  ;;  %v2883_v62 = vrot.slane %v2876_v13, 2 }
 0x2d4   : > { %v7082_v43 = vrot.slane %v5861_v18, 2  ;;  %v2904_v63 = vrot.slane %v2897_v60, 2  ;;  %v2918_v14 = vmul.f32 %v7083_v42, %v5806_v30  ;;  %v7085_v33 = vrot.slane %v5919_v55, 2 }
 0x2d5   : > { %v2393_v39 = vpop.permute.xlu1 %2392  ;;  %v2863_v0 = vsel %vm891_vm5, %v7080_v44, %v2862_v15  ;;  %v2370_v48 = vadd.f32 %v2368_v21, %v2342_v50  ;;  %v2129_v40 = vmul.f32 %v6101_v45, %v7086_v52  ;;  %v2146_v21 = vmul.f32 %v6101_v45, %v5970_v4 }
 0x2d6   : > { %2824 = vrot.lane.b32.xlu0 %v2821_v46, %s6760_s22  ;;  %v6180_v34 = vadd.f32 %v2393_v39, %v2358_v57  ;;  %v2019_v19 = vpop.permute.xlu0 %2018  ;;  %v2884_v46 = vsel %vm891_vm5, %v7082_v43, %v2883_v62  ;;  %v2905_v7 = vsel %vm891_vm5, %v7085_v33, %v2904_v63  ;;  %v2925_v18 = vrot.slane %v2918_v14, 2 }
 0x2d7   : > { %v2023_v54 = vadd.f32 %v2019_v19, %v1939_v20  ;;  %v2939_v20 = vmul.f32 %v6003_v47, %v5806_v30  ;;  %v7087_v47 = vld [vmem:[#allocation36_spill] sm:$0xff]  ;;  %v2163_v62 = vmul.f32 %v6101_v45, %v6016_v12 }
 0x2d8   : > { %v2926_v55 = vsel %vm891_vm5, %v2923_v6, %v2925_v18 }
 0x2d9   : > { %v2407_v26 = vpop.permute.xlu1 %2406  ;;  %v2946_v15 = vrot.slane %v2939_v20, 2 }
 0x2da   : > { %2845 = vrot.lane.b32.xlu0 %v2842_v56, %s6760_s22  ;;  %v6192_v53 = vadd.f32 %v2407_v26, %v2364_v5  ;;  %v2040_v2 = vpop.permute.xlu0 %2039  ;;  %v2136_v26 = vrot.slane %v2129_v40, 2 }
 0x2db   : > { %v2044_v29 = vadd.f32 %v2040_v2, %v1960_v37  ;;  %v7084_v37 = vld [vmem:[#allocation115_spill] sm:$0xff]  ;;  %v2947_v3 = vsel %vm891_vm5, %v2944_v25, %v2946_v15 }
 0x2dc   : > { %v2112_v50 = vmul.f32 %v6101_v45, %v7084_v37  ;;  %v2137_v44 = vsel %vm891_vm5, %v2134_v28, %v2136_v26  ;;  %v2502_v26 = vstv %s3310_s4 }
 0x2dd   : > { %v2421_v41 = vpop.permute.xlu1 %2420 }
 0x2de   : > { %2866 = vrot.lane.b32.xlu0 %v2863_v0, %s6760_s22  ;;  %v6203_v49 = vadd.f32 %v2421_v41, %v2370_v48  ;;  %v2061_v38 = vpop.permute.xlu0 %2060  ;;  %v2119_v19 = vrot.slane %v2112_v50, 2  ;;  %v2153_v0 = vrot.slane %v2146_v21, 2 }
 0x2df   : > { %v2065_v57 = vadd.f32 %v2061_v38, %v1981_v23 }
 0x2e0   : > { %v2154_v25 = vsel %vm891_vm5, %v2151_v35, %v2153_v0 }
 0x2e1   : > { %v6211_v39 = vpop.permute.xlu1 %2434  ;;  %v2141_v4 = vadd.f32 %v2137_v44, %v2065_v57  ;;  %v6290_v44 = vstv %s3312_s14 }
 0x2e2   : > { %2887 = vrot.lane.b32.xlu0 %v2884_v46, %s6763_s6  ;;  %v2082_v27 = vpop.permute.xlu0 %2081 }
 0x2e3   : > { %v2086_v10 = vadd.f32 %v2082_v27, %v2002_v61  ;;  %v7088_v61 = vrot.slane %v7087_v47, 2 }
 0x2e5   : > { %v6221_v23 = vpop.permute.xlu1 %2448  ;;  %v2120_v5 = vsel %vm891_vm5, %v7088_v61, %v2119_v19  ;;  %v2158_v41 = vadd.f32 %v2154_v25, %v2086_v10 }
 0x2e6   : > { %2908 = vrot.lane.b32.xlu0 %v2905_v7, %s6763_s6  ;;  %v2103_v56 = vpop.permute.xlu0 %2102  ;;  %v2124_v2 = vadd.f32 %v2120_v5, %v2044_v29  ;;  %v2170_v29 = vrot.slane %v2163_v62, 2 }
 0x2e7   : > { %v2107_v58 = vadd.f32 %v2103_v56, %v2023_v54 }
 0x2e8   : > { %v2171_v12 = vsel %vm891_vm5, %v2168_v59, %v2170_v29  ;;  %v6298_v29 = vstv %s3321_s12 }
 0x2e9   : > { %v6229_v13 = vpop.permute.xlu1 %2462  ;;  %v2175_v45 = vadd.f32 %v2171_v12, %v2107_v58 }
 0x2ea   : > { %2929 = vrot.lane.b32.xlu0 %v2926_v55, %s6763_s6  ;;  %v2192_v24 = vpop.permute.xlu0 %2191  ;;  %v6269_v55 = vld [vmem:[#allocation2 + $0x50] sm:$0xff] }
 0x2eb   : > { %v2196_v6 = vadd.f32 %v2192_v24, %v2124_v2  ;;  %v2351_v15 = vmul.f32 %v6269_v55, %v2349_v1  ;;  %v2357_v24 = vmul.f32 %v6269_v55, %v2355_v17  ;;  %v2363_v17 = vmul.f32 %v6269_v55, %v2361_v11 }
 0x2ec   : > { %v2440_v11 = vadd.f32 %v6211_v39, %v6165_v36  ;;  %v6321_v12 = vmul.f32 %v6269_v55, %v6290_v44 }
 0x2ed   : > { %v6240_v54 = vpop.permute.xlu1 %2476 }
 0x2ee   : > { %2950 = vrot.lane.b32.xlu0 %v2947_v3, %s6763_s6  ;;  %v2213_v31 = vpop.permute.xlu0 %2212  ;;  %s3309_s6 = sld [smem:[#allocation10 + $0x1e]]  ;;  %v2503_v3 = vmul.f32 %v6148_v22, %v2502_v26 }
 0x2ef   : > { %v2217_v60 = vadd.f32 %v2213_v31, %v2141_v4  ;;  %v6294_v31 = vmul.f32 %v6269_v55, %v2502_v26 }
 0x2f1   : > { %v6247_v51 = vpop.permute.xlu1 %2565 }
 0x2f2   : > { %v2234_v38 = vpop.permute.xlu0 %2233 }
 0x2f3   : > { %s3356_s22 = spop %3355  ;;  %v2238_v28 = vadd.f32 %v2234_v38, %v2158_v41  ;;  %v2537_v38 = vmul.f32 %v6148_v22, %v6290_v44 }
 0x2f4   : > { %v434_v48 = vstv %s3356_s22  ;;  %v2485_v40 = vstv %s3309_s6  ;;  %s3613_s22 = scalar_lea.vmem %s3612_s8, 2048 }
 0x2f5   : > { %v435_v16 = vmul.f32 0.00390625, %v434_v48  ;;  %v6252_v46 = vpop.permute.xlu1 %2586  ;;  %v2486_v61 = vmul.f32 %v6148_v22, %v2485_v40  ;;  %v6278_v5 = vmul.f32 %v6269_v55, %v2485_v40  ;;  %v6303_v48 = vstv %s3322_s26  ;;  %p3615_p8 = scmp.lt.s32.totalorder %s3613_s22, %s3607_s25 }
 0x2f6   : > { %v2255_v63 = vpop.permute.xlu0 %2254 }
 0x2f7   : > { %v436_v43 = vadd.f32 1e-05, %v435_v16  ;;  %v2259_v42 = vadd.f32 %v2255_v63, %v2175_v45  ;;  %v2492_v62 = vrot.slane %v2486_v61, 1  ;;  %v2493_v4 = vrot.slane %v6278_v5, 1  ;;  %p3616_p10 = por %p3615_p8, %p3614_p4 }
 0x2f8   : > { %v2510_v63 = vrot.slane %v6294_v31, 1  ;;  %v2544_v61 = vrot.slane %v6321_v12, 1 }
 0x2f9   : > { %3457 = vrsqrt.f32 %v436_v43  ;;  %v6257_v8 = vpop.permute.xlu1 %2607  ;;  %v2509_v43 = vrot.slane %v2503_v3, 1  ;;  %v2494_v36 = vsel %vm654_vm4, %v2492_v62, %v2493_v4  ;;  %p3617_p2 = pnand %p3616_p10, %p3610_p5 }
 0x2fa   : > { %v2276_v35 = vpop.permute.xlu0 %2275 }
 0x2fb   : > { %v2280_v14 = vadd.f32 %v2276_v35, %v2196_v6  ;;  %v6288_v6 = vstv %s3311_s5  ;;  %v6328_v35 = vmul.f32 %v6269_v55, %v6298_v29 }
 0x2fc   : > { %v2520_v41 = vmul.f32 %v6148_v22, %v6288_v6  ;;  %v6311_v16 = vmul.f32 %v6269_v55, %v6288_v6 }
 0x2fd   : > { %v6259_v57 = vpop.permute.xlu1 %2628  ;;  %v2353_v47 = vadd.f32 %v2351_v15, %v2280_v14  ;;  %v2454_v15 = vadd.f32 %v6221_v23, %v6180_v34  ;;  %v2729_v3 = vrot.slane %v6328_v35, 2  ;;  %v6362_v34 = vstv %s6305_s18 }
 0x2fe   : > { %v2297_v37 = vpop.permute.xlu0 %2296 }
 0x2ff   : > { %v2301_v50 = vadd.f32 %v2297_v37, %v2217_v60  ;;  %v2739_v37 = vmul.f32 %v6148_v22, %v6303_v48 }
 0x301   : > { %v6263_v33 = vpop.permute.xlu1 %2649  ;;  %v2359_v0 = vadd.f32 %v2357_v24, %v2301_v50  ;;  %v6341_v50 = vmul.f32 %v6269_v55, %v6303_v48 }
 0x302   : > { %v2318_v7 = vpop.permute.xlu0 %2317 }
 0x303   : > { %v6261_v27 = vpop.eup %3457  ;;  %v2322_v20 = vadd.f32 %v2318_v7, %v2238_v28  ;;  %v2527_v7 = vrot.slane %v6311_v16, 1 }
 0x304   : > { %v438_v59 = vmul.f32 %v6261_v27, %v7089_v32  ;;  %v2369_v32 = vmul.f32 %v6269_v55, %v2367_v9  ;;  %v2511_v9 = vsel %vm654_vm4, %v2509_v43, %v2510_v63 }
 0x305   : > { %v6267_v10 = vpop.permute.xlu1 %2670  ;;  %v2365_v45 = vadd.f32 %v2363_v17, %v2322_v20  ;;  %v2516_v43 = vadd.f32 %v2511_v9, %v2454_v15 }
 0x306   : > { %v440_v18 = vsub.f32 0.0, %v438_v59  ;;  %v2339_v19 = vpop.permute.xlu0 %2338  ;;  %v2526_v59 = vrot.slane %v2520_v41, 1 }
 0x307   : > { %v2343_v56 = vadd.f32 %v2339_v19, %v2259_v42  ;;  %v2722_v42 = vmul.f32 %v6148_v22, %v6298_v29  ;;  %v2488_v19 = vmul.f32 %v2485_v40, %v5806_v30  ;;  %v2746_v40 = vrot.slane %v6341_v50, 2 }
 0x308   : > { %v442_v52 = vmul.f32 1.442695, %v440_v18  ;;  %v2543_v18 = vrot.slane %v2537_v38, 1 }
 0x309   : > { %v6274_v58 = vpop.permute.xlu1 %2691  ;;  %v2728_v24 = vrot.slane %v2722_v42, 2  ;;  %v2495_v38 = vrot.slane %v2488_v19, 1 }
 0x30a   : > { %v2381_v21 = vpop.permute.xlu0 %2380  ;;  %3459 = vpow2.f32 %v442_v52 }
 0x30b   : > { %v6280_v2 = vadd.f32 %v2381_v21, %v2353_v47  ;;  %v2499_v47 = vadd.f32 %v2494_v36, %v2440_v11  ;;  %v2371_v21 = vadd.f32 %v2369_v32, %v2343_v56  ;;  %v2528_v56 = vsel %vm654_vm4, %v2526_v59, %v2527_v7 }
 0x30c   : > { %v2505_v11 = vmul.f32 %v2502_v26, %v5806_v30  ;;  %v6385_v26 = vmul.f32 %v6269_v55, %v6362_v34  ;;  %v2522_v59 = vmul.f32 %v6288_v6, %v5806_v30 }
 0x30d   : > { %v6285_v1 = vpop.permute.xlu1 %2712 }
 0x30e   : > { %v2395_v60 = vpop.permute.xlu0 %2394 }
 0x30f   : > { %v6296_v25 = vadd.f32 %v2395_v60, %v2359_v0  ;;  %v2745_v0 = vrot.slane %v2739_v37, 2  ;;  %v2571_v60 = vadd.f32 %v6247_v51, %v2499_v47  ;;  %v2468_v51 = vadd.f32 %v6229_v13, %v6192_v53 }
 0x310   : > { %v2756_v37 = vmul.f32 %v6148_v22, %v6362_v34  ;;  %v6388_v53 = vstv %s6332_s19  ;;  %v2592_v13 = vadd.f32 %v6252_v46, %v2516_v43  ;;  %v2496_v46 = vsel %vm654_vm4, %v2493_v4, %v2495_v38 }
 0x311   : > { %v6315_v28 = vpop.permute.xlu1 %2801  ;;  %v2655_v42 = vadd.f32 %v6263_v33, %v2571_v60  ;;  %v2747_v33 = vsel %vm891_vm5, %v2745_v0, %v2746_v40  ;;  %v2533_v15 = vadd.f32 %v2528_v56, %v2468_v51  ;;  %v6416_v9 = vmul.f32 %v6269_v55, %v6388_v53 }
 0x312   : > { %v2409_v14 = vpop.permute.xlu0 %2408  ;;  %v2762_v6 = vrot.slane %v2756_v37, 2  ;;  %v2529_v0 = vrot.slane %v2522_v59, 1  ;;  %v2957_v60 = vstv %s6369_s13  ;;  %v2539_v55 = vmul.f32 %v6290_v44, %v5806_v30 }
 0x313   : > { %v6337_v39 = vadd.f32 %v2409_v14, %v2365_v45  ;;  %v2545_v45 = vsel %vm654_vm4, %v2543_v18, %v2544_v61  ;;  %v2730_v14 = vsel %vm891_vm5, %v2728_v24, %v2729_v3  ;;  %v2482_v18 = vadd.f32 %v6240_v54, %v6203_v49 }
 0x314   : > { %v3460_v52 = vpop.eup %3459  ;;  %v2735_v47 = vadd.f32 %v2730_v14, %v2655_v42  ;;  %v2763_v49 = vrot.slane %v6385_v26, 2  ;;  %v2773_v54 = vmul.f32 %v6148_v22, %v6388_v53  ;;  %v2613_v4 = vadd.f32 %v6257_v8, %v2533_v15 }
 0x315   : > { %v6347_v20 = vpop.permute.xlu1 %2822  ;;  %v446_v23 = vadd.f32 1.0, %v3460_v52  ;;  %v2512_v52 = vrot.slane %v2505_v11, 1  ;;  %v2780_v51 = vrot.slane %v6416_v9, 2  ;;  %v2961_v43 = vstv %s6390_s21 }
 0x316   : > { %v2423_v62 = vpop.permute.xlu0 %2422  ;;  %v2697_v8 = vadd.f32 %v6274_v58, %v2613_v4  ;;  %v2779_v11 = vrot.slane %v2773_v54, 2  ;;  %v2764_v30 = vsel %vm891_vm5, %v2762_v6, %v2763_v49  ;;  %v2546_v14 = vrot.slane %v2539_v55, 1  ;;  %v3478_v6 = vld [vmem:[%s3967_s2] sm:$0xff] }
 0x317   : > { %v6359_v17 = vadd.f32 %v2423_v62, %v2371_v21  ;;  %3461 = vrcp.f32 %v446_v23  ;;  %v2550_v62 = vadd.f32 %v2545_v45, %v2482_v18  ;;  %v2513_v22 = vsel %vm654_vm4, %v2510_v63, %v2512_v52 }
 0x318   : > { %v2971_v45 = vstv %s6403_s28  ;;  %v2769_v37 = vadd.f32 %v2764_v30, %v2697_v8  ;;  %v2986_v15 = vstv %s6424_s15  ;;  %v3005_v8 = vstv %s6461_s20 }
 0x319   : > { %v6367_v41 = vpop.permute.xlu1 %2843  ;;  %v2634_v38 = vadd.f32 %v6259_v57, %v2550_v62 }
 0x31a   : > { %v2437_v36 = vpop.permute.xlu0 %2436 }
 0x31b   : > { %v2441_v32 = vadd.f32 %v2437_v36, %v6280_v2  ;;  %v2676_v2 = vadd.f32 %v6267_v10, %v2592_v13  ;;  %v2807_v10 = vadd.f32 %v6315_v28, %v2735_v47  ;;  %v2718_v57 = vadd.f32 %v6285_v1, %v2634_v38 }
 0x31c   : > { %v2547_v47 = vsel %vm654_vm4, %v2544_v61, %v2546_v14 }
 0x31d   : > { %v6401_v19 = vpop.permute.xlu1 %2864  ;;  %v6409_v21 = vadd.f32 %v2496_v46, %v2441_v32  ;;  %v2752_v28 = vadd.f32 %v2747_v33, %v2676_v2  ;;  %v2975_v32 = vstv %s6418_s16 }
 0x31e   : > { %v2451_v5 = vpop.permute.xlu0 %2450 }
 0x31f   : > { %v2455_v24 = vadd.f32 %v2451_v5, %v6296_v25  ;;  %v2828_v63 = vadd.f32 %v6347_v20, %v2752_v28  ;;  %v2530_v20 = vsel %vm654_vm4, %v2527_v7, %v2529_v0  ;;  %v2849_v7 = vadd.f32 %v6367_v41, %v2769_v37 }
 0x320   : > { %v3001_v0 = vstv %s6448_s11 }
 0x321   : > { %v2886_v23 = vpop.permute.xlu1 %2885  ;;  %v6432_v25 = vadd.f32 %v2513_v22, %v2455_v24  ;;  %v3462_v1 = vpop.eup %3461 }
 0x322   : > { %v2891_v56 = vadd.f32 %v2886_v23, %v2807_v10  ;;  %v2465_v31 = vpop.permute.xlu0 %2464  ;;  %v2990_v10 = vstv %s6437_s10  ;;  %v3479_v23 = vld [vmem:[%s3967_s2 + $0x10] sm:$0xff] }
 0x323   : > { %v2469_v44 = vadd.f32 %v2465_v31, %v6337_v39  ;;  %v2781_v39 = vsel %vm891_vm5, %v2779_v11, %v2780_v51  ;;  %v3480_v11 = vld [vmem:[%s3967_s2 + $0x20] sm:$0xff] }
 0x324   : > { %v2958_v58 = vmul.f32 %v2957_v60, %v2891_v56  ;;  %v2786_v52 = vadd.f32 %v2781_v39, %v2718_v57 }
 0x325   : > { %v2907_v42 = vpop.permute.xlu1 %2906  ;;  %v6455_v33 = vadd.f32 %v2530_v20, %v2469_v44  ;;  %v3481_v44 = vld [vmem:[#allocation2 + $0x58] sm:$0x3] }
 0x326   : > { %v2962_v36 = vadd.f32 %v2961_v43, %v2958_v58  ;;  %v2912_v13 = vadd.f32 %v2907_v42, %v2828_v63  ;;  %v2479_v16 = vpop.permute.xlu0 %2478  ;;  %v2870_v24 = vadd.f32 %v6401_v19, %v2786_v52  ;;  %v2724_v57 = vmul.f32 %v3481_v44, %v6298_v29  ;;  %v3482_v42 = vld [vmem:[%s3967_s2 + $0x30] sm:$0xff] }
 0x327   : > { %v2483_v46 = vadd.f32 %v2479_v16, %v6359_v17 }
 0x328   : > { %v2964_v59 = vmul.f32 %v3462_v1, %v2962_v36  ;;  %v2972_v18 = vmul.f32 %v2971_v45, %v2912_v13  ;;  %v2731_v37 = vrot.slane %v2724_v57, 2  ;;  %v2741_v36 = vmul.f32 %v3481_v44, %v6303_v48  ;;  %v7090_v13 = vld [vmem:[#allocation70_spill] sm:$0xff] }
 0x329   : > { %v2928_v2 = vpop.permute.xlu1 %2927  ;;  %v2551_v4 = vadd.f32 %v2547_v47, %v2483_v46  ;;  %v439_v39 = vmul.f32 %v6261_v27, %v7090_v13 }
 0x32a   : > { %v2966_v54 = vadd.f32 %v3478_v6, %v2964_v59  ;;  %v2976_v41 = vadd.f32 %v2975_v32, %v2972_v18  ;;  %v2933_v5 = vadd.f32 %v2928_v2, %v2849_v7  ;;  %v2568_v17 = vpop.permute.xlu0 %2567  ;;  %v2748_v29 = vrot.slane %v2741_v36, 2 }
 0x32b   : > { %v2572_v16 = vadd.f32 %v2568_v17, %v6409_v21  ;;  %v2758_v18 = vmul.f32 %v3481_v44, %v6362_v34  ;;  %v441_v46 = vsub.f32 0.0, %v439_v39  ;;  %v2775_v6 = vmul.f32 %v3481_v44, %v6388_v53 }
 0x32c   : > { %2968 = vst.msk [vmem:[%s6477_s1] sm:$0xff] %vm402_vm2, %v2966_v54  ;;  %v2978_v12 = vmul.f32 %v3462_v1, %v2976_v41  ;;  %v2987_v61 = vmul.f32 %v2986_v15, %v2933_v5  ;;  %v2749_v27 = vsel %vm891_vm5, %v2746_v40, %v2748_v29 }
 0x32d   : > { %v2949_v62 = vpop.permute.xlu1 %2948  ;;  %v2765_v21 = vrot.slane %v2758_v18, 2  ;;  %v444_v54 = vmul.f32 1.442695, %v441_v46 }
 0x32e   : > { %v2980_v22 = vadd.f32 %v3479_v23, %v2978_v12  ;;  %v2991_v55 = vadd.f32 %v2990_v10, %v2987_v61  ;;  %v2954_v19 = vadd.f32 %v2949_v62, %v2870_v24  ;;  %v2589_v28 = vpop.permute.xlu0 %2588 }
 0x32f   : > { %v2593_v52 = vadd.f32 %v2589_v28, %v6432_v25  ;;  %v2766_v34 = vsel %vm891_vm5, %v2763_v49, %v2765_v21  ;;  %v2782_v25 = vrot.slane %v2775_v6, 2  ;;  %3463 = vpow2.f32 %v444_v54 }
 0x330   : > { %3335 = vst.msk [vmem:[%s6477_s1 + $0x10] sm:$0xff] %vm402_vm2, %v2980_v22  ;;  %v2993_v56 = vmul.f32 %v3462_v1, %v2991_v55  ;;  %v3002_v38 = vmul.f32 %v3001_v0, %v2954_v19 }
 0x331   : > { %v2783_v53 = vsel %vm891_vm5, %v2780_v51, %v2782_v25 }
 0x332   : > { %v2995_v31 = vadd.f32 %v3480_v11, %v2993_v56  ;;  %v3006_v63 = vadd.f32 %v3005_v8, %v3002_v38  ;;  %v2610_v30 = vpop.permute.xlu0 %2609 }
 0x333   : > { %v2614_v35 = vadd.f32 %v2610_v30, %v6455_v33 }
 0x334   : > { %3339 = vst.msk [vmem:[%s6477_s1 + $0x20] sm:$0xff] %vm402_vm2, %v2995_v31  ;;  %v3008_v58 = vmul.f32 %v3462_v1, %v3006_v63  ;;  %v2732_v1 = vsel %vm891_vm5, %v2729_v3, %v2731_v37 }
 0x336   : > { %v3010_v20 = vadd.f32 %v3482_v42, %v3008_v58  ;;  %v2631_v14 = vpop.permute.xlu0 %2630  ;;  %v3483_v58 = vld [vmem:[%s3967_s2 + $0x8] sm:$0xff] }
 0x337   : > { %v2635_v17 = vadd.f32 %v2631_v14, %v2551_v4 }
 0x338   : > { %3343 = vst.msk [vmem:[%s6477_s1 + $0x30] sm:$0xff] %vm402_vm2, %v3010_v20 }
 0x339   : > { %v3464_v62 = vpop.eup %3463 }
 0x33a   : > { %v2652_v7 = vpop.permute.xlu0 %2651  ;;  %v447_v26 = vadd.f32 1.0, %v3464_v62 }
 0x33b   : > { %v2656_v59 = vadd.f32 %v2652_v7, %v2572_v16  ;;  %v3485_v16 = vld [vmem:[%s3967_s2 + $0x28] sm:$0xff] }
 0x33c   : > { %3465 = vrcp.f32 %v447_v26 }
 0x33d   : > { %v2736_v2 = vadd.f32 %v2732_v1, %v2656_v59 }
 0x33e   : > { %v2673_v47 = vpop.permute.xlu0 %2672 }
 0x33f   : > { %v2677_v48 = vadd.f32 %v2673_v47, %v2593_v52 }
 0x341   : > { %v2753_v3 = vadd.f32 %v2749_v27, %v2677_v48 }
 0x342   : > { %v2694_v41 = vpop.permute.xlu0 %2693 }
 0x343   : > { %v2698_v5 = vadd.f32 %v2694_v41, %v2614_v35 }
 0x345   : > { %v2770_v24 = vadd.f32 %v2766_v34, %v2698_v5 }
 0x346   : > { %v2715_v50 = vpop.permute.xlu0 %2714  ;;  %v3466_v38 = vpop.eup %3465 }
 0x347   : > { %v2719_v40 = vadd.f32 %v2715_v50, %v2635_v17 }
 0x349   : > { %v2787_v33 = vadd.f32 %v2783_v53, %v2719_v40 }
 0x34a   : > { %v2804_v12 = vpop.permute.xlu0 %2803 }
 0x34b   : > { %v2808_v4 = vadd.f32 %v2804_v12, %v2736_v2 }
 0x34e   : > { %v2825_v61 = vpop.permute.xlu0 %2824 }
 0x34f   : > { %v2829_v19 = vadd.f32 %v2825_v61, %v2753_v3 }
 0x352   : > { %v2846_v23 = vpop.permute.xlu0 %2845 }
 0x353   : > { %v2850_v11 = vadd.f32 %v2846_v23, %v2770_v24 }
 0x356   : > { %v2867_v49 = vpop.permute.xlu0 %2866 }
 0x35a   : > { %v2888_v22 = vpop.permute.xlu0 %2887 }
 0x35b   : > { %v2892_v55 = vadd.f32 %v2888_v22, %v2808_v4 }
 0x35d   : > { %v2959_v9 = vmul.f32 %v2957_v60, %v2892_v55 }
 0x35e   : > { %v2909_v51 = vpop.permute.xlu0 %2908 }
 0x35f   : > { %v2963_v28 = vadd.f32 %v2961_v43, %v2959_v9  ;;  %v2913_v56 = vadd.f32 %v2909_v51, %v2829_v19  ;;  %v2871_v43 = vadd.f32 %v2867_v49, %v2787_v33 }
 0x361   : > { %v2965_v31 = vmul.f32 %v3466_v38, %v2963_v28  ;;  %v2973_v63 = vmul.f32 %v2971_v45, %v2913_v56  ;;  %v3484_v45 = vld [vmem:[%s3967_s2 + $0x18] sm:$0xff] }
 0x362   : > { %v2930_v30 = vpop.permute.xlu0 %2929 }
 0x363   : > { %v2967_v44 = vadd.f32 %v3483_v58, %v2965_v31  ;;  %v2977_v60 = vadd.f32 %v2975_v32, %v2973_v63  ;;  %v2934_v57 = vadd.f32 %v2930_v30, %v2850_v11 }
 0x365   : > { %2969 = vst.msk [vmem:[%s6477_s1 + $0x8] sm:$0xff] %vm402_vm2, %v2967_v44  ;;  %v2979_v42 = vmul.f32 %v3466_v38, %v2977_v60  ;;  %v2988_v20 = vmul.f32 %v2986_v15, %v2934_v57 }
 0x366   : > { %v2951_v14 = vpop.permute.xlu0 %2950 }
 0x367   : > { %v2981_v37 = vadd.f32 %v3484_v45, %v2979_v42  ;;  %v2992_v36 = vadd.f32 %v2990_v10, %v2988_v20  ;;  %v2955_v13 = vadd.f32 %v2951_v14, %v2871_v43  ;;  %v3486_v10 = vld [vmem:[%s3967_s2 + $0x38] sm:$0xff] }
 0x369   : > { %3336 = vst.msk [vmem:[%s6477_s1 + $0x18] sm:$0xff] %vm402_vm2, %v2981_v37  ;;  %v2994_v32 = vmul.f32 %v3466_v38, %v2992_v36  ;;  %v3003_v39 = vmul.f32 %v3001_v0, %v2955_v13 }
 0x36b   : > { %v2996_v7 = vadd.f32 %v3485_v16, %v2994_v32  ;;  %v3007_v59 = vadd.f32 %v3005_v8, %v3003_v39 }
 0x36d   : > { %3340 = vst.msk [vmem:[%s6477_s1 + $0x28] sm:$0xff] %vm402_vm2, %v2996_v7  ;;  %v3009_v15 = vmul.f32 %v3466_v38, %v3007_v59 }
 0x36f   : > { %v3011_v0 = vadd.f32 %v3486_v10, %v3009_v15 }
 0x371   : > { %3344 = vst.msk [vmem:[%s6477_s1 + $0x38] sm:$0xff] %vm402_vm2, %v3011_v0 }
 0x372   : > { %3620 = shalt.err (!%p3617_p2)
}
 0x373   : > { %s3621_s2 = scalar_lea.hbm %s6551_s24, 1024  ;;  %s3625_s5 = scalar_lea.hbm %s7091_s27, 2048 }
 0x374   : > { %p3622_p11 = scmp.ne.s32.totalorder %s6551_s24, %s3621_s2  ;;  %p3626_p9 = scmp.lt.u32.totalorder %s6551_s24, %s7091_s27 }
 0x375   : > { %p3627_p3 = scmp.lt.u32.totalorder %s3625_s5, %s3621_s2  ;;  %p3629_p0 = scmp.lt.u32.totalorder %s3621_s2, %s6551_s24 }
 0x376   : > { %p3623_p7 = pnand %p3622_p11, %p3853_p6 }
 0x377   : > { %p3628_p13 = por %p3627_p3, %p3626_p9 }
 0x378   : > { %p3624_p12 = pneg %p3623_p7 }
 0x379   : > { %p3630_p1 = por %p3629_p0, %p3628_p13 }
 0x37b   : > { %p3631_p5 = pnand %p3630_p1, %p3624_p12 }
 0x37d   : > { %3634 = shalt.err (!%p3631_p5)
}
 0x37e   : > { %s3704_s26 = smov 128   ;;  %s3705_s18 = smov 8  }
 0x37f   : > { %3377 = dma.vmem_to_hbm [thread:$0]  (%p3853_p6), %s6553_s23, 1024, %s6551_s24, %s3016_s0, %s3704_s26, %s3704_s26, %s3705_s18  }
 0x380 PF: > { %s7092_s19 = sld [smem:[#allocation22_spill]]  ;;  %s7093_s13 = sld [smem:[#allocation26_spill]] }
 0x381   : > { %s7094_s21 = sld [smem:[#allocation25_spill]] }
 0x386   : > { %s3044_s28 = sand.u32 1, %s7092_s19   ;;  %p7095_p4 = scmp.ne.s32.totalorder %s7093_s13, 0 }
 0x387   : > { %p7096_p8 = scmp.ge.s32.totalorder %s7094_s21, 2  ;;  %s3045_s16 = scalar_lea.sflag [#allocation5], %s3044_s28 }
 0x389   : > { %p3400_p10 = pnand %p7096_p8, %p7095_p4 }
 0x38b   : > { %3672 = dma.done.wait (!%p3400_p10), %s3045_s16, 1024  }
 0x38c   : > { %3674 = vsyncadd (!%p3400_p10), %s3045_s16, 4294966272  ;;  %s7097_s24 = sld [smem:[#allocation27_spill]]  ;;  %s7098_s21 = sld [smem:[#allocation23_spill]] }
 0x38d   : > { %s7099_s22 = sld [smem:[#allocation24_spill]]  ;;  %s7100_s23 = sld [smem:[#allocation28_spill]] }
 0x392   : > { %p25_p2 = scmp.ge.s32.totalorder %s7097_s24, 4  }
 0x394   :  { %27 = sbr.rel (!%p25_p2) target bundleno = 18 (0x12), region = 125 }
 0x39b   :  { %3050 = vsyncpa [#allocation4], 1 }
 0x39c   :  { %3052 = vsyncpa [#allocation4 + $0x1], 1 }
 0x39d   :  { %3053 = vsyncpa [#allocation8], 1 }
 0x39e   :  { %3055 = vsyncpa [#allocation8 + $0x1], 1 }
 0x39f   :  { %3056 = vsyncpa [#allocation5], 1 }
 0x3a0   :  { %3058 = vsyncpa [#allocation5 + $0x1], 1 }
 0x3a1   :  { %3059 = vsyncpa [#allocation6], 1 }
 0x3a2   :  { %3061 = vsyncpa [#allocation6 + $0x1], 1 }
 0x3a3   :  { %3062 = vsyncpa [#allocation11], 1 }
 0x3a4   :  { %3063 = vsyncpa [#allocation14], 1 }

</bundles_post_ra>
